<compile_context>
chip_gen: v5e
topology: v5e:2x2
jax: 0.10.0
libtpu: 0.0.40
codegen_flags: <defaults>
</compile_context>

<pallas_src>
import math

import jax
import jax.numpy as jnp
from jax.experimental import pallas as pl
from jax.experimental.pallas import tpu as pltpu

EPS = 1e-5
LANE = 128


def _round_up(x, m):
    return (x + m - 1) // m * m


# ----------------------------------------------------------------------------
# In-kernel helpers
# ----------------------------------------------------------------------------
def _fill_w_halo(pad_ref, img):
    """pad_ref: (H, W+2, C) f32 scratch.  Writes `img` (H, W, C) into columns 1..W and
    zeros ONLY the two halo columns (no full-buffer zero fill)."""
    H, W, C = img.shape
    pad_ref[:, 0:1, :] = jnp.zeros((H, 1, C), jnp.float32)
    pad_ref[:, W + 1:W + 2, :] = jnp.zeros((H, 1, C), jnp.float32)
    pad_ref[:, 1:W + 1, :] = img


def _conv3x3_padded(pad_ref, w_flat):
    """3x3 'SAME' conv of one image as a single im2col matmul.

    pad_ref : (H, W+2, C) f32 scratch holding the image in cols 1..W, zero halo cols.
    w_flat  : (9*C, N) bf16 weight, tap-major / channel-minor (HWIO flattened).
    returns : (H*W, N) f32.
    """
    H = pad_ref.shape[0]
    W = pad_ref.shape[1] - 2
    C = pad_ref.shape[-1]
    zero_row = jnp.zeros((1, W, C), jnp.bfloat16)

    # Three W-shifted views (kx = 0,1,2  <->  dx = -1,0,+1); cast once to bf16 (MXU).
    vxs = [pad_ref[:, kx:kx + W, :].astype(jnp.bfloat16) for kx in range(3)]

    taps = []
    for ky in range(3):                      # dy = ky - 1 (H shift, major axis -> cheap)
        for kx in range(3):
            v = vxs[kx]
            if ky == 0:                      # tap[h] = v[h-1], zero at h = 0
                t = jnp.concatenate([zero_row, v[:H - 1]], axis=0)
            elif ky == 2:                    # tap[h] = v[h+1], zero at h = H-1
                t = jnp.concatenate([v[1:], zero_row], axis=0)
            else:
                t = v
            taps.append(t)

    # Lane-aligned concat (each chunk is a full 128-lane group) -> (H*W, 9*C) bf16.
    patch = jnp.concatenate(taps, axis=-1).reshape(H * W, 9 * C)
    return jnp.dot(patch, w_flat, preferred_element_type=jnp.float32)


def _channel_stats(acc):
    """Per-channel (sum, sum_sq) of an (M, C) f32 conv output -> (2, C) f32."""
    s = jnp.sum(acc, axis=0, keepdims=True)
    sq = jnp.sum(acc * acc, axis=0, keepdims=True)
    return jnp.concatenate([s, sq], axis=0)


# ----------------------------------------------------------------------------
# Stage kernels (grid over batch, one image per program)
# ----------------------------------------------------------------------------
def _stage1_kernel(x_ref, w1_ref, c1_ref, st1_ref, xpad_ref):
    _, H, W, _ = x_ref.shape
    _fill_w_halo(xpad_ref, x_ref[0])
    acc = _conv3x3_padded(xpad_ref, w1_ref[...])          # (H*W, COUT_P) f32
    c1_ref[0] = acc.reshape(H, W, acc.shape[-1])
    st1_ref[0] = _channel_stats(acc)


def _stage2_kernel(c1_ref, sc1_ref, sh1_ref, w2_ref, c2_ref, st2_ref, ypad_ref):
    _, H, W, _ = c1_ref.shape
    # BN1 (folded scale/shift) + ReLU in f32.
    y = jnp.maximum(c1_ref[0] * sc1_ref[...] + sh1_ref[...], 0.0)
    _fill_w_halo(ypad_ref, y)
    acc = _conv3x3_padded(ypad_ref, w2_ref[...])          # (H*W, COUT_P) f32
    c2_ref[0] = acc.reshape(H, W, acc.shape[-1])
    st2_ref[0] = _channel_stats(acc)


def _stage3_kernel(c2_ref, sc2_ref, sh2_ref, x_out_ref, p_out_ref, rm_ref):
    _, H, W, C = c2_ref.shape
    # BN2 (folded scale/shift) + ReLU -> pre-pool activation (written once).
    y = jnp.maximum(c2_ref[0] * sc2_ref[...] + sh2_ref[...], 0.0)
    x_out_ref[0] = y
    # MaxPool2d(2,2): rows in registers (major-axis reshape is layout-free) ...
    ya = y.reshape(H // 2, 2, W, C)
    rm_ref[...] = jnp.maximum(ya[:, 0], ya[:, 1])
    # ... columns via stride-2 reads of the small scratch.
    p_out_ref[0] = jnp.maximum(rm_ref[:, pl.ds(0, W // 2, 2), :],
                               rm_ref[:, pl.ds(1, W // 2, 2), :])
    # Dropout(p=0.0) is the identity, so the pooled tensor is the final `p`.


# ----------------------------------------------------------------------------
# Wrapper
# ----------------------------------------------------------------------------
def _pack_conv_weight(w_hwio, cin_p, cout_p):
    """HWIO -> (9*cin_p, cout_p) bf16, tap-major / channel-minor, zero-padded."""
    kh, kw, cin, cout = w_hwio.shape
    wp = jnp.zeros((kh, kw, cin_p, cout_p), jnp.float32)
    wp = wp.at[:, :, :cin, :cout].set(w_hwio.astype(jnp.float32))
    return wp.reshape(kh * kw * cin_p, cout_p).astype(jnp.bfloat16)


def _pad_vec(v, n_p):
    out = jnp.zeros((n_p,), jnp.float32)
    return out.at[:v.shape[0]].set(v.astype(jnp.float32))


def _bn_scale_shift(stats, gamma_p, beta_p, count):
    """Fold global batch statistics into per-channel scale/shift (torch training BN)."""
    s = jnp.sum(stats, axis=0)                              # (2, C_P)
    mean = s[0] / count
    var = jnp.maximum(s[1] / count - mean * mean, 0.0)      # biased variance
    scale = gamma_p * jax.lax.rsqrt(var + EPS)
    shift = beta_p - mean * scale
    return scale.reshape(1, -1), shift.reshape(1, -1)


@jax.jit
def encoder_block_forward(x_nchw, w1, w2, gamma1, beta1, gamma2, beta2):
    """EncoderBlock.forward: returns (x, p) in NCHW, matching the PyTorch module."""
    B, Cin, H, W = x_nchw.shape
    Cout = w1.shape[-1]
    CIN_P = _round_up(Cin, LANE)
    COUT_P = _round_up(Cout, LANE)

    # NCHW -> NHWC, pad channels to a lane-dense multiple of 128 (zeros).
    x = jnp.transpose(x_nchw, (0, 2, 3, 1)).astype(jnp.float32)
    x = jnp.pad(x, ((0, 0), (0, 0), (0, 0), (0, CIN_P - Cin)))

    w1f = _pack_conv_weight(w1, CIN_P, COUT_P)              # (9*CIN_P, COUT_P) bf16
    w2f = _pack_conv_weight(w2, COUT_P, COUT_P)             # (9*COUT_P, COUT_P) bf16
    g1p, b1p = _pad_vec(gamma1, COUT_P), _pad_vec(beta1, COUT_P)
    g2p, b2p = _pad_vec(gamma2, COUT_P), _pad_vec(beta2, COUT_P)

    cparams = pltpu.CompilerParams(
        dimension_semantics=("parallel",),       # batch axis -> both TCs on v7x
        vmem_limit_bytes=64 * 1024 * 1024)

    def img_spec(c):
        return pl.BlockSpec((1, H, W, c), lambda b: (b, 0, 0, 0))

    def vec_spec():
        return pl.BlockSpec((1, COUT_P), lambda b: (0, 0))

    def stats_spec():
        return pl.BlockSpec((1, 2, COUT_P), lambda b: (b, 0, 0))

    # ---- stage 1: conv1 + per-image BN statistics ---------------------------
    c1, st1 = pl.pallas_call(
        _stage1_kernel,
        grid=(B,),
        in_specs=[img_spec(CIN_P),
                  pl.BlockSpec((9 * CIN_P, COUT_P), lambda b: (0, 0))],
        out_specs=(img_spec(COUT_P), stats_spec()),
        out_shape=(jax.ShapeDtypeStruct((B, H, W, COUT_P), jnp.float32),
                   jax.ShapeDtypeStruct((B, 2, COUT_P), jnp.float32)),
        scratch_shapes=[pltpu.VMEM((H, W + 2, CIN_P), jnp.float32)],
        compiler_params=cparams,
    )(x, w1f)
    sc1, sh1 = _bn_scale_shift(st1, g1p, b1p, float(B * H * W))

    # ---- stage 2: bn1 + relu + conv2 + per-image BN statistics --------------
    c2, st2 = pl.pallas_call(
        _stage2_kernel,
        grid=(B,),
        in_specs=[img_spec(COUT_P), vec_spec(), vec_spec(),
                  pl.BlockSpec((9 * COUT_P, COUT_P), lambda b: (0, 0))],
        out_specs=(img_spec(COUT_P), stats_spec()),
        out_shape=(jax.ShapeDtypeStruct((B, H, W, COUT_P), jnp.float32),
                   jax.ShapeDtypeStruct((B, 2, COUT_P), jnp.float32)),
        scratch_shapes=[pltpu.VMEM((H, W + 2, COUT_P), jnp.float32)],
        compiler_params=cparams,
    )(c1, sc1, sh1, w2f)
    sc2, sh2 = _bn_scale_shift(st2, g2p, b2p, float(B * H * W))

    # ---- stage 3: bn2 + relu -> x ; maxpool(2,2) (+ dropout p=0) -> p --------
    x_full, p_full = pl.pallas_call(
        _stage3_kernel,
        grid=(B,),
        in_specs=[img_spec(COUT_P), vec_spec(), vec_spec()],
        out_specs=(img_spec(COUT_P),
                   pl.BlockSpec((1, H // 2, W // 2, COUT_P),
                                lambda b: (b, 0, 0, 0))),
        out_shape=(jax.ShapeDtypeStruct((B, H, W, COUT_P), jnp.float32),
                   jax.ShapeDtypeStruct((B, H // 2, W // 2, COUT_P), jnp.float32)),
        scratch_shapes=[pltpu.VMEM((H // 2, W, COUT_P), jnp.float32)],
        compiler_params=cparams,
    )(c2, sc2, sh2)

    # Drop lane padding, NHWC -> NCHW to match the PyTorch module's convention.
    x_out = jnp.transpose(x_full[..., :Cout], (0, 3, 1, 2))
    p_out = jnp.transpose(p_full[..., :Cout], (0, 3, 1, 2))
    return x_out, p_out


# ----------------------------------------------------------------------------
# Pure-JAX reference (cross-check)
# ----------------------------------------------------------------------------
def _reference_forward(x_nchw, w1, w2, gamma1, beta1, gamma2, beta2, bf16_matmul):
    x = jnp.transpose(x_nchw, (0, 2, 3, 1)).astype(jnp.float32)

    def conv(v, w):
        if bf16_matmul:  # same contract as the kernel: bf16 inputs, f32 accumulation
            v = v.astype(jnp.bfloat16)
            w = w.astype(jnp.bfloat16)
        return jax.lax.conv_general_dilated(
            v, w, window_strides=(1, 1), padding="SAME",
            dimension_numbers=("NHWC", "HWIO", "NHWC"),
            preferred_element_type=jnp.float32)

    def bn_relu(v, g, b):
        m = jnp.mean(v, axis=(0, 1, 2), keepdims=True)
        var = jnp.mean((v - m) ** 2, axis=(0, 1, 2), keepdims=True)
        v = (v - m) * jax.lax.rsqrt(var + EPS)
        v = v * g.reshape(1, 1, 1, -1) + b.reshape(1, 1, 1, -1)
        return jnp.maximum(v, 0.0)

    y = bn_relu(conv(x, w1), gamma1, beta1)
    y = bn_relu(conv(y, w2), gamma2, beta2)
    p = jax.lax.reduce_window(y, -jnp.inf, jax.lax.max,
                              (1, 2, 2, 1), (1, 2, 2, 1), "VALID")
    return jnp.transpose(y, (0, 3, 1, 2)), jnp.transpose(p, (0, 3, 1, 2))


if __name__ == "__main__":
    B, Cin, Cout, H, W = 2, 4, 8, 16, 16

    key = jax.random.PRNGKey(0)
    kx, kw1, kw2, kg1, kb1, kg2, kb2 = jax.random.split(key, 7)

    x = jax.random.normal(kx, (B, Cin, H, W), jnp.float32)             # NCHW input
    # Conv weights in HWIO; Kaiming-style scale (deterministic, synthetic).
    w1 = jax.random.normal(kw1, (3, 3, Cin, Cout), jnp.float32) * math.sqrt(2.0 / (Cin * 9))
    w2 = jax.random.normal(kw2, (3, 3, Cout, Cout), jnp.float32) * math.sqrt(2.0 / (Cout * 9))
    # BatchNorm affine params (perturbed from the PyTorch default ones/zeros).
    gamma1 = 1.0 + 0.05 * jax.random.normal(kg1, (Cout,), jnp.float32)
    beta1 = 0.05 * jax.random.normal(kb1, (Cout,), jnp.float32)
    gamma2 = 1.0 + 0.05 * jax.random.normal(kg2, (Cout,), jnp.float32)
    beta2 = 0.05 * jax.random.normal(kb2, (Cout,), jnp.float32)

    x_out, p_out = encoder_block_forward(x, w1, w2, gamma1, beta1, gamma2, beta2)
    jax.block_until_ready((x_out, p_out))

    assert x_out.shape == (B, Cout, H, W)
    assert p_out.shape == (B, Cout, H // 2, W // 2)

    # Matched reference: identical bf16-input / f32-accumulate matmul contract.
    x_m, p_m = _reference_forward(x, w1, w2, gamma1, beta1, gamma2, beta2, True)
    assert jnp.allclose(x_out, x_m, rtol=1e-2, atol=1e-2)
    assert jnp.allclose(p_out, p_m, rtol=1e-2, atol=1e-2)

    # Full-f32 reference (exact PyTorch math); loose tolerance covers bf16 MXU inputs.
    x_r, p_r = _reference_forward(x, w1, w2, gamma1, beta1, gamma2, beta2, False)
    assert jnp.allclose(x_out, x_r, rtol=5e-2, atol=5e-2)
    assert jnp.allclose(p_out, p_r, rtol=5e-2, atol=5e-2)

    print("KERNEL_OK")
</pallas_src>

<mosaic_0001>
module attributes {stable_mosaic.version = 11 : i64} {
  func.func @_stage1_kernel(%arg0: i32, %arg1: memref<1x16x16x128xf32, #tpu.memory_space<vmem>>, %arg2: memref<1152x128xbf16, #tpu.memory_space<vmem>>, %arg3: memref<1x16x16x128xf32, #tpu.memory_space<vmem>>, %arg4: memref<1x2x128xf32, #tpu.memory_space<vmem>>, %arg5: memref<16x18x128xf32, #tpu.memory_space<vmem>>) attributes {dimension_semantics = [#tpu.dimension_semantics<parallel>], iteration_bounds = array<i64: 2>, scalar_prefetch = 0 : i64, scratch_operands = 1 : i64, tpu.core_type = #tpu.core_type<tc>, window_params = [{transform_indices = @transform_0, window_bounds = array<i64: 1, 16, 16, 128>}, {pipeline_mode = #tpu.pipeline_mode<synchronous>, transform_indices = @transform_1, window_bounds = array<i64: 1152, 128>}, {transform_indices = @transform_2, window_bounds = array<i64: 1, 16, 16, 128>}, {transform_indices = @transform_3, window_bounds = array<i64: 1, 2, 128>}]} {
    %c0 = arith.constant 0 : index
    %c0_0 = arith.constant 0 : index
    %c0_1 = arith.constant 0 : index
    %c0_2 = arith.constant 0 : index
    %0 = vector.load %arg1[%c0, %c0_0, %c0_1, %c0_2] : memref<1x16x16x128xf32, #tpu.memory_space<vmem>>, vector<1x16x16x128xf32>
    %1 = vector.shape_cast %0 : vector<1x16x16x128xf32> to vector<16x16x128xf32>
    %cst = arith.constant 0.000000e+00 : f32
    %2 = vector.broadcast %cst : f32 to vector<16x1x128xf32>
    %c0_3 = arith.constant 0 : index
    %c0_4 = arith.constant 0 : index
    %c0_5 = arith.constant 0 : index
    %3 = vector.load %arg5[%c0_3, %c0_4, %c0_5] : memref<16x18x128xf32, #tpu.memory_space<vmem>>, vector<16x1x128xf32>
    tpu.vector_store %arg5[%c0_3, %c0_4, %c0_5], %2 {strides = array<i32>} : memref<16x18x128xf32, #tpu.memory_space<vmem>>, vector<16x1x128xf32>,
    %cst_6 = arith.constant 0.000000e+00 : f32
    %4 = vector.broadcast %cst_6 : f32 to vector<16x1x128xf32>
    %c0_7 = arith.constant 0 : index
    %c17 = arith.constant 17 : index
    %c0_8 = arith.constant 0 : index
    %5 = vector.load %arg5[%c0_7, %c17, %c0_8] : memref<16x18x128xf32, #tpu.memory_space<vmem>>, vector<16x1x128xf32>
    tpu.vector_store %arg5[%c0_7, %c17, %c0_8], %4 {strides = array<i32>} : memref<16x18x128xf32, #tpu.memory_space<vmem>>, vector<16x1x128xf32>,
    %c0_9 = arith.constant 0 : index
    %c1 = arith.constant 1 : index
    %c0_10 = arith.constant 0 : index
    %6 = vector.load %arg5[%c0_9, %c1, %c0_10] : memref<16x18x128xf32, #tpu.memory_space<vmem>>, vector<16x16x128xf32>
    tpu.vector_store %arg5[%c0_9, %c1, %c0_10], %1 {strides = array<i32>} : memref<16x18x128xf32, #tpu.memory_space<vmem>>, vector<16x16x128xf32>,
    %c0_11 = arith.constant 0 : index
    %c0_12 = arith.constant 0 : index
    %7 = vector.load %arg2[%c0_11, %c0_12] : memref<1152x128xbf16, #tpu.memory_space<vmem>>, vector<1152x128xbf16>
    %cst_13 = arith.constant 0.000000e+00 : bf16
    %8 = vector.broadcast %cst_13 : bf16 to vector<1x16x128xbf16>
    %c0_14 = arith.constant 0 : index
    %c0_15 = arith.constant 0 : index
    %c0_16 = arith.constant 0 : index
    %9 = vector.load %arg5[%c0_14, %c0_15, %c0_16] : memref<16x18x128xf32, #tpu.memory_space<vmem>>, vector<16x16x128xf32>
    %10 = arith.truncf %9 : vector<16x16x128xf32> to vector<16x16x128xbf16>
    %c0_17 = arith.constant 0 : index
    %c1_18 = arith.constant 1 : index
    %c0_19 = arith.constant 0 : index
    %11 = vector.load %arg5[%c0_17, %c1_18, %c0_19] : memref<16x18x128xf32, #tpu.memory_space<vmem>>, vector<16x16x128xf32>
    %12 = arith.truncf %11 : vector<16x16x128xf32> to vector<16x16x128xbf16>
    %c0_20 = arith.constant 0 : index
    %c2 = arith.constant 2 : index
    %c0_21 = arith.constant 0 : index
    %13 = vector.load %arg5[%c0_20, %c2, %c0_21] : memref<16x18x128xf32, #tpu.memory_space<vmem>>, vector<16x16x128xf32>
    %14 = arith.truncf %13 : vector<16x16x128xf32> to vector<16x16x128xbf16>
    %15 = vector.extract_strided_slice %10 {offsets = [0, 0, 0], sizes = [15, 16, 128], strides = [1, 1, 1]} : vector<16x16x128xbf16> to vector<15x16x128xbf16>
    %16 = tpu.concatenate %8, %15 in 0 : vector<1x16x128xbf16>, vector<15x16x128xbf16> -> vector<16x16x128xbf16>
    %17 = vector.extract_strided_slice %12 {offsets = [0, 0, 0], sizes = [15, 16, 128], strides = [1, 1, 1]} : vector<16x16x128xbf16> to vector<15x16x128xbf16>
    %18 = tpu.concatenate %8, %17 in 0 : vector<1x16x128xbf16>, vector<15x16x128xbf16> -> vector<16x16x128xbf16>
    %19 = vector.extract_strided_slice %14 {offsets = [0, 0, 0], sizes = [15, 16, 128], strides = [1, 1, 1]} : vector<16x16x128xbf16> to vector<15x16x128xbf16>
    %20 = tpu.concatenate %8, %19 in 0 : vector<1x16x128xbf16>, vector<15x16x128xbf16> -> vector<16x16x128xbf16>
    %21 = vector.extract_strided_slice %10 {offsets = [1, 0, 0], sizes = [15, 16, 128], strides = [1, 1, 1]} : vector<16x16x128xbf16> to vector<15x16x128xbf16>
    %22 = tpu.concatenate %21, %8 in 0 : vector<15x16x128xbf16>, vector<1x16x128xbf16> -> vector<16x16x128xbf16>
    %23 = vector.extract_strided_slice %12 {offsets = [1, 0, 0], sizes = [15, 16, 128], strides = [1, 1, 1]} : vector<16x16x128xbf16> to vector<15x16x128xbf16>
    %24 = tpu.concatenate %23, %8 in 0 : vector<15x16x128xbf16>, vector<1x16x128xbf16> -> vector<16x16x128xbf16>
    %25 = vector.extract_strided_slice %14 {offsets = [1, 0, 0], sizes = [15, 16, 128], strides = [1, 1, 1]} : vector<16x16x128xbf16> to vector<15x16x128xbf16>
    %26 = tpu.concatenate %25, %8 in 0 : vector<15x16x128xbf16>, vector<1x16x128xbf16> -> vector<16x16x128xbf16>
    %27 = tpu.concatenate %16, %18, %20, %10, %12, %14, %22, %24, %26 in 2 : vector<16x16x128xbf16>, vector<16x16x128xbf16>, vector<16x16x128xbf16>, vector<16x16x128xbf16>, vector<16x16x128xbf16>, vector<16x16x128xbf16>, vector<16x16x128xbf16>, vector<16x16x128xbf16>, vector<16x16x128xbf16> -> vector<16x16x1152xbf16>
    %28 = vector.shape_cast %27 : vector<16x16x1152xbf16> to vector<256x1152xbf16>
    %cst_22 = arith.constant dense<0.000000e+00> : vector<256x128xf32>
    %29 = tpu.matmul %28, %7, %cst_22 {dimension_numbers = #tpu.dot_dimension_numbers<[1], [0], [0], [1], [0, 0, 1, 1], [], []>} : vector<256x1152xbf16>, vector<1152x128xbf16>, vector<256x128xf32> -> vector<256x128xf32>
    %30 = vector.shape_cast %29 : vector<256x128xf32> to vector<16x16x128xf32>
    %c0_23 = arith.constant 0 : index
    %c0_24 = arith.constant 0 : index
    %c0_25 = arith.constant 0 : index
    %c0_26 = arith.constant 0 : index
    %31 = vector.load %arg3[%c0_23, %c0_24, %c0_25, %c0_26] : memref<1x16x16x128xf32, #tpu.memory_space<vmem>>, vector<1x16x16x128xf32>
    %32 = vector.shape_cast %31 : vector<1x16x16x128xf32> to vector<16x16x128xf32>
    %33 = vector.shape_cast %30 : vector<16x16x128xf32> to vector<1x16x16x128xf32>
    tpu.vector_store %arg3[%c0_23, %c0_24, %c0_25, %c0_26], %33 {strides = array<i32>} : memref<1x16x16x128xf32, #tpu.memory_space<vmem>>, vector<1x16x16x128xf32>,
    %cst_27 = arith.constant dense<0.000000e+00> : vector<128xf32>
    %34 = vector.multi_reduction <add>, %29, %cst_27 [0] : vector<256x128xf32> to vector<128xf32>
    %35 = vector.shape_cast %34 : vector<128xf32> to vector<1x128xf32>
    %36 = arith.mulf %29, %29 : vector<256x128xf32>
    %cst_28 = arith.constant dense<0.000000e+00> : vector<128xf32>
    %37 = vector.multi_reduction <add>, %36, %cst_28 [0] : vector<256x128xf32> to vector<128xf32>
    %38 = vector.shape_cast %37 : vector<128xf32> to vector<1x128xf32>
    %39 = tpu.concatenate %35, %38 in 0 : vector<1x128xf32>, vector<1x128xf32> -> vector<2x128xf32>
    %c0_29 = arith.constant 0 : index
    %c0_30 = arith.constant 0 : index
    %c0_31 = arith.constant 0 : index
    %40 = vector.load %arg4[%c0_29, %c0_30, %c0_31] : memref<1x2x128xf32, #tpu.memory_space<vmem>>, vector<1x2x128xf32>
    %41 = vector.shape_cast %40 : vector<1x2x128xf32> to vector<2x128xf32>
    %42 = vector.shape_cast %39 : vector<2x128xf32> to vector<1x2x128xf32>
    tpu.vector_store %arg4[%c0_29, %c0_30, %c0_31], %42 {strides = array<i32>} : memref<1x2x128xf32, #tpu.memory_space<vmem>>, vector<1x2x128xf32>,
    return
  }
  func.func @transform_0(%arg0: i32) -> (i32, i32, i32, i32) {
    %c0_i32 = arith.constant 0 : i32
    %c0_i32_0 = arith.constant 0 : i32
    %c0_i32_1 = arith.constant 0 : i32
    %c0_i32_2 = arith.constant 0 : i32
    return %arg0, %c0_i32, %c0_i32_0, %c0_i32_1 : i32, i32, i32, i32
  }
  func.func @transform_1(%arg0: i32) -> (i32, i32) {
    %c0_i32 = arith.constant 0 : i32
    %c0_i32_0 = arith.constant 0 : i32
    %c0_i32_1 = arith.constant 0 : i32
    return %c0_i32, %c0_i32_0 : i32, i32
  }
  func.func @transform_2(%arg0: i32) -> (i32, i32, i32, i32) {
    %c0_i32 = arith.constant 0 : i32
    %c0_i32_0 = arith.constant 0 : i32
    %c0_i32_1 = arith.constant 0 : i32
    %c0_i32_2 = arith.constant 0 : i32
    return %arg0, %c0_i32, %c0_i32_0, %c0_i32_1 : i32, i32, i32, i32
  }
  func.func @transform_3(%arg0: i32) -> (i32, i32, i32) {
    %c0_i32 = arith.constant 0 : i32
    %c0_i32_0 = arith.constant 0 : i32
    %c0_i32_1 = arith.constant 0 : i32
    return %arg0, %c0_i32, %c0_i32_0 : i32, i32, i32
  }
}

module attributes {stable_mosaic.version = 11 : i64} {
  func.func @_stage2_kernel(%arg0: i32, %arg1: memref<1x16x16x128xf32, #tpu.memory_space<vmem>>, %arg2: memref<1x128xf32, #tpu.memory_space<vmem>>, %arg3: memref<1x128xf32, #tpu.memory_space<vmem>>, %arg4: memref<1152x128xbf16, #tpu.memory_space<vmem>>, %arg5: memref<1x16x16x128xf32, #tpu.memory_space<vmem>>, %arg6: memref<1x2x128xf32, #tpu.memory_space<vmem>>, %arg7: memref<16x18x128xf32, #tpu.memory_space<vmem>>) attributes {dimension_semantics = [#tpu.dimension_semantics<parallel>], iteration_bounds = array<i64: 2>, scalar_prefetch = 0 : i64, scratch_operands = 1 : i64, tpu.core_type = #tpu.core_type<tc>, window_params = [{transform_indices = @transform_0, window_bounds = array<i64: 1, 16, 16, 128>}, {pipeline_mode = #tpu.pipeline_mode<synchronous>, transform_indices = @transform_1, window_bounds = array<i64: 1, 128>}, {pipeline_mode = #tpu.pipeline_mode<synchronous>, transform_indices = @transform_2, window_bounds = array<i64: 1, 128>}, {pipeline_mode = #tpu.pipeline_mode<synchronous>, transform_indices = @transform_3, window_bounds = array<i64: 1152, 128>}, {transform_indices = @transform_4, window_bounds = array<i64: 1, 16, 16, 128>}, {transform_indices = @transform_5, window_bounds = array<i64: 1, 2, 128>}]} {
    %c0 = arith.constant 0 : index
    %c0_0 = arith.constant 0 : index
    %c0_1 = arith.constant 0 : index
    %c0_2 = arith.constant 0 : index
    %0 = vector.load %arg1[%c0, %c0_0, %c0_1, %c0_2] : memref<1x16x16x128xf32, #tpu.memory_space<vmem>>, vector<1x16x16x128xf32>
    %1 = vector.shape_cast %0 : vector<1x16x16x128xf32> to vector<16x16x128xf32>
    %c0_3 = arith.constant 0 : index
    %c0_4 = arith.constant 0 : index
    %2 = vector.load %arg2[%c0_3, %c0_4] : memref<1x128xf32, #tpu.memory_space<vmem>>, vector<1x128xf32>
    %3 = vector.shape_cast %2 : vector<1x128xf32> to vector<1x1x128xf32>
    %4 = vector.broadcast %3 : vector<1x1x128xf32> to vector<16x16x128xf32>
    %5 = arith.mulf %1, %4 : vector<16x16x128xf32>
    %c0_5 = arith.constant 0 : index
    %c0_6 = arith.constant 0 : index
    %6 = vector.load %arg3[%c0_5, %c0_6] : memref<1x128xf32, #tpu.memory_space<vmem>>, vector<1x128xf32>
    %7 = vector.shape_cast %6 : vector<1x128xf32> to vector<1x1x128xf32>
    %8 = vector.broadcast %7 : vector<1x1x128xf32> to vector<16x16x128xf32>
    %9 = arith.addf %5, %8 : vector<16x16x128xf32>
    %cst = arith.constant 0.000000e+00 : f32
    %10 = vector.broadcast %cst : f32 to vector<16x16x128xf32>
    %11 = arith.maximumf %9, %10 : vector<16x16x128xf32>
    %cst_7 = arith.constant 0.000000e+00 : f32
    %12 = vector.broadcast %cst_7 : f32 to vector<16x1x128xf32>
    %c0_8 = arith.constant 0 : index
    %c0_9 = arith.constant 0 : index
    %c0_10 = arith.constant 0 : index
    %13 = vector.load %arg7[%c0_8, %c0_9, %c0_10] : memref<16x18x128xf32, #tpu.memory_space<vmem>>, vector<16x1x128xf32>
    tpu.vector_store %arg7[%c0_8, %c0_9, %c0_10], %12 {strides = array<i32>} : memref<16x18x128xf32, #tpu.memory_space<vmem>>, vector<16x1x128xf32>,
    %cst_11 = arith.constant 0.000000e+00 : f32
    %14 = vector.broadcast %cst_11 : f32 to vector<16x1x128xf32>
    %c0_12 = arith.constant 0 : index
    %c17 = arith.constant 17 : index
    %c0_13 = arith.constant 0 : index
    %15 = vector.load %arg7[%c0_12, %c17, %c0_13] : memref<16x18x128xf32, #tpu.memory_space<vmem>>, vector<16x1x128xf32>
    tpu.vector_store %arg7[%c0_12, %c17, %c0_13], %14 {strides = array<i32>} : memref<16x18x128xf32, #tpu.memory_space<vmem>>, vector<16x1x128xf32>,
    %c0_14 = arith.constant 0 : index
    %c1 = arith.constant 1 : index
    %c0_15 = arith.constant 0 : index
    %16 = vector.load %arg7[%c0_14, %c1, %c0_15] : memref<16x18x128xf32, #tpu.memory_space<vmem>>, vector<16x16x128xf32>
    tpu.vector_store %arg7[%c0_14, %c1, %c0_15], %11 {strides = array<i32>} : memref<16x18x128xf32, #tpu.memory_space<vmem>>, vector<16x16x128xf32>,
    %c0_16 = arith.constant 0 : index
    %c0_17 = arith.constant 0 : index
    %17 = vector.load %arg4[%c0_16, %c0_17] : memref<1152x128xbf16, #tpu.memory_space<vmem>>, vector<1152x128xbf16>
    %cst_18 = arith.constant 0.000000e+00 : bf16
    %18 = vector.broadcast %cst_18 : bf16 to vector<1x16x128xbf16>
    %c0_19 = arith.constant 0 : index
    %c0_20 = arith.constant 0 : index
    %c0_21 = arith.constant 0 : index
    %19 = vector.load %arg7[%c0_19, %c0_20, %c0_21] : memref<16x18x128xf32, #tpu.memory_space<vmem>>, vector<16x16x128xf32>
    %20 = arith.truncf %19 : vector<16x16x128xf32> to vector<16x16x128xbf16>
    %c0_22 = arith.constant 0 : index
    %c1_23 = arith.constant 1 : index
    %c0_24 = arith.constant 0 : index
    %21 = vector.load %arg7[%c0_22, %c1_23, %c0_24] : memref<16x18x128xf32, #tpu.memory_space<vmem>>, vector<16x16x128xf32>
    %22 = arith.truncf %21 : vector<16x16x128xf32> to vector<16x16x128xbf16>
    %c0_25 = arith.constant 0 : index
    %c2 = arith.constant 2 : index
    %c0_26 = arith.constant 0 : index
    %23 = vector.load %arg7[%c0_25, %c2, %c0_26] : memref<16x18x128xf32, #tpu.memory_space<vmem>>, vector<16x16x128xf32>
    %24 = arith.truncf %23 : vector<16x16x128xf32> to vector<16x16x128xbf16>
    %25 = vector.extract_strided_slice %20 {offsets = [0, 0, 0], sizes = [15, 16, 128], strides = [1, 1, 1]} : vector<16x16x128xbf16> to vector<15x16x128xbf16>
    %26 = tpu.concatenate %18, %25 in 0 : vector<1x16x128xbf16>, vector<15x16x128xbf16> -> vector<16x16x128xbf16>
    %27 = vector.extract_strided_slice %22 {offsets = [0, 0, 0], sizes = [15, 16, 128], strides = [1, 1, 1]} : vector<16x16x128xbf16> to vector<15x16x128xbf16>
    %28 = tpu.concatenate %18, %27 in 0 : vector<1x16x128xbf16>, vector<15x16x128xbf16> -> vector<16x16x128xbf16>
    %29 = vector.extract_strided_slice %24 {offsets = [0, 0, 0], sizes = [15, 16, 128], strides = [1, 1, 1]} : vector<16x16x128xbf16> to vector<15x16x128xbf16>
    %30 = tpu.concatenate %18, %29 in 0 : vector<1x16x128xbf16>, vector<15x16x128xbf16> -> vector<16x16x128xbf16>
    %31 = vector.extract_strided_slice %20 {offsets = [1, 0, 0], sizes = [15, 16, 128], strides = [1, 1, 1]} : vector<16x16x128xbf16> to vector<15x16x128xbf16>
    %32 = tpu.concatenate %31, %18 in 0 : vector<15x16x128xbf16>, vector<1x16x128xbf16> -> vector<16x16x128xbf16>
    %33 = vector.extract_strided_slice %22 {offsets = [1, 0, 0], sizes = [15, 16, 128], strides = [1, 1, 1]} : vector<16x16x128xbf16> to vector<15x16x128xbf16>
    %34 = tpu.concatenate %33, %18 in 0 : vector<15x16x128xbf16>, vector<1x16x128xbf16> -> vector<16x16x128xbf16>
    %35 = vector.extract_strided_slice %24 {offsets = [1, 0, 0], sizes = [15, 16, 128], strides = [1, 1, 1]} : vector<16x16x128xbf16> to vector<15x16x128xbf16>
    %36 = tpu.concatenate %35, %18 in 0 : vector<15x16x128xbf16>, vector<1x16x128xbf16> -> vector<16x16x128xbf16>
    %37 = tpu.concatenate %26, %28, %30, %20, %22, %24, %32, %34, %36 in 2 : vector<16x16x128xbf16>, vector<16x16x128xbf16>, vector<16x16x128xbf16>, vector<16x16x128xbf16>, vector<16x16x128xbf16>, vector<16x16x128xbf16>, vector<16x16x128xbf16>, vector<16x16x128xbf16>, vector<16x16x128xbf16> -> vector<16x16x1152xbf16>
    %38 = vector.shape_cast %37 : vector<16x16x1152xbf16> to vector<256x1152xbf16>
    %cst_27 = arith.constant dense<0.000000e+00> : vector<256x128xf32>
    %39 = tpu.matmul %38, %17, %cst_27 {dimension_numbers = #tpu.dot_dimension_numbers<[1], [0], [0], [1], [0, 0, 1, 1], [], []>} : vector<256x1152xbf16>, vector<1152x128xbf16>, vector<256x128xf32> -> vector<256x128xf32>
    %40 = vector.shape_cast %39 : vector<256x128xf32> to vector<16x16x128xf32>
    %c0_28 = arith.constant 0 : index
    %c0_29 = arith.constant 0 : index
    %c0_30 = arith.constant 0 : index
    %c0_31 = arith.constant 0 : index
    %41 = vector.load %arg5[%c0_28, %c0_29, %c0_30, %c0_31] : memref<1x16x16x128xf32, #tpu.memory_space<vmem>>, vector<1x16x16x128xf32>
    %42 = vector.shape_cast %41 : vector<1x16x16x128xf32> to vector<16x16x128xf32>
    %43 = vector.shape_cast %40 : vector<16x16x128xf32> to vector<1x16x16x128xf32>
    tpu.vector_store %arg5[%c0_28, %c0_29, %c0_30, %c0_31], %43 {strides = array<i32>} : memref<1x16x16x128xf32, #tpu.memory_space<vmem>>, vector<1x16x16x128xf32>,
    %cst_32 = arith.constant dense<0.000000e+00> : vector<128xf32>
    %44 = vector.multi_reduction <add>, %39, %cst_32 [0] : vector<256x128xf32> to vector<128xf32>
    %45 = vector.shape_cast %44 : vector<128xf32> to vector<1x128xf32>
    %46 = arith.mulf %39, %39 : vector<256x128xf32>
    %cst_33 = arith.constant dense<0.000000e+00> : vector<128xf32>
    %47 = vector.multi_reduction <add>, %46, %cst_33 [0] : vector<256x128xf32> to vector<128xf32>
    %48 = vector.shape_cast %47 : vector<128xf32> to vector<1x128xf32>
    %49 = tpu.concatenate %45, %48 in 0 : vector<1x128xf32>, vector<1x128xf32> -> vector<2x128xf32>
    %c0_34 = arith.constant 0 : index
    %c0_35 = arith.constant 0 : index
    %c0_36 = arith.constant 0 : index
    %50 = vector.load %arg6[%c0_34, %c0_35, %c0_36] : memref<1x2x128xf32, #tpu.memory_space<vmem>>, vector<1x2x128xf32>
    %51 = vector.shape_cast %50 : vector<1x2x128xf32> to vector<2x128xf32>
    %52 = vector.shape_cast %49 : vector<2x128xf32> to vector<1x2x128xf32>
    tpu.vector_store %arg6[%c0_34, %c0_35, %c0_36], %52 {strides = array<i32>} : memref<1x2x128xf32, #tpu.memory_space<vmem>>, vector<1x2x128xf32>,
    return
  }
  func.func @transform_0(%arg0: i32) -> (i32, i32, i32, i32) {
    %c0_i32 = arith.constant 0 : i32
    %c0_i32_0 = arith.constant 0 : i32
    %c0_i32_1 = arith.constant 0 : i32
    %c0_i32_2 = arith.constant 0 : i32
    return %arg0, %c0_i32, %c0_i32_0, %c0_i32_1 : i32, i32, i32, i32
  }
  func.func @transform_1(%arg0: i32) -> (i32, i32) {
    %c0_i32 = arith.constant 0 : i32
    %c0_i32_0 = arith.constant 0 : i32
    %c0_i32_1 = arith.constant 0 : i32
    return %c0_i32, %c0_i32_0 : i32, i32
  }
  func.func @transform_2(%arg0: i32) -> (i32, i32) {
    %c0_i32 = arith.constant 0 : i32
    %c0_i32_0 = arith.constant 0 : i32
    %c0_i32_1 = arith.constant 0 : i32
    return %c0_i32, %c0_i32_0 : i32, i32
  }
  func.func @transform_3(%arg0: i32) -> (i32, i32) {
    %c0_i32 = arith.constant 0 : i32
    %c0_i32_0 = arith.constant 0 : i32
    %c0_i32_1 = arith.constant 0 : i32
    return %c0_i32, %c0_i32_0 : i32, i32
  }
  func.func @transform_4(%arg0: i32) -> (i32, i32, i32, i32) {
    %c0_i32 = arith.constant 0 : i32
    %c0_i32_0 = arith.constant 0 : i32
    %c0_i32_1 = arith.constant 0 : i32
    %c0_i32_2 = arith.constant 0 : i32
    return %arg0, %c0_i32, %c0_i32_0, %c0_i32_1 : i32, i32, i32, i32
  }
  func.func @transform_5(%arg0: i32) -> (i32, i32, i32) {
    %c0_i32 = arith.constant 0 : i32
    %c0_i32_0 = arith.constant 0 : i32
    %c0_i32_1 = arith.constant 0 : i32
    return %arg0, %c0_i32, %c0_i32_0 : i32, i32, i32
  }
}

module attributes {stable_mosaic.version = 11 : i64} {
  func.func @_stage3_kernel(%arg0: i32, %arg1: memref<1x16x16x128xf32, #tpu.memory_space<vmem>>, %arg2: memref<1x128xf32, #tpu.memory_space<vmem>>, %arg3: memref<1x128xf32, #tpu.memory_space<vmem>>, %arg4: memref<1x16x16x128xf32, #tpu.memory_space<vmem>>, %arg5: memref<1x8x8x128xf32, #tpu.memory_space<vmem>>, %arg6: memref<8x16x128xf32, #tpu.memory_space<vmem>>) attributes {dimension_semantics = [#tpu.dimension_semantics<parallel>], iteration_bounds = array<i64: 2>, scalar_prefetch = 0 : i64, scratch_operands = 1 : i64, tpu.core_type = #tpu.core_type<tc>, window_params = [{transform_indices = @transform_0, window_bounds = array<i64: 1, 16, 16, 128>}, {pipeline_mode = #tpu.pipeline_mode<synchronous>, transform_indices = @transform_1, window_bounds = array<i64: 1, 128>}, {pipeline_mode = #tpu.pipeline_mode<synchronous>, transform_indices = @transform_2, window_bounds = array<i64: 1, 128>}, {transform_indices = @transform_3, window_bounds = array<i64: 1, 16, 16, 128>}, {transform_indices = @transform_4, window_bounds = array<i64: 1, 8, 8, 128>}]} {
    %c0 = arith.constant 0 : index
    %c0_0 = arith.constant 0 : index
    %c0_1 = arith.constant 0 : index
    %c0_2 = arith.constant 0 : index
    %0 = vector.load %arg1[%c0, %c0_0, %c0_1, %c0_2] : memref<1x16x16x128xf32, #tpu.memory_space<vmem>>, vector<1x16x16x128xf32>
    %1 = vector.shape_cast %0 : vector<1x16x16x128xf32> to vector<16x16x128xf32>
    %c0_3 = arith.constant 0 : index
    %c0_4 = arith.constant 0 : index
    %2 = vector.load %arg2[%c0_3, %c0_4] : memref<1x128xf32, #tpu.memory_space<vmem>>, vector<1x128xf32>
    %3 = vector.shape_cast %2 : vector<1x128xf32> to vector<1x1x128xf32>
    %4 = vector.broadcast %3 : vector<1x1x128xf32> to vector<16x16x128xf32>
    %5 = arith.mulf %1, %4 : vector<16x16x128xf32>
    %c0_5 = arith.constant 0 : index
    %c0_6 = arith.constant 0 : index
    %6 = vector.load %arg3[%c0_5, %c0_6] : memref<1x128xf32, #tpu.memory_space<vmem>>, vector<1x128xf32>
    %7 = vector.shape_cast %6 : vector<1x128xf32> to vector<1x1x128xf32>
    %8 = vector.broadcast %7 : vector<1x1x128xf32> to vector<16x16x128xf32>
    %9 = arith.addf %5, %8 : vector<16x16x128xf32>
    %cst = arith.constant 0.000000e+00 : f32
    %10 = vector.broadcast %cst : f32 to vector<16x16x128xf32>
    %11 = arith.maximumf %9, %10 : vector<16x16x128xf32>
    %c0_7 = arith.constant 0 : index
    %c0_8 = arith.constant 0 : index
    %c0_9 = arith.constant 0 : index
    %c0_10 = arith.constant 0 : index
    %12 = vector.load %arg4[%c0_7, %c0_8, %c0_9, %c0_10] : memref<1x16x16x128xf32, #tpu.memory_space<vmem>>, vector<1x16x16x128xf32>
    %13 = vector.shape_cast %12 : vector<1x16x16x128xf32> to vector<16x16x128xf32>
    %14 = vector.shape_cast %11 : vector<16x16x128xf32> to vector<1x16x16x128xf32>
    tpu.vector_store %arg4[%c0_7, %c0_8, %c0_9, %c0_10], %14 {strides = array<i32>} : memref<1x16x16x128xf32, #tpu.memory_space<vmem>>, vector<1x16x16x128xf32>,
    %15 = vector.shape_cast %11 : vector<16x16x128xf32> to vector<8x2x16x128xf32>
    %16 = vector.extract_strided_slice %15 {offsets = [0, 0, 0, 0], sizes = [8, 1, 16, 128], strides = [1, 1, 1, 1]} : vector<8x2x16x128xf32> to vector<8x1x16x128xf32>
    %17 = vector.shape_cast %16 : vector<8x1x16x128xf32> to vector<8x16x128xf32>
    %18 = vector.extract_strided_slice %15 {offsets = [0, 1, 0, 0], sizes = [8, 1, 16, 128], strides = [1, 1, 1, 1]} : vector<8x2x16x128xf32> to vector<8x1x16x128xf32>
    %19 = vector.shape_cast %18 : vector<8x1x16x128xf32> to vector<8x16x128xf32>
    %20 = arith.maximumf %17, %19 : vector<8x16x128xf32>
    %c0_11 = arith.constant 0 : index
    %c0_12 = arith.constant 0 : index
    %c0_13 = arith.constant 0 : index
    %21 = vector.load %arg6[%c0_11, %c0_12, %c0_13] : memref<8x16x128xf32, #tpu.memory_space<vmem>>, vector<8x16x128xf32>
    tpu.vector_store %arg6[%c0_11, %c0_12, %c0_13], %20 {strides = array<i32>} : memref<8x16x128xf32, #tpu.memory_space<vmem>>, vector<8x16x128xf32>,
    %c0_14 = arith.constant 0 : index
    %c0_15 = arith.constant 0 : index
    %c0_16 = arith.constant 0 : index
    %22 = tpu.strided_load %arg6[%c0_14, %c0_15, %c0_16] {strides = array<i32: 1, 2, 1>} : memref<8x16x128xf32, #tpu.memory_space<vmem>>, vector<8x8x128xf32>
    %c0_17 = arith.constant 0 : index
    %c1 = arith.constant 1 : index
    %c0_18 = arith.constant 0 : index
    %23 = tpu.strided_load %arg6[%c0_17, %c1, %c0_18] {strides = array<i32: 1, 2, 1>} : memref<8x16x128xf32, #tpu.memory_space<vmem>>, vector<8x8x128xf32>
    %24 = arith.maximumf %22, %23 : vector<8x8x128xf32>
    %c0_19 = arith.constant 0 : index
    %c0_20 = arith.constant 0 : index
    %c0_21 = arith.constant 0 : index
    %c0_22 = arith.constant 0 : index
    %25 = vector.load %arg5[%c0_19, %c0_20, %c0_21, %c0_22] : memref<1x8x8x128xf32, #tpu.memory_space<vmem>>, vector<1x8x8x128xf32>
    %26 = vector.shape_cast %25 : vector<1x8x8x128xf32> to vector<8x8x128xf32>
    %27 = vector.shape_cast %24 : vector<8x8x128xf32> to vector<1x8x8x128xf32>
    tpu.vector_store %arg5[%c0_19, %c0_20, %c0_21, %c0_22], %27 {strides = array<i32>} : memref<1x8x8x128xf32, #tpu.memory_space<vmem>>, vector<1x8x8x128xf32>,
    return
  }
  func.func @transform_0(%arg0: i32) -> (i32, i32, i32, i32) {
    %c0_i32 = arith.constant 0 : i32
    %c0_i32_0 = arith.constant 0 : i32
    %c0_i32_1 = arith.constant 0 : i32
    %c0_i32_2 = arith.constant 0 : i32
    return %arg0, %c0_i32, %c0_i32_0, %c0_i32_1 : i32, i32, i32, i32
  }
  func.func @transform_1(%arg0: i32) -> (i32, i32) {
    %c0_i32 = arith.constant 0 : i32
    %c0_i32_0 = arith.constant 0 : i32
    %c0_i32_1 = arith.constant 0 : i32
    return %c0_i32, %c0_i32_0 : i32, i32
  }
  func.func @transform_2(%arg0: i32) -> (i32, i32) {
    %c0_i32 = arith.constant 0 : i32
    %c0_i32_0 = arith.constant 0 : i32
    %c0_i32_1 = arith.constant 0 : i32
    return %c0_i32, %c0_i32_0 : i32, i32
  }
  func.func @transform_3(%arg0: i32) -> (i32, i32, i32, i32) {
    %c0_i32 = arith.constant 0 : i32
    %c0_i32_0 = arith.constant 0 : i32
    %c0_i32_1 = arith.constant 0 : i32
    %c0_i32_2 = arith.constant 0 : i32
    return %arg0, %c0_i32, %c0_i32_0, %c0_i32_1 : i32, i32, i32, i32
  }
  func.func @transform_4(%arg0: i32) -> (i32, i32, i32, i32) {
    %c0_i32 = arith.constant 0 : i32
    %c0_i32_0 = arith.constant 0 : i32
    %c0_i32_1 = arith.constant 0 : i32
    %c0_i32_2 = arith.constant 0 : i32
    return %arg0, %c0_i32, %c0_i32_0, %c0_i32_1 : i32, i32, i32, i32
  }
}

</mosaic_0001>

<bundles_post_ra>
// kernel: encoder_block_forward.5
= control target key start
LH: loop header
LB: loop body
LE: loop exit
PB: predicated region body
PF: predicated region fallthrough
CT: control target
= control target key end

     0   :  { %s605_s15 = smov 0   ;;  %s898_s0 = inlined_call_operand.vmem [shape: f32[2,16,16,128], index: 0, kind: input, shape index: {}]   ;;  %s899_s1 = inlined_call_operand.vmem [shape: f32[1,128], index: 1, kind: input, shape index: {}]   ;;  %s900_s2 = inlined_call_operand.vmem [shape: f32[1,128], index: 2, kind: input, shape index: {}]   ;;  %s901_s3 = inlined_call_operand.vmem [shape: f32[2,16,16,128], index: 3, kind: output, shape index: {0}]   ;;  %s902_s4 = inlined_call_operand.vmem [shape: f32[2,8,8,128], index: 4, kind: output, shape index: {1}]  }
   0x1 LB: > { %s546_s16 = sadd.s32 4294967295, %s578_s15   ;;  %p550_p0 = scmp.ge.s32.totalorder %s578_s15, 1  ;;  %s578_s15 = sphi %s605_s15, %s15_s15  }
   0x2   : > { %p165_p1 = scmp.lt.s32.totalorder %s578_s15, 3 }
   0x4   : > { %p166_p2 = pnand %p550_p0, %p165_p1 }
   0x5   : > { %p196_p3 = scmp.lt.s32.totalorder (!%p166_p2), %s546_s16, 1 }
   0x6   : > { %169 = sbr.rel (%p166_p2) target bundleno = 77 (0x4d), region = 32 }
   0xb   : > { %s904_s16 = smov (!%p196_p3, %s546_s16), 1  ;;  %v618_v0 = vld [vmem:[%s899_s1] ss:$0 sm:$0xff] }
   0xc   : > { %s559_s19 = sshll.u32 %s904_s16, 8  ;;  %v629_v1 = vld [vmem:[%s900_s2] ss:$0 sm:$0xff]  ;;  %s561_s28 = sshll.u32 %s904_s16, 6 }
   0xd   : > { %s624_s22 = scalar_lea.vmem %s898_s0, %s559_s19  ;;  %s666_s27 = scalar_lea.vmem %s901_s3, %s559_s19 }
   0xe   : > { %v211_v2 = vld [vmem:[%s624_s22] sm:$0xff]  ;;  %v213_v3 = vld [vmem:[%s624_s22 + $0x10] sm:$0xff]  ;;  %v212_v4 = vld [vmem:[%s624_s22 + $0x8] sm:$0xff]  ;;  %s210_s5 = scalar_lea.vmem %s902_s4, %s561_s28 }
   0xf   : > { %v247_v5 = vmul.f32 %v618_v0, %v211_v2  ;;  %v249_v6 = vmul.f32 %v618_v0, %v213_v3  ;;  %v214_v7 = vld [vmem:[%s624_s22 + $0x18] sm:$0xff]  ;;  %v248_v8 = vmul.f32 %v618_v0, %v212_v4  ;;  %v215_v9 = vld [vmem:[%s624_s22 + $0x20] sm:$0xff]  ;;  %v217_v10 = vld [vmem:[%s624_s22 + $0x30] sm:$0xff] }
  0x10   : > { %v250_v11 = vmul.f32 %v618_v0, %v214_v7  ;;  %v251_v12 = vmul.f32 %v618_v0, %v215_v9  ;;  %v253_v13 = vmul.f32 %v618_v0, %v217_v10  ;;  %v216_v14 = vld [vmem:[%s624_s22 + $0x28] sm:$0xff]  ;;  %v218_v15 = vld [vmem:[%s624_s22 + $0x38] sm:$0xff]  ;;  %v219_v24 = vld [vmem:[%s624_s22 + $0x40] sm:$0xff] }
  0x11   : > { %v283_v16 = vadd.f32 %v629_v1, %v247_v5  ;;  %v647_v17 = vadd.f32 %v629_v1, %v249_v6  ;;  %v284_v18 = vadd.f32 %v629_v1, %v248_v8  ;;  %v252_v19 = vmul.f32 %v618_v0, %v216_v14  ;;  %v221_v25 = vld [vmem:[%s624_s22 + $0x50] sm:$0xff]  ;;  %v220_v30 = vld [vmem:[%s624_s22 + $0x48] sm:$0xff]  ;;  %v222_v35 = vld [vmem:[%s624_s22 + $0x58] sm:$0xff] }
  0x12   : > { %v652_v20 = vadd.f32 %v629_v1, %v250_v11  ;;  %v655_v21 = vadd.f32 %v629_v1, %v251_v12  ;;  %v658_v22 = vadd.f32 %v629_v1, %v253_v13  ;;  %v254_v23 = vmul.f32 %v618_v0, %v218_v15  ;;  %v223_v36 = vld [vmem:[%s624_s22 + $0x60] sm:$0xff]  ;;  %v225_v41 = vld [vmem:[%s624_s22 + $0x70] sm:$0xff]  ;;  %v224_v42 = vld [vmem:[%s624_s22 + $0x68] sm:$0xff] }
  0x13   : > { %v315_v26 = vmax.f32 %v283_v16, 0.0  ;;  %v317_v27 = vmax.f32 %v647_v17, 0.0  ;;  %v316_v28 = vmax.f32 %v284_v18, 0.0  ;;  %v670_v29 = vadd.f32 %v629_v1, %v252_v19  ;;  %v226_v51 = vld [vmem:[%s624_s22 + $0x78] sm:$0xff]  ;;  %v227_v56 = vld [vmem:[%s624_s22 + $0x80] sm:$0xff]  ;;  %v229_v61 = vld [vmem:[%s624_s22 + $0x90] sm:$0xff] }
  0x14   : > { %v318_v31 = vmax.f32 %v652_v20, 0.0  ;;  %v319_v32 = vmax.f32 %v655_v21, 0.0  ;;  %v321_v33 = vmax.f32 %v658_v22, 0.0  ;;  %v677_v34 = vadd.f32 %v629_v1, %v254_v23  ;;  %v228_v4 = vld [vmem:[%s624_s22 + $0x88] sm:$0xff]  ;;  %v230_v5 = vld [vmem:[%s624_s22 + $0x98] sm:$0xff]  ;;  %v231_v10 = vld [vmem:[%s624_s22 + $0xa0] sm:$0xff] }
  0x15   : > { %v379_v37 = vmax.f32 %v315_v26, %v317_v27  ;;  %v320_v38 = vmax.f32 %v670_v29, 0.0  ;;  %v255_v39 = vmul.f32 %v618_v0, %v219_v24  ;;  %v257_v40 = vmul.f32 %v618_v0, %v221_v25  ;;  %347 = vst [vmem:[%s666_s27] sm:$0xff] %v315_v26  ;;  %v233_v15 = vld [vmem:[%s624_s22 + $0xb0] sm:$0xff]  ;;  %v232_v20 = vld [vmem:[%s624_s22 + $0xa8] sm:$0xff]  ;;  %v242_v22 = vld [vmem:[%s624_s22 + $0xf8] sm:$0xff] }
  0x16   : > { %v380_v43 = vmax.f32 %v316_v28, %v318_v31  ;;  %v381_v44 = vmax.f32 %v319_v32, %v321_v33  ;;  %v322_v45 = vmax.f32 %v677_v34, 0.0  ;;  %v256_v46 = vmul.f32 %v618_v0, %v220_v30  ;;  %348 = vst [vmem:[%s666_s27 + $0x8] sm:$0xff] %v316_v28 }
  0x17   : > { %395 = vst [vmem:[#allocation2] sm:$0xff] %v379_v37  ;;  %v695_v47 = vadd.f32 %v629_v1, %v255_v39  ;;  %v698_v48 = vadd.f32 %v629_v1, %v257_v40  ;;  %v258_v49 = vmul.f32 %v618_v0, %v222_v35  ;;  %v259_v50 = vmul.f32 %v618_v0, %v223_v36  ;;  %v235_v36 = vld [vmem:[%s624_s22 + $0xc0] sm:$0xff]  ;;  %v237_v40 = vld [vmem:[%s624_s22 + $0xd0] sm:$0xff] }
  0x18   : > { %396 = vst [vmem:[#allocation2 + $0x8] sm:$0xff] %v380_v43  ;;  %v382_v52 = vmax.f32 %v320_v38, %v322_v45  ;;  %v708_v53 = vadd.f32 %v629_v1, %v256_v46  ;;  %v261_v54 = vmul.f32 %v618_v0, %v225_v41  ;;  %v260_v55 = vmul.f32 %v618_v0, %v224_v42  ;;  %v236_v46 = vld [vmem:[%s624_s22 + $0xc8] sm:$0xff] }
  0x19   : > { %397 = vst [vmem:[#allocation2 + $0x10] sm:$0xff] %v381_v44  ;;  %v323_v57 = vmax.f32 %v695_v47, 0.0  ;;  %v325_v58 = vmax.f32 %v698_v48, 0.0  ;;  %v716_v59 = vadd.f32 %v629_v1, %v258_v49  ;;  %v719_v60 = vadd.f32 %v629_v1, %v259_v50  ;;  %v238_v49 = vld [vmem:[%s624_s22 + $0xd8] sm:$0xff] }
  0x1a   : > { %398 = vst [vmem:[#allocation2 + $0x18] sm:$0xff] %v382_v52  ;;  %v324_v62 = vmax.f32 %v708_v53, 0.0  ;;  %v724_v63 = vadd.f32 %v629_v1, %v261_v54  ;;  %v262_v2 = vmul.f32 %v618_v0, %v226_v51  ;;  %v728_v3 = vadd.f32 %v629_v1, %v260_v55  ;;  %v239_v55 = vld [vmem:[%s624_s22 + $0xe0] sm:$0xff] }
  0x1b   : > { %v383_v6 = vmax.f32 %v323_v57, %v325_v58  ;;  %v326_v7 = vmax.f32 %v716_v59, 0.0  ;;  %v327_v8 = vmax.f32 %v719_v60, 0.0  ;;  %v263_v9 = vmul.f32 %v618_v0, %v227_v56  ;;  %349 = vst [vmem:[%s666_s27 + $0x10] sm:$0xff] %v317_v27  ;;  %v234_v27 = vld [vmem:[%s624_s22 + $0xb8] sm:$0xff] }
  0x1c   : > { %v329_v11 = vmax.f32 %v724_v63, 0.0  ;;  %v743_v12 = vadd.f32 %v629_v1, %v262_v2  ;;  %v328_v13 = vmax.f32 %v728_v3, 0.0  ;;  %v265_v14 = vmul.f32 %v618_v0, %v229_v61  ;;  %350 = vst [vmem:[%s666_s27 + $0x18] sm:$0xff] %v318_v31  ;;  %v241_v2 = vld [vmem:[%s624_s22 + $0xf0] sm:$0xff] }
  0x1d   : > { %399 = vst [vmem:[#allocation2 + $0x20] sm:$0xff] %v383_v6  ;;  %v384_v16 = vmax.f32 %v324_v62, %v326_v7  ;;  %v754_v17 = vadd.f32 %v629_v1, %v263_v9  ;;  %v264_v18 = vmul.f32 %v618_v0, %v228_v4  ;;  %v266_v19 = vmul.f32 %v618_v0, %v230_v5 }
  0x1e   : > { %v385_v23 = vmax.f32 %v327_v8, %v329_v11  ;;  %v330_v24 = vmax.f32 %v743_v12, 0.0  ;;  %v765_v25 = vadd.f32 %v629_v1, %v265_v14  ;;  %v267_v26 = vmul.f32 %v618_v0, %v231_v10  ;;  %351 = vst [vmem:[%s666_s27 + $0x20] sm:$0xff] %v319_v32  ;;  %v240_v10 = vld [vmem:[%s624_s22 + $0xe8] sm:$0xff] }
  0x1f   : > { %400 = vst [vmem:[#allocation2 + $0x28] sm:$0xff] %v384_v16  ;;  %v331_v28 = vmax.f32 %v754_v17, 0.0  ;;  %v774_v30 = vadd.f32 %v629_v1, %v264_v18  ;;  %v777_v31 = vadd.f32 %v629_v1, %v266_v19  ;;  %v269_v35 = vmul.f32 %v618_v0, %v233_v15  ;;  %v411_v48 = vld [vmem:[#allocation2] ss:$2 sm:$0xff]  ;;  %v427_v53 = vld [vmem:[#allocation2 + $0x1] ss:$2 sm:$0xff] }
  0x20   : > { %401 = vst [vmem:[#allocation2 + $0x30] sm:$0xff] %v385_v23  ;;  %v386_v21 = vmax.f32 %v328_v13, %v330_v24  ;;  %v333_v32 = vmax.f32 %v765_v25, 0.0  ;;  %v787_v37 = vadd.f32 %v629_v1, %v267_v26  ;;  %v268_v39 = vmul.f32 %v618_v0, %v232_v20 }
  0x21   : > { %v332_v41 = vmax.f32 %v774_v30, 0.0  ;;  %v334_v42 = vmax.f32 %v777_v31, 0.0  ;;  %v794_v43 = vadd.f32 %v629_v1, %v269_v35  ;;  %v270_v44 = vmul.f32 %v618_v0, %v234_v27  ;;  %352 = vst [vmem:[%s666_s27 + $0x28] sm:$0xff] %v320_v38  ;;  %v429_v59 = vld [vmem:[#allocation2 + $0x11] ss:$2 sm:$0xff] }
  0x22   : > { %402 = vst [vmem:[#allocation2 + $0x38] sm:$0xff] %v386_v21  ;;  %v387_v50 = vmax.f32 %v331_v28, %v333_v32  ;;  %v335_v51 = vmax.f32 %v787_v37, 0.0  ;;  %v808_v52 = vadd.f32 %v629_v1, %v268_v39  ;;  %v271_v54 = vmul.f32 %v618_v0, %v235_v36 }
  0x23   : > { %v388_v29 = vmax.f32 %v332_v41, %v334_v42  ;;  %v337_v38 = vmax.f32 %v794_v43, 0.0  ;;  %v306_v56 = vadd.f32 %v629_v1, %v270_v44  ;;  %v273_v61 = vmul.f32 %v618_v0, %v237_v40  ;;  %353 = vst [vmem:[%s666_s27 + $0x30] sm:$0xff] %v321_v33 }
  0x24   : > { %403 = vst [vmem:[#allocation2 + $0x40] sm:$0xff] %v387_v50  ;;  %v336_v4 = vmax.f32 %v808_v52, 0.0  ;;  %v307_v5 = vadd.f32 %v629_v1, %v271_v54  ;;  %v272_v6 = vmul.f32 %v618_v0, %v236_v46  ;;  %v274_v9 = vmul.f32 %v618_v0, %v238_v49 }
  0x25   : > { %404 = vst [vmem:[#allocation2 + $0x48] sm:$0xff] %v388_v29  ;;  %v389_v14 = vmax.f32 %v335_v51, %v337_v38  ;;  %v338_v15 = vmax.f32 %v306_v56, 0.0  ;;  %v309_v16 = vadd.f32 %v629_v1, %v273_v61  ;;  %v275_v18 = vmul.f32 %v618_v0, %v239_v55 }
  0x26   : > { %v339_v33 = vmax.f32 %v307_v5, 0.0  ;;  %v308_v19 = vadd.f32 %v629_v1, %v272_v6  ;;  %v310_v20 = vadd.f32 %v629_v1, %v274_v9  ;;  %v277_v23 = vmul.f32 %v618_v0, %v241_v2  ;;  %354 = vst [vmem:[%s666_s27 + $0x38] sm:$0xff] %v322_v45  ;;  %v415_v60 = vld [vmem:[#allocation2 + $0x20] ss:$2 sm:$0xff] }
  0x27   : > { %405 = vst [vmem:[#allocation2 + $0x50] sm:$0xff] %v389_v14  ;;  %v390_v26 = vmax.f32 %v336_v4, %v338_v15  ;;  %v341_v27 = vmax.f32 %v309_v16, 0.0  ;;  %v311_v35 = vadd.f32 %v629_v1, %v275_v18  ;;  %v276_v36 = vmul.f32 %v618_v0, %v240_v10 }
  0x28   : > { %v340_v21 = vmax.f32 %v308_v19, 0.0  ;;  %v342_v37 = vmax.f32 %v310_v20, 0.0  ;;  %v313_v39 = vadd.f32 %v629_v1, %v277_v23  ;;  %v278_v40 = vmul.f32 %v618_v0, %v242_v22  ;;  %355 = vst [vmem:[%s666_s27 + $0x40] sm:$0xff] %v323_v57 }
  0x29   : > { %406 = vst [vmem:[#allocation2 + $0x58] sm:$0xff] %v390_v26  ;;  %v391_v34 = vmax.f32 %v339_v33, %v341_v27  ;;  %v343_v45 = vmax.f32 %v311_v35, 0.0  ;;  %v312_v43 = vadd.f32 %v629_v1, %v276_v36  ;;  %v442_v63 = vmax.f32 %v411_v48, %v427_v53  ;;  %v417_v3 = vld [vmem:[#allocation2 + $0x30] ss:$2 sm:$0xff] }
  0x2a   : > { %v392_v44 = vmax.f32 %v340_v21, %v342_v37  ;;  %v345_v46 = vmax.f32 %v313_v39, 0.0  ;;  %v314_v49 = vadd.f32 %v629_v1, %v278_v40  ;;  %356 = vst [vmem:[%s666_s27 + $0x48] sm:$0xff] %v324_v62  ;;  %v431_v62 = vld [vmem:[#allocation2 + $0x21] ss:$2 sm:$0xff] }
  0x2b   : > { %407 = vst [vmem:[#allocation2 + $0x60] sm:$0xff] %v391_v34  ;;  %v344_v0 = vmax.f32 %v312_v43, 0.0 }
  0x2c   : > { %408 = vst [vmem:[#allocation2 + $0x68] sm:$0xff] %v392_v44  ;;  %v393_v47 = vmax.f32 %v343_v45, %v345_v46  ;;  %v346_v57 = vmax.f32 %v314_v49, 0.0  ;;  %v435_v12 = vld [vmem:[#allocation2 + $0x41] ss:$2 sm:$0xff] }
  0x2d   : > { %357 = vst [vmem:[%s666_s27 + $0x50] sm:$0xff] %v325_v58  ;;  %v413_v58 = vld [vmem:[#allocation2 + $0x10] ss:$2 sm:$0xff] }
  0x2e   : > { %409 = vst [vmem:[#allocation2 + $0x70] sm:$0xff] %v393_v47  ;;  %v394_v1 = vmax.f32 %v344_v0, %v346_v57 }
  0x2f   : > { %358 = vst [vmem:[%s666_s27 + $0x58] sm:$0xff] %v326_v7  ;;  %v433_v7 = vld [vmem:[#allocation2 + $0x31] ss:$2 sm:$0xff] }
  0x30   : > { %410 = vst [vmem:[#allocation2 + $0x78] sm:$0xff] %v394_v1  ;;  %v421_v17 = vld [vmem:[#allocation2 + $0x50] ss:$2 sm:$0xff]  ;;  %v445_v25 = vmax.f32 %v417_v3, %v433_v7 }
  0x31   : > { %359 = vst [vmem:[%s666_s27 + $0x60] sm:$0xff] %v327_v8  ;;  %v443_v8 = vmax.f32 %v413_v58, %v429_v59 }
  0x32   : > { %360 = vst [vmem:[%s666_s27 + $0x68] sm:$0xff] %v328_v13  ;;  %v444_v13 = vmax.f32 %v415_v60, %v431_v62 }
  0x33   : > { %361 = vst [vmem:[%s666_s27 + $0x70] sm:$0xff] %v329_v11  ;;  %v419_v11 = vld [vmem:[#allocation2 + $0x40] ss:$2 sm:$0xff]  ;;  %v439_v30 = vld [vmem:[#allocation2 + $0x61] ss:$2 sm:$0xff] }
  0x34   : > { %362 = vst [vmem:[%s666_s27 + $0x78] sm:$0xff] %v330_v24  ;;  %v437_v24 = vld [vmem:[#allocation2 + $0x51] ss:$2 sm:$0xff]  ;;  %v446_v31 = vmax.f32 %v419_v11, %v435_v12 }
  0x35   : > { %363 = vst [vmem:[%s666_s27 + $0x80] sm:$0xff] %v331_v28  ;;  %v423_v28 = vld [vmem:[#allocation2 + $0x60] ss:$2 sm:$0xff] }
  0x36   : > { %364 = vst [vmem:[%s666_s27 + $0x88] sm:$0xff] %v332_v41  ;;  %v448_v50 = vmax.f32 %v423_v28, %v439_v30 }
  0x37   : > { %365 = vst [vmem:[%s666_s27 + $0x90] sm:$0xff] %v333_v32  ;;  %v425_v32 = vld [vmem:[#allocation2 + $0x70] ss:$2 sm:$0xff]  ;;  %v441_v41 = vld [vmem:[#allocation2 + $0x71] ss:$2 sm:$0xff] }
  0x38   : > { %366 = vst [vmem:[%s666_s27 + $0x98] sm:$0xff] %v334_v42  ;;  %v447_v42 = vmax.f32 %v421_v17, %v437_v24 }
  0x39   : > { %367 = vst [vmem:[%s666_s27 + $0xa0] sm:$0xff] %v335_v51  ;;  %v449_v51 = vmax.f32 %v425_v32, %v441_v41 }
  0x3a   : > { %368 = vst [vmem:[%s666_s27 + $0xa8] sm:$0xff] %v336_v4 }
  0x3b   : > { %369 = vst [vmem:[%s666_s27 + $0xb0] sm:$0xff] %v337_v38 }
  0x3c   : > { %370 = vst [vmem:[%s666_s27 + $0xb8] sm:$0xff] %v338_v15 }
  0x3d   : > { %371 = vst [vmem:[%s666_s27 + $0xc0] sm:$0xff] %v339_v33 }
  0x3e   : > { %372 = vst [vmem:[%s666_s27 + $0xc8] sm:$0xff] %v340_v21 }
  0x3f   : > { %373 = vst [vmem:[%s666_s27 + $0xd0] sm:$0xff] %v341_v27 }
  0x40   : > { %374 = vst [vmem:[%s666_s27 + $0xd8] sm:$0xff] %v342_v37 }
  0x41   : > { %375 = vst [vmem:[%s666_s27 + $0xe0] sm:$0xff] %v343_v45 }
  0x42   : > { %376 = vst [vmem:[%s666_s27 + $0xe8] sm:$0xff] %v344_v0 }
  0x43   : > { %377 = vst [vmem:[%s666_s27 + $0xf0] sm:$0xff] %v345_v46 }
  0x44   : > { %378 = vst [vmem:[%s666_s27 + $0xf8] sm:$0xff] %v346_v57 }
  0x45   : > { %450 = vst [vmem:[%s210_s5] sm:$0xff] %v442_v63 }
  0x46   : > { %451 = vst [vmem:[%s210_s5 + $0x8] sm:$0xff] %v443_v8 }
  0x47   : > { %452 = vst [vmem:[%s210_s5 + $0x10] sm:$0xff] %v444_v13 }
  0x48   : > { %453 = vst [vmem:[%s210_s5 + $0x18] sm:$0xff] %v445_v25 }
  0x49   : > { %454 = vst [vmem:[%s210_s5 + $0x20] sm:$0xff] %v446_v31 }
  0x4a   : > { %455 = vst [vmem:[%s210_s5 + $0x28] sm:$0xff] %v447_v42 }
  0x4b   : > { %456 = vst [vmem:[%s210_s5 + $0x30] sm:$0xff] %v448_v50 }
  0x4c   : > { %457 = vst [vmem:[%s210_s5 + $0x38] sm:$0xff] %v449_v51 }
  0x4d PF: > { %s15_s15 = sadd.s32 1, %s578_s15  }
  0x4e   : > { %p12_p4 = scmp.ge.s32.totalorder %s15_s15, 4  }
  0x50   :  { %14 = sbr.rel (!%p12_p4) target bundleno = 1 (0x1), region = 89 }

// kernel: encoder_block_forward.3
= control target key start
LH: loop header
LB: loop body
LE: loop exit
PB: predicated region body
PF: predicated region fallthrough
CT: control target
= control target key end

     0   :  { %s2805_s12 = smov 0   ;;  %s3681_s0 = inlined_call_operand.vmem [shape: f32[2,16,16,128], index: 0, kind: input, shape index: {}]   ;;  %s3682_s1 = inlined_call_operand.vmem [shape: bf16[1152,128], index: 1, kind: input, shape index: {}]   ;;  %s3683_s2 = inlined_call_operand.vmem [shape: f32[2,16,16,128], index: 2, kind: output, shape index: {0}]   ;;  %s3684_s3 = inlined_call_operand.vmem [shape: f32[2,2,128], index: 3, kind: output, shape index: {1}]  }
   0x1 LB: > { %s2367_s13 = sadd.s32 4294967295, %s2781_s12   ;;  %p2371_p0 = scmp.ge.s32.totalorder %s2781_s12, 1  ;;  %s2781_s12 = sphi %s2805_s12, %s14_s12  }
   0x2   : > { %p140_p1 = scmp.lt.s32.totalorder %s2781_s12, 3 }
   0x4   : > { %p141_p2 = pnand %p2371_p0, %p140_p1 }
   0x6   : > { %144 = sbr.rel (%p141_p2) target bundleno = 785 (0x311), region = 28 }
   0xb   : > { %v2676_v0 = vld [vmem:[%s3682_s1 + $0x38] sm:$0xff]  ;;  %p168_p3 = scmp.lt.s32.totalorder %s2367_s13, 1  ;;  %v2783_v1 = vmov 0.0   ;;  %v2675_v2 = vld [vmem:[%s3682_s1 + $0x30] sm:$0xff]  ;;  %v2674_v3 = vld [vmem:[%s3682_s1 + $0x28] sm:$0xff]  ;;  %v3685_v27 = vmov 0  }
   0xc   : > { %218 = vst [vmem:[#allocation2 + $0x48] sm:$0x1] %v2783_v1  ;;  %2741 = vmatpush.bf16.msra.mxu1 %v2676_v0  ;;  %2742 = vmatpush.bf16.msra.mxu2 %v2676_v0  ;;  %v2673_v6 = vld [vmem:[%s3682_s1 + $0x20] sm:$0xff]  ;;  %v2672_v7 = vld [vmem:[%s3682_s1 + $0x18] sm:$0xff]  ;;  %v2671_v8 = vld [vmem:[%s3682_s1 + $0x10] sm:$0xff]  ;;  %vm2278_vm0 = vcmask 1040384  }
   0xd   : > { %s3779_s13 = smov (!%p168_p3, %s2367_s13), 1  ;;  %215 = vst [vmem:[#allocation2] sm:$0x1] %v2783_v1  ;;  %2743 = vmatpush.bf16.msra.mxu3 %v2676_v0  ;;  %1339 = vmatpush.bf16.msra.mxu0 %v2676_v0  ;;  %v2670_v13 = vld [vmem:[%s3682_s1 + $0x8] sm:$0xff]  ;;  %v2669_v16 = vld [vmem:[%s3682_s1] sm:$0xff]  ;;  %v2692_v17 = vld [vmem:[%s3682_s1 + $0xb8] sm:$0xff] }
   0xe   : > { %216 = vst [vmem:[#allocation2 + $0x18] sm:$0x1] %v2783_v1  ;;  %s2667_s18 = sshll.u32 %s3779_s13, 8  ;;  %v2700_v18 = vld [vmem:[%s3682_s1 + $0xf8] sm:$0xff]  ;;  %v2691_v23 = vld [vmem:[%s3682_s1 + $0xb0] sm:$0xff]  ;;  %v2690_v31 = vld [vmem:[%s3682_s1 + $0xa8] sm:$0xff] }
   0xf   : > { %217 = vst [vmem:[#allocation2 + $0x30] sm:$0x1] %v2783_v1  ;;  %s2831_s21 = scalar_lea.vmem %s3681_s0, %s2667_s18  ;;  %v2708_v20 = vld [vmem:[%s3682_s1 + $0x138] sm:$0xff]  ;;  %v2699_v24 = vld [vmem:[%s3682_s1 + $0xf0] sm:$0xff]  ;;  %v2698_v32 = vld [vmem:[%s3682_s1 + $0xe8] sm:$0xff]  ;;  %s3586_s25 = scalar_lea.vmem %s3683_s2, %s2667_s18 }
  0x10   : > { %219 = vst [vmem:[#allocation2 + $0x60] sm:$0x1] %v2783_v1  ;;  %2744 = vmatpush.bf16.msra.mxu1 %v2675_v2  ;;  %2745 = vmatpush.bf16.msra.mxu2 %v2675_v2  ;;  %v2838_v4 = vld [vmem:[%s2831_s21 + $0x30] sm:$0xff]  ;;  %v2841_v5 = vld [vmem:[%s2831_s21 + $0x38] sm:$0xff]  ;;  %v2917_v30 = vld [vmem:[%s2831_s21 + $0x40] sm:$0xff]  ;;  %s2376_s18 = sshll.u32 %s3779_s13, 1 }
  0x11   : > { %220 = vst [vmem:[#allocation2 + $0x78] sm:$0x1] %v2783_v1  ;;  %2746 = vmatpush.bf16.msra.mxu3 %v2675_v2  ;;  %1340 = vmatpush.bf16.msra.mxu0 %v2675_v2  ;;  %v2684_v21 = vld [vmem:[%s3682_s1 + $0x78] sm:$0xff]  ;;  %v197_v22 = vld [vmem:[%s2831_s21 + $0x70] sm:$0xff]  ;;  %v2929_v34 = vld [vmem:[%s2831_s21 + $0x48] sm:$0xff]  ;;  %s181_s28 = scalar_lea.vmem %s3684_s3, %s2376_s18 }
  0x12   : > { %253 = vst [vmem:[#allocation2 + $0x49] sm:$0xff] %v2838_v4  ;;  %v198_v25 = vld [vmem:[%s2831_s21 + $0x78] sm:$0xff]  ;;  %v205_v26 = vld [vmem:[%s2831_s21 + $0xb0] sm:$0xff]  ;;  %v2932_v35 = vld [vmem:[%s2831_s21 + $0x80] sm:$0xff] }
  0x13   : > { %254 = vst [vmem:[#allocation2 + $0x51] sm:$0xff] %v2841_v5  ;;  %v2683_v28 = vld [vmem:[%s3682_s1 + $0x70] sm:$0xff]  ;;  %v206_v29 = vld [vmem:[%s2831_s21 + $0xb8] sm:$0xff]  ;;  %v2682_v36 = vld [vmem:[%s3682_s1 + $0x68] sm:$0xff] }
  0x14   : > { %221 = vst [vmem:[#allocation2 + $0x90] sm:$0x1] %v2783_v1  ;;  %2747 = vmatpush.bf16.msra.mxu1 %v2674_v3  ;;  %2748 = vmatpush.bf16.msra.mxu2 %v2674_v3  ;;  %v2707_v33 = vld [vmem:[%s3682_s1 + $0x130] sm:$0xff]  ;;  %v2706_v37 = vld [vmem:[%s3682_s1 + $0x128] sm:$0xff]  ;;  %v207_v39 = vld [vmem:[%s2831_s21 + $0xc0] sm:$0xff] }
  0x15   : > { %222 = vst [vmem:[#allocation2 + $0xa8] sm:$0x1] %v2783_v1  ;;  %2749 = vmatpush.bf16.msra.mxu3 %v2674_v3  ;;  %1341 = vmatpush.bf16.msra.mxu0 %v2674_v3  ;;  %v2942_v38 = vld [vmem:[%s2831_s21 + $0x88] sm:$0xff]  ;;  %v2689_v40 = vld [vmem:[%s3682_s1 + $0xa0] sm:$0xff]  ;;  %v2965_v51 = vld [vmem:[%s2831_s21 + $0x50] sm:$0xff] }
  0x16   : > { %223 = vst [vmem:[#allocation2 + $0xc0] sm:$0x1] %v2783_v1  ;;  %v2697_v41 = vld [vmem:[%s3682_s1 + $0xe0] sm:$0xff]  ;;  %v208_v42 = vld [vmem:[%s2831_s21 + $0xc8] sm:$0xff]  ;;  %v2969_v55 = vld [vmem:[%s2831_s21 + $0x58] sm:$0xff] }
  0x17   : > { %224 = vst [vmem:[#allocation2 + $0xd8] sm:$0x1] %v2783_v1  ;;  %v2956_v44 = vld [vmem:[%s2831_s21] sm:$0xff]  ;;  %v2962_v48 = vld [vmem:[%s2831_s21 + $0x8] sm:$0xff]  ;;  %v2973_v59 = vld [vmem:[%s2831_s21 + $0x90] sm:$0xff] }
  0x18   : > { %225 = vst [vmem:[#allocation2 + $0xf0] sm:$0x1] %v2783_v1  ;;  %2750 = vmatpush.bf16.msra.mxu1 %v2673_v6  ;;  %2751 = vmatpush.bf16.msra.mxu2 %v2673_v6  ;;  %v2681_v45 = vld [vmem:[%s3682_s1 + $0x60] sm:$0xff]  ;;  %v2977_v63 = vld [vmem:[%s2831_s21 + $0x98] sm:$0xff]  ;;  %v209_v3 = vld [vmem:[%s2831_s21 + $0xd0] sm:$0xff] }
  0x19   : > { %226 = vst [vmem:[#allocation2 + $0x108] sm:$0x1] %v2783_v1  ;;  %2752 = vmatpush.bf16.msra.mxu3 %v2673_v6  ;;  %1342 = vmatpush.bf16.msra.mxu0 %v2673_v6  ;;  %v429_v9 = vld [vmem:[#allocation2 + $0x48] sm:$0xff] }
  0x1a   : > { %227 = vst [vmem:[#allocation2 + $0x120] sm:$0x1] %v2783_v1  ;;  %v430_v10 = vld [vmem:[#allocation2 + $0x50] sm:$0xff]  ;;  %v461_v11 = vpack.c.bf16 %v429_v9, %v429_v9 }
  0x1b   : > { %228 = vst [vmem:[#allocation2 + $0x138] sm:$0x1] %v2783_v1  ;;  %v462_v12 = vpack.c.bf16 %v430_v10, %v430_v10 }
  0x1c   : > { %229 = vst [vmem:[#allocation2 + $0x150] sm:$0x1] %v2783_v1  ;;  %2753 = vmatpush.bf16.msra.mxu1 %v2672_v7  ;;  %2754 = vmatpush.bf16.msra.mxu2 %v2672_v7  ;;  %v651_v14 = vunpack.c.l.b16 %v461_v11  ;;  %v2990_v11 = vld [vmem:[%s2831_s21 + $0x10] sm:$0xff] }
  0x1d   : > { %230 = vst [vmem:[#allocation2 + $0x168] sm:$0x1] %v2783_v1  ;;  %2755 = vmatpush.bf16.msra.mxu3 %v2672_v7  ;;  %1343 = vmatpush.bf16.msra.mxu0 %v2672_v7  ;;  %v652_v15 = vunpack.c.l.b16 %v462_v12  ;;  %v210_v7 = vld [vmem:[%s2831_s21 + $0xd8] sm:$0xff] }
  0x1e   : > { %231 = vst [vmem:[#allocation2 + $0x11] sm:$0x1] %v2783_v1  ;;  %v2993_v12 = vld [vmem:[%s2831_s21 + $0x18] sm:$0xff] }
  0x1f   : > { %232 = vst [vmem:[#allocation2 + $0x29] sm:$0x1] %v2783_v1  ;;  %v2887_v19 = vpack.c.b16 %v652_v15, %v651_v14 }
  0x20   : > { %233 = vst [vmem:[#allocation2 + $0x41] sm:$0x1] %v2783_v1  ;;  %2756 = vmatpush.bf16.msra.mxu1 %v2671_v8  ;;  %2757 = vmatpush.bf16.msra.mxu2 %v2671_v8 }
  0x21   : > { %234 = vst [vmem:[#allocation2 + $0x59] sm:$0x1] %v2783_v1  ;;  %2758 = vmatpush.bf16.msra.mxu3 %v2671_v8  ;;  %1344 = vmatpush.bf16.msra.mxu0 %v2671_v8 }
  0x22   : > { %235 = vst [vmem:[#allocation2 + $0x71] sm:$0x1] %v2783_v1 }
  0x23   : > { %236 = vst [vmem:[#allocation2 + $0x89] sm:$0x1] %v2783_v1 }
  0x24   : > { %237 = vst [vmem:[#allocation2 + $0xa1] sm:$0x1] %v2783_v1  ;;  %2759 = vmatpush.bf16.msra.mxu1 %v2670_v13  ;;  %2760 = vmatpush.bf16.msra.mxu2 %v2670_v13 }
  0x25   : > { %238 = vst [vmem:[#allocation2 + $0xb9] sm:$0x1] %v2783_v1  ;;  %2761 = vmatpush.bf16.msra.mxu3 %v2670_v13  ;;  %1345 = vmatpush.bf16.msra.mxu0 %v2670_v13 }
  0x26   : > { %239 = vst [vmem:[#allocation2 + $0xd1] sm:$0x1] %v2783_v1 }
  0x27   : > { %240 = vst [vmem:[#allocation2 + $0xe9] sm:$0x1] %v2783_v1 }
  0x28   : > { %241 = vst [vmem:[#allocation2 + $0x101] sm:$0x1] %v2783_v1  ;;  %2762 = vmatpush.bf16.msra.mxu1 %v2669_v16  ;;  %2763 = vmatpush.bf16.msra.mxu2 %v2669_v16 }
  0x29   : > { %242 = vst [vmem:[#allocation2 + $0x119] sm:$0x1] %v2783_v1  ;;  %2764 = vmatpush.bf16.msra.mxu3 %v2669_v16  ;;  %1346 = vmatpush.bf16.msra.mxu0 %v2669_v16 }
  0x2a   : > { %243 = vst [vmem:[#allocation2 + $0x131] sm:$0x1] %v2783_v1 }
  0x2b   : > { %244 = vst [vmem:[#allocation2 + $0x149] sm:$0x1] %v2783_v1  ;;  %1367 = vmatmul.bf16.vlgmr.msra.gmra.mxu1 %v2887_v19 }
  0x2c   : > { %1517 = vmatpush.bf16.msrb.mxu2 %v2692_v17  ;;  %245 = vst [vmem:[#allocation2 + $0x161] sm:$0x1] %v2783_v1  ;;  %1347 = vmatmul.bf16.vlgmr.msra.gmra.mxu0 %v3685_v27 }
  0x2d   : > { %1606 = vmatpush.bf16.msrb.mxu3 %v2700_v18  ;;  %1695 = vmatpush.bf16.msrb.mxu0 %v2708_v20  ;;  %246 = vst [vmem:[#allocation2 + $0x179] sm:$0x1] %v2783_v1  ;;  %v2688_v18 = vld [vmem:[%s3682_s1 + $0x98] sm:$0xff] }
  0x2e   : > { %1428 = vmatpush.bf16.msrb.mxu1 %v2684_v21  ;;  %261 = vst [vmem:[#allocation2 + $0xa9] sm:$0xff] %v197_v22  ;;  %v2696_v20 = vld [vmem:[%s3682_s1 + $0xd8] sm:$0xff] }
  0x2f   : > { %262 = vst [vmem:[#allocation2 + $0xb1] sm:$0xff] %v198_v25  ;;  %v2680_v25 = vld [vmem:[%s3682_s1 + $0x58] sm:$0xff] }
  0x30   : > { %1518 = vmatpush.bf16.msrb.mxu2 %v2691_v23  ;;  %269 = vst [vmem:[#allocation2 + $0x109] sm:$0xff] %v205_v26 }
  0x31   : > { %1607 = vmatpush.bf16.msrb.mxu3 %v2699_v24  ;;  %270 = vst [vmem:[#allocation2 + $0x111] sm:$0xff] %v206_v29  ;;  %1696 = vmatpush.bf16.msrb.mxu0 %v2707_v33  ;;  %v2705_v24 = vld [vmem:[%s3682_s1 + $0x120] sm:$0xff] }
  0x32   : > { %1429 = vmatpush.bf16.msrb.mxu1 %v2683_v28  ;;  %255 = vst [vmem:[#allocation2 + $0x61] sm:$0xff] %v2917_v30 }
  0x33   : > { %256 = vst [vmem:[#allocation2 + $0x69] sm:$0xff] %v2929_v34 }
  0x34   : > { %1519 = vmatpush.bf16.msrb.mxu2 %v2690_v31  ;;  %263 = vst [vmem:[#allocation2 + $0xc1] sm:$0xff] %v2932_v35  ;;  %v2687_v31 = vld [vmem:[%s3682_s1 + $0x90] sm:$0xff] }
  0x35   : > { %1608 = vmatpush.bf16.msrb.mxu3 %v2698_v32  ;;  %v437_v43 = vld [vmem:[#allocation2 + $0xa8] sm:$0xff]  ;;  %264 = vst [vmem:[#allocation2 + $0xc9] sm:$0xff] %v2942_v38  ;;  %1697 = vmatpush.bf16.msrb.mxu0 %v2706_v37  ;;  %v2704_v37 = vld [vmem:[%s3682_s1 + $0x118] sm:$0xff] }
  0x36   : > { %1430 = vmatpush.bf16.msrb.mxu1 %v2682_v36  ;;  %v438_v46 = vld [vmem:[#allocation2 + $0xb0] sm:$0xff]  ;;  %v469_v47 = vpack.c.bf16 %v437_v43, %v437_v43  ;;  %271 = vst [vmem:[#allocation2 + $0x121] sm:$0xff] %v207_v39  ;;  %v3026_v43 = vld [vmem:[%s2831_s21 + $0x60] sm:$0xff] }
  0x37   : > { %v470_v49 = vpack.c.bf16 %v438_v46, %v438_v46  ;;  %v445_v50 = vld [vmem:[#allocation2 + $0x108] sm:$0xff]  ;;  %272 = vst [vmem:[#allocation2 + $0x129] sm:$0xff] %v208_v42  ;;  %v2695_v36 = vld [vmem:[%s3682_s1 + $0xd0] sm:$0xff] }
  0x38   : > { %1520 = vmatpush.bf16.msrb.mxu2 %v2689_v40  ;;  %v659_v52 = vunpack.c.l.b16 %v469_v47  ;;  %v446_v53 = vld [vmem:[#allocation2 + $0x110] sm:$0xff]  ;;  %v477_v54 = vpack.c.bf16 %v445_v50, %v445_v50  ;;  %247 = vst [vmem:[#allocation2 + $0x1] sm:$0xff] %v2956_v44  ;;  %v3033_v47 = vld [vmem:[%s2831_s21 + $0xa0] sm:$0xff] }
  0x39   : > { %1609 = vmatpush.bf16.msrb.mxu3 %v2697_v41  ;;  %v660_v56 = vunpack.c.l.b16 %v470_v49  ;;  %v478_v57 = vpack.c.bf16 %v446_v53, %v446_v53  ;;  %v431_v58 = vld [vmem:[#allocation2 + $0x60] sm:$0xff]  ;;  %248 = vst [vmem:[#allocation2 + $0x9] sm:$0xff] %v2962_v48  ;;  %1698 = vmatpush.bf16.msrb.mxu0 %v2705_v24  ;;  %v2679_v42 = vld [vmem:[%s3682_s1 + $0x50] sm:$0xff]  ;;  %v3036_v49 = vld [vmem:[%s2831_s21 + $0xa8] sm:$0xff] }
  0x3a   : > { %1431 = vmatpush.bf16.msrb.mxu1 %v2681_v45  ;;  %v667_v60 = vunpack.c.l.b16 %v477_v54  ;;  %v432_v61 = vld [vmem:[#allocation2 + $0x68] sm:$0xff]  ;;  %v463_v62 = vpack.c.bf16 %v431_v58, %v431_v58  ;;  %257 = vst [vmem:[#allocation2 + $0x79] sm:$0xff] %v2965_v51 }
  0x3b   : > { %v2979_v0 = vpack.c.b16 %v660_v56, %v659_v52  ;;  %v668_v1 = vunpack.c.l.b16 %v478_v57  ;;  %v464_v2 = vpack.c.bf16 %v432_v61, %v432_v61  ;;  %258 = vst [vmem:[#allocation2 + $0x81] sm:$0xff] %v2969_v55  ;;  %v439_v10 = vld [vmem:[#allocation2 + $0xc0] sm:$0xff]  ;;  %v3029_v45 = vld [vmem:[%s2831_s21 + $0x68] sm:$0xff] }
  0x3c   : > { %v653_v6 = vunpack.c.l.b16 %v463_v62  ;;  %265 = vst [vmem:[#allocation2 + $0xd9] sm:$0xff] %v2973_v59  ;;  %v440_v13 = vld [vmem:[#allocation2 + $0xc8] sm:$0xff]  ;;  %v471_v21 = vpack.c.bf16 %v439_v10, %v439_v10  ;;  %1521 = vmatpush.bf16.msrb.mxu2 %v2688_v18  ;;  %v211_v56 = vld [vmem:[%s2831_s21 + $0xe0] sm:$0xff] }
  0x3d   : > { %3705 = vst [vmem:[#allocation3_spill] sm:$0xff] %v2979_v0  ;;  %1387 = vmatmul.bf16.vlgmr.msra.gmra.mxu2 %v2979_v0  ;;  %v2986_v8 = vpack.c.b16 %v668_v1, %v667_v60  ;;  %v654_v9 = vunpack.c.l.b16 %v464_v2  ;;  %v447_v14 = vld [vmem:[#allocation2 + $0x120] sm:$0xff]  ;;  %v472_v26 = vpack.c.bf16 %v440_v13, %v440_v13  ;;  %1610 = vmatpush.bf16.msrb.mxu3 %v2696_v20  ;;  %v212_v57 = vld [vmem:[%s2831_s21 + $0xe8] sm:$0xff] }
  0x3e   : > { %266 = vst [vmem:[#allocation2 + $0xe1] sm:$0xff] %v2977_v63  ;;  %v448_v15 = vld [vmem:[#allocation2 + $0x128] sm:$0xff]  ;;  %v479_v39 = vpack.c.bf16 %v447_v14, %v447_v14  ;;  %1432 = vmatpush.bf16.msrb.mxu1 %v2680_v25  ;;  %v661_v46 = vunpack.c.l.b16 %v471_v21  ;;  %1699 = vmatpush.bf16.msrb.mxu0 %v2704_v37  ;;  %v3047_v61 = vld [vmem:[%s2831_s21 + $0x20] sm:$0xff]  ;;  %v2703_v25 = vld [vmem:[%s3682_s1 + $0x110] sm:$0xff] }
  0x3f   : > { %3706 = vst [vmem:[#allocation4_spill] sm:$0xff] %v2986_v8  ;;  %1407 = vmatmul.bf16.vlgmr.msra.gmra.mxu3 %v2986_v8  ;;  %v2996_v16 = vpack.c.b16 %v654_v9, %v653_v6  ;;  %v423_v17 = vld [vmem:[#allocation2] sm:$0xff]  ;;  %v480_v40 = vpack.c.bf16 %v448_v15, %v448_v15  ;;  %v662_v50 = vunpack.c.l.b16 %v472_v26  ;;  %v3050_v2 = vld [vmem:[%s2831_s21 + $0x28] sm:$0xff] }
  0x40   : > { %273 = vst [vmem:[#allocation2 + $0x139] sm:$0xff] %v209_v3  ;;  %v424_v22 = vld [vmem:[#allocation2 + $0x8] sm:$0xff]  ;;  %v455_v23 = vpack.c.bf16 %v423_v17, %v423_v17  ;;  %1522 = vmatpush.bf16.msrb.mxu2 %v2687_v31  ;;  %v669_v58 = vunpack.c.l.b16 %v479_v39 }
  0x41   : > { %274 = vst [vmem:[#allocation2 + $0x141] sm:$0xff] %v210_v7  ;;  %1372 = vmatmul.bf16.gmra.mxu1 %v2996_v16  ;;  %v456_v28 = vpack.c.bf16 %v424_v22, %v424_v22  ;;  %v433_v29 = vld [vmem:[#allocation2 + $0x78] sm:$0xff]  ;;  %1611 = vmatpush.bf16.msrb.mxu3 %v2695_v36  ;;  %v670_v60 = vunpack.c.l.b16 %v480_v40  ;;  %v3052_v3 = vpack.c.b16 %v662_v50, %v661_v46  ;;  %v2686_v22 = vld [vmem:[%s3682_s1 + $0x88] sm:$0xff]  ;;  %v2693_v36 = vld [vmem:[%s3682_s1 + $0xc0] sm:$0xff] }
  0x42   : > { %249 = vst [vmem:[#allocation2 + $0x19] sm:$0xff] %v2990_v11  ;;  %v645_v32 = vunpack.c.l.b16 %v455_v23  ;;  %v434_v33 = vld [vmem:[#allocation2 + $0x80] sm:$0xff]  ;;  %v465_v53 = vpack.c.bf16 %v433_v29, %v433_v29  ;;  %1433 = vmatpush.bf16.msrb.mxu1 %v2679_v42  ;;  %v2694_v23 = vld [vmem:[%s3682_s1 + $0xc8] sm:$0xff]  ;;  %1700 = vmatpush.bf16.msrb.mxu0 %v2703_v25  ;;  %v2724_v25 = vld [vmem:[%s3682_s1 + $0x1b8] sm:$0xff] }
  0x43   : > { %250 = vst [vmem:[#allocation2 + $0x21] sm:$0xff] %v2993_v12  ;;  %v646_v41 = vunpack.c.l.b16 %v456_v28  ;;  %v466_v54 = vpack.c.bf16 %v434_v33, %v434_v33  ;;  %v3055_v9 = vpack.c.b16 %v670_v60, %v669_v58  ;;  %v441_v15 = vld [vmem:[#allocation2 + $0xd8] sm:$0xff]  ;;  %v2678_v26 = vld [vmem:[%s3682_s1 + $0x48] sm:$0xff]  ;;  %v2677_v42 = vld [vmem:[%s3682_s1 + $0x40] sm:$0xff] }
  0x44   : > { %259 = vst [vmem:[#allocation2 + $0x91] sm:$0xff] %v3026_v43  ;;  %v655_v6 = vunpack.c.l.b16 %v465_v53  ;;  %v473_v28 = vpack.c.bf16 %v441_v15, %v441_v15  ;;  %1523 = vmatpush.bf16.msrb.mxu2 %v2686_v22  ;;  %v2702_v37 = vld [vmem:[%s3682_s1 + $0x108] sm:$0xff] }
  0x45   : > { %v3038_v52 = vpack.c.b16 %v646_v41, %v645_v32  ;;  %260 = vst [vmem:[#allocation2 + $0x99] sm:$0xff] %v3029_v45  ;;  %v656_v7 = vunpack.c.l.b16 %v466_v54  ;;  %v442_v17 = vld [vmem:[#allocation2 + $0xe0] sm:$0xff]  ;;  %1612 = vmatpush.bf16.msrb.mxu3 %v2694_v23 }
  0x46   : > { %267 = vst [vmem:[#allocation2 + $0xf1] sm:$0xff] %v3033_v47  ;;  %v474_v29 = vpack.c.bf16 %v442_v17, %v442_v17  ;;  %v2685_v32 = vld [vmem:[%s3682_s1 + $0x80] sm:$0xff]  ;;  %1434 = vmatpush.bf16.msrb.mxu1 %v2678_v26  ;;  %v663_v46 = vunpack.c.l.b16 %v473_v28  ;;  %1701 = vmatpush.bf16.msrb.mxu0 %v2702_v37  ;;  %v2732_v26 = vld [vmem:[%s3682_s1 + $0x1f8] sm:$0xff] }
  0x47   : > { %1352 = vmatmul.bf16.gmra.mxu0 %v3038_v52  ;;  %268 = vst [vmem:[#allocation2 + $0xf9] sm:$0xff] %v3036_v49  ;;  %v3059_v14 = vpack.c.b16 %v656_v7, %v655_v6  ;;  %v449_v18 = vld [vmem:[#allocation2 + $0x138] sm:$0xff] }
  0x48   : > { %275 = vst [vmem:[#allocation2 + $0x151] sm:$0xff] %v211_v56  ;;  %v450_v24 = vld [vmem:[#allocation2 + $0x140] sm:$0xff]  ;;  %v481_v39 = vpack.c.bf16 %v449_v18, %v449_v18  ;;  %v664_v50 = vunpack.c.l.b16 %v474_v29  ;;  %1524 = vmatpush.bf16.msrb.mxu2 %v2685_v32  ;;  %v2716_v28 = vld [vmem:[%s3682_s1 + $0x178] sm:$0xff] }
  0x49   : > { %v425_v62 = vld [vmem:[#allocation2 + $0x18] sm:$0xff]  ;;  %3707 = vst [vmem:[#allocation5_spill] sm:$0xff] %v3052_v3  ;;  %v482_v40 = vpack.c.bf16 %v450_v24, %v450_v24  ;;  %1613 = vmatpush.bf16.msrb.mxu3 %v2693_v36  ;;  %v2701_v56 = vld [vmem:[%s3682_s1 + $0x100] sm:$0xff] }
  0x4a   : > { %v426_v1 = vld [vmem:[#allocation2 + $0x20] sm:$0xff]  ;;  %276 = vst [vmem:[#allocation2 + $0x159] sm:$0xff] %v212_v57  ;;  %v457_v10 = vpack.c.bf16 %v425_v62, %v425_v62  ;;  %v671_v57 = vunpack.c.l.b16 %v481_v39  ;;  %1435 = vmatpush.bf16.msrb.mxu1 %v2677_v42  ;;  %1702 = vmatpush.bf16.msrb.mxu0 %v2701_v56  ;;  %v2740_v29 = vld [vmem:[%s3682_s1 + $0x238] sm:$0xff]  ;;  %v520_v56 = vpack.c.bf16 %v2962_v48, %v2962_v48 }
  0x4b   : > { %251 = vst [vmem:[#allocation2 + $0x31] sm:$0xff] %v3047_v61  ;;  %v458_v13 = vpack.c.bf16 %v426_v1, %v426_v1  ;;  %v435_v31 = vld [vmem:[#allocation2 + $0x90] sm:$0xff]  ;;  %v672_v58 = vunpack.c.l.b16 %v482_v40  ;;  %v3093_v1 = vpack.c.b16 %v664_v50, %v663_v46  ;;  %v523_v48 = vpack.c.bf16 %v3047_v61, %v3047_v61 }
  0x4c   : > { %3708 = vst [vmem:[#allocation6_spill] sm:$0xff] %v3055_v9  ;;  %v647_v20 = vunpack.c.l.b16 %v457_v10  ;;  %v436_v33 = vld [vmem:[#allocation2 + $0x98] sm:$0xff]  ;;  %v467_v53 = vpack.c.bf16 %v435_v31, %v435_v31  ;;  %1873 = vmatpush.bf16.msra.mxu2 %v2724_v25  ;;  %v2731_v61 = vld [vmem:[%s3682_s1 + $0x1f0] sm:$0xff] }
  0x4d   : > { %252 = vst [vmem:[#allocation2 + $0x39] sm:$0xff] %v3050_v2  ;;  %1392 = vmatmul.bf16.gmra.mxu2 %v3052_v3  ;;  %v648_v21 = vunpack.c.l.b16 %v458_v13  ;;  %v468_v54 = vpack.c.bf16 %v436_v33, %v436_v33  ;;  %v3095_v10 = vpack.c.b16 %v672_v58, %v671_v57  ;;  %v443_v18 = vld [vmem:[#allocation2 + $0xf0] sm:$0xff]  ;;  %1962 = vmatpush.bf16.msra.mxu3 %v2732_v26 }
  0x4e   : > { %3709 = vst [vmem:[#allocation7_spill] sm:$0xff] %v3059_v14  ;;  %v657_v6 = vunpack.c.l.b16 %v467_v53  ;;  %v475_v31 = vpack.c.bf16 %v443_v18, %v443_v18  ;;  %1784 = vmatpush.bf16.msra.mxu1 %v2716_v28  ;;  %2051 = vmatpush.bf16.msra.mxu0 %v2740_v29  ;;  %v521_v57 = vpack.c.bf16 %v2990_v11, %v2990_v11  ;;  %v551_v18 = vld [vmem:[#allocation2 + $0x2] sm:$0xff]  ;;  %v553_v29 = vld [vmem:[#allocation2 + $0x1a] sm:$0xff] }
  0x4f   : > { %1412 = vmatmul.bf16.gmra.mxu3 %v3055_v9  ;;  %v3084_v41 = vpack.c.b16 %v648_v21, %v647_v20  ;;  %3710 = vst [vmem:[#allocation8_spill] sm:$0xff] %v3093_v1  ;;  %v658_v7 = vunpack.c.l.b16 %v468_v54  ;;  %v444_v20 = vld [vmem:[#allocation2 + $0xf8] sm:$0xff]  ;;  %v451_v21 = vld [vmem:[#allocation2 + $0x150] sm:$0xff]  ;;  %v519_v54 = vpack.c.bf16 %v2956_v44, %v2956_v44  ;;  %v522_v58 = vpack.c.bf16 %v2993_v12, %v2993_v12 }
  0x50   : > { %v476_v32 = vpack.c.bf16 %v444_v20, %v444_v20  ;;  %v483_v33 = vpack.c.bf16 %v451_v21, %v451_v21  ;;  %v665_v39 = vunpack.c.l.b16 %v475_v31  ;;  %v524_v11 = vpack.c.bf16 %v3050_v2, %v3050_v2  ;;  %v552_v20 = vld [vmem:[#allocation2 + $0xa] sm:$0xff]  ;;  %v554_v31 = vld [vmem:[#allocation2 + $0x22] sm:$0xff] }
  0x51   : > { %1377 = vmatmul.bf16.gmra.mxu1 %v3059_v14  ;;  %v3098_v17 = vpack.c.b16 %v658_v7, %v657_v6  ;;  %v452_v22 = vld [vmem:[#allocation2 + $0x158] sm:$0xff]  ;;  %v735_v6 = vunpack.c.l.b16 %v519_v54  ;;  %v736_v7 = vunpack.c.l.b16 %v520_v56  ;;  %v739_v12 = vunpack.c.l.b16 %v523_v48  ;;  %v2723_v21 = vld [vmem:[%s3682_s1 + $0x1b0] sm:$0xff]  ;;  %1963 = vmatpush.bf16.msra.mxu3 %v2731_v61 }
  0x52   : > { %v427_v60 = vld [vmem:[#allocation2 + $0x30] sm:$0xff]  ;;  %v484_v36 = vpack.c.bf16 %v452_v22, %v452_v22  ;;  %v666_v40 = vunpack.c.l.b16 %v476_v32  ;;  %v673_v42 = vunpack.c.l.b16 %v483_v33  ;;  %1874 = vmatpush.bf16.msra.mxu2 %v2723_v21  ;;  %v585_v32 = vpack.c.bf16 %v553_v29, %v553_v29 }
  0x53   : > { %v459_v13 = vpack.c.bf16 %v427_v60, %v427_v60  ;;  %3711 = vst [vmem:[#allocation9_spill] sm:$0xff] %v3098_v17  ;;  %v737_v60 = vunpack.c.l.b16 %v521_v57  ;;  %v765_v44 = vpack.c.b16 %v736_v7, %v735_v6  ;;  %v2715_v2 = vld [vmem:[%s3682_s1 + $0x170] sm:$0xff]  ;;  %v586_v33 = vpack.c.bf16 %v554_v31, %v554_v31  ;;  %v2714_v6 = vld [vmem:[%s3682_s1 + $0x168] sm:$0xff] }
  0x54   : > { %v428_v62 = vld [vmem:[#allocation2 + $0x38] sm:$0xff]  ;;  %v674_v46 = vunpack.c.l.b16 %v484_v36  ;;  %v3117_v50 = vpack.c.b16 %v666_v40, %v665_v39  ;;  %1785 = vmatpush.bf16.msra.mxu1 %v2715_v2  ;;  %v827_v36 = vunpack.c.l.b16 %v585_v32  ;;  %v2738_v7 = vld [vmem:[%s3682_s1 + $0x228] sm:$0xff] }
  0x55   : > { %v460_v15 = vpack.c.bf16 %v428_v62, %v428_v62  ;;  %v649_v23 = vunpack.c.l.b16 %v459_v13  ;;  %v738_v62 = vunpack.c.l.b16 %v522_v58  ;;  %v828_v39 = vunpack.c.l.b16 %v586_v33  ;;  %v555_v54 = vld [vmem:[#allocation2 + $0x32] sm:$0xff]  ;;  %v556_v56 = vld [vmem:[#allocation2 + $0x3a] sm:$0xff]  ;;  %v557_v21 = vld [vmem:[#allocation2 + $0x4a] sm:$0xff] }
  0x56   : > { %v3119_v53 = vpack.c.b16 %v674_v46, %v673_v42  ;;  %v525_v42 = vpack.c.bf16 %v2838_v4, %v2838_v4  ;;  %v526_v46 = vpack.c.bf16 %v2841_v5, %v2841_v5  ;;  %v587_v4 = vpack.c.bf16 %v555_v54, %v555_v54  ;;  %v558_v61 = vld [vmem:[#allocation2 + $0x52] sm:$0xff] }
  0x57   : > { %1357 = vmatmul.bf16.gmra.mxu0 %v3084_v41  ;;  %v650_v24 = vunpack.c.l.b16 %v460_v15  ;;  %v3131_v13 = vpack.c.b16 %v738_v62, %v737_v60  ;;  %v740_v15 = vunpack.c.l.b16 %v524_v11  ;;  %v3161_v40 = vpack.c.b16 %v828_v39, %v827_v36  ;;  %v2722_v60 = vld [vmem:[%s3682_s1 + $0x1a8] sm:$0xff] }
  0x58   : > { %3712 = vst [vmem:[#allocation10_spill] sm:$0xff] %v3119_v53  ;;  %v741_v57 = vunpack.c.l.b16 %v525_v42  ;;  %v742_v58 = vunpack.c.l.b16 %v526_v46  ;;  %v2730_v62 = vld [vmem:[%s3682_s1 + $0x1e8] sm:$0xff]  ;;  %v588_v5 = vpack.c.bf16 %v556_v56, %v556_v56  ;;  %1875 = vmatpush.bf16.msra.mxu2 %v2722_v60  ;;  %1786 = vmatpush.bf16.msra.mxu1 %v2714_v6  ;;  %v829_v48 = vunpack.c.l.b16 %v587_v4  ;;  %v2713_v4 = vld [vmem:[%s3682_s1 + $0x160] sm:$0xff] }
  0x59   : > { %v3114_v37 = vpack.c.b16 %v650_v24, %v649_v23  ;;  %v3143_v22 = vpack.c.b16 %v740_v15, %v739_v12  ;;  %v2739_v23 = vld [vmem:[%s3682_s1 + $0x230] sm:$0xff]  ;;  %v584_v24 = vpack.c.bf16 %v552_v20, %v552_v20  ;;  %1964 = vmatpush.bf16.msra.mxu3 %v2730_v62  ;;  %v528_v20 = vpack.c.bf16 %v2929_v34, %v2929_v34  ;;  %v559_v42 = vld [vmem:[#allocation2 + $0x62] sm:$0xff] }
  0x5a   : > { %2052 = vmatpush.bf16.msra.mxu0 %v2739_v23  ;;  %v830_v11 = vunpack.c.l.b16 %v588_v5  ;;  %v529_v33 = vpack.c.bf16 %v2965_v51, %v2965_v51  ;;  %v530_v36 = vpack.c.bf16 %v2969_v55, %v2969_v55  ;;  %v560_v46 = vld [vmem:[#allocation2 + $0x6a] sm:$0xff]  ;;  %v2729_v51 = vld [vmem:[%s3682_s1 + $0x1e0] sm:$0xff]  ;;  %v591_v55 = vpack.c.bf16 %v559_v42, %v559_v42 }
  0x5b   : > { %v826_v26 = vunpack.c.l.b16 %v584_v24  ;;  %v744_v23 = vunpack.c.l.b16 %v528_v20  ;;  %v589_v24 = vpack.c.bf16 %v557_v21, %v557_v21  ;;  %v592_v60 = vpack.c.bf16 %v560_v46, %v560_v46  ;;  %v2737_v5 = vld [vmem:[%s3682_s1 + $0x220] sm:$0xff] }
  0x5c   : > { %v3185_v12 = vpack.c.b16 %v830_v11, %v829_v48  ;;  %v745_v54 = vunpack.c.l.b16 %v529_v33  ;;  %v746_v56 = vunpack.c.l.b16 %v530_v36  ;;  %1787 = vmatpush.bf16.msra.mxu1 %v2713_v4  ;;  %v833_v48 = vunpack.c.l.b16 %v591_v55  ;;  %v501_v4 = vld [vmem:[#allocation2 + $0xa9] sm:$0xff] }
  0x5d   : > { %1397 = vmatmul.bf16.gmra.mxu2 %v3093_v1  ;;  %v831_v29 = vunpack.c.l.b16 %v589_v24  ;;  %1965 = vmatpush.bf16.msra.mxu3 %v2729_v51  ;;  %v834_v11 = vunpack.c.l.b16 %v592_v60 }
  0x5e   : > { %2053 = vmatpush.bf16.msra.mxu0 %v2738_v7  ;;  %v3232_v6 = vpack.c.b16 %v746_v56, %v745_v54 }
  0x5f   : > { %1417 = vmatmul.bf16.gmra.mxu3 %v3095_v10  ;;  %v3241_v21 = vpack.c.b16 %v834_v11, %v833_v48 }
  0x60   : > { %3715 = vst [vmem:[#allocation13_spill] sm:$0xff] %v3232_v6 }
  0x61   : > { %1382 = vmatmul.bf16.gmra.mxu1 %v3098_v17 }
  0x62   : > { %2054 = vmatpush.bf16.msra.mxu0 %v2737_v5  ;;  %v502_v5 = vld [vmem:[#allocation2 + $0xb1] sm:$0xff] }
  0x67   : > { %1362 = vmatmul.bf16.gmra.mxu0 %v3114_v37 }
  0x6d   : > { %1402 = vmatmul.bf16.gmra.mxu2 %v3117_v50 }
  0x6f   : > { %1422 = vmatmul.bf16.gmra.mxu3 %v3119_v53 }
  0x71   : > { %1436 = vmatmul.bf16.vlgmr.msrb.gmra.mxu1 %v3685_v27 }
  0x77   : > { %1703 = vmatmul.bf16.vlgmr.msrb.gmra.mxu0 %v765_v44 }
  0x7d   : > { %1525 = vmatmul.bf16.vlgmr.msrb.gmra.mxu2 %v3685_v27 }
  0x7f   : > { %1614 = vmatmul.bf16.vlgmr.msrb.gmra.mxu3 %v3038_v52  ;;  %v583_v52 = vpack.c.bf16 %v551_v18, %v551_v18  ;;  %v527_v18 = vpack.c.bf16 %v2917_v30, %v2917_v30 }
  0x81   : > { %1441 = vmatmul.bf16.gmra.mxu1 %v765_v44  ;;  %v825_v25 = vunpack.c.l.b16 %v583_v52  ;;  %v3182_v44 = vpack.c.b16 %v742_v58, %v741_v57  ;;  %v743_v2 = vunpack.c.l.b16 %v527_v18  ;;  %v2721_v57 = vld [vmem:[%s3682_s1 + $0x1a0] sm:$0xff] }
  0x82   : > { %1876 = vmatpush.bf16.msra.mxu2 %v2721_v57 }
  0x83   : > { %v3155_v28 = vpack.c.b16 %v826_v26, %v825_v25  ;;  %v590_v25 = vpack.c.bf16 %v558_v61, %v558_v61  ;;  %v3198_v26 = vpack.c.b16 %v744_v23, %v743_v2  ;;  %v531_v2 = vpack.c.bf16 %v3026_v43, %v3026_v43 }
  0x84   : > { %v532_v23 = vpack.c.bf16 %v3029_v45, %v3029_v45 }
  0x85   : > { %3713 = vst [vmem:[#allocation11_spill] sm:$0xff] %v3198_v26  ;;  %v832_v34 = vunpack.c.l.b16 %v590_v25  ;;  %v747_v33 = vunpack.c.l.b16 %v531_v2  ;;  %v533_v2 = vpack.c.bf16 %v501_v4, %v501_v4 }
  0x86   : > { %v748_v36 = vunpack.c.l.b16 %v532_v23  ;;  %v534_v23 = vpack.c.bf16 %v502_v5, %v502_v5 }
  0x87   : > { %1708 = vmatmul.bf16.gmra.mxu0 %v3131_v13  ;;  %v3203_v31 = vpack.c.b16 %v832_v34, %v831_v29  ;;  %v561_v29 = vld [vmem:[#allocation2 + $0x7a] sm:$0xff]  ;;  %v562_v34 = vld [vmem:[#allocation2 + $0x82] sm:$0xff] }
  0x88   : > { %v593_v43 = vpack.c.bf16 %v561_v29, %v561_v29  ;;  %v594_v46 = vpack.c.bf16 %v562_v34, %v562_v34  ;;  %v3260_v45 = vpack.c.b16 %v748_v36, %v747_v33  ;;  %v563_v33 = vld [vmem:[#allocation2 + $0x92] sm:$0xff]  ;;  %v564_v36 = vld [vmem:[#allocation2 + $0x9a] sm:$0xff] }
  0x89   : > { %v595_v5 = vpack.c.bf16 %v563_v33, %v563_v33  ;;  %v596_v27 = vpack.c.bf16 %v564_v36, %v564_v36 }
  0x8a   : > { %3718 = vst [vmem:[#allocation16_spill] sm:$0xff] %v3260_v45  ;;  %v835_v57 = vunpack.c.l.b16 %v593_v43  ;;  %v836_v51 = vunpack.c.l.b16 %v594_v46  ;;  %v749_v43 = vunpack.c.l.b16 %v533_v2  ;;  %v750_v46 = vunpack.c.l.b16 %v534_v23  ;;  %v2712_v23 = vld [vmem:[%s3682_s1 + $0x158] sm:$0xff] }
  0x8b   : > { %1788 = vmatpush.bf16.msra.mxu1 %v2712_v23  ;;  %v566_v23 = vld [vmem:[#allocation2 + $0xb2] sm:$0xff] }
  0x8c   : > { %v3269_v48 = vpack.c.b16 %v836_v51, %v835_v57  ;;  %v2720_v57 = vld [vmem:[%s3682_s1 + $0x198] sm:$0xff]  ;;  %v3290_v2 = vpack.c.b16 %v750_v46, %v749_v43 }
  0x8d   : > { %1530 = vmatmul.bf16.gmra.mxu2 %v3155_v28  ;;  %v2728_v51 = vld [vmem:[%s3682_s1 + $0x1d8] sm:$0xff] }
  0x8e   : > { %3719 = vst [vmem:[#allocation17_spill] sm:$0xff] %v3269_v48  ;;  %1877 = vmatpush.bf16.msra.mxu2 %v2720_v57  ;;  %1966 = vmatpush.bf16.msra.mxu3 %v2728_v51  ;;  %v535_v57 = vpack.c.bf16 %v2932_v35, %v2932_v35  ;;  %v536_v51 = vpack.c.bf16 %v2942_v38, %v2942_v38 }
  0x8f   : > { %1619 = vmatmul.bf16.gmra.mxu3 %v3084_v41  ;;  %3722 = vst [vmem:[#allocation20_spill] sm:$0xff] %v3290_v2 }
  0x91   : > { %1446 = vmatmul.bf16.gmra.mxu1 %v3131_v13 }
  0x97   : > { %1713 = vmatmul.bf16.gmra.mxu0 %v3143_v22 }
  0x9d   : > { %1535 = vmatmul.bf16.gmra.mxu2 %v3161_v40 }
  0x9f   : > { %1624 = vmatmul.bf16.gmra.mxu3 %v3114_v37 }
  0xa1   : > { %1451 = vmatmul.bf16.gmra.mxu1 %v3143_v22 }
  0xa7   : > { %1718 = vmatmul.bf16.gmra.mxu0 %v3182_v44 }
  0xa8   : > { %v3187_v15 = vpop.f32.mrf.mxu1 }
  0xa9   : > { %v3195_v52 = vpop.f32.mrf.mxu0 }
  0xad   : > { %1540 = vmatmul.bf16.gmra.mxu2 %v3185_v12 }
  0xaf   : > { %1629 = vmatmul.bf16.gmra.mxu3 %v2887_v19 }
  0xb0   : > { %v3200_v30 = vpop.f32.mrf.mxu1 }
  0xb1   : > { %1456 = vmatmul.bf16.gmra.mxu1 %v3182_v44  ;;  %v3205_v32 = vpop.f32.mrf.mxu0 }
  0xb7   : > { %1723 = vmatmul.bf16.gmra.mxu0 %v3198_v26 }
  0xbd   : > { %1545 = vmatmul.bf16.gmra.mxu2 %v3203_v31 }
  0xbe   : > { %v3212_v39 = vpop.f32.mrf.mxu1 }
  0xbf   : > { %1634 = vmatmul.bf16.gmra.mxu3 %v2996_v16 }
  0xc0   : > { %v3221_v58 = vpop.f32.mrf.mxu2 }
  0xc1   : > { %1461 = vmatmul.bf16.gmra.mxu1 %v3198_v26 }
  0xc2   : > { %v3224_v62 = vpop.f32.mrf.mxu3 }
  0xc3   : > { %3714 = vst [vmem:[#allocation12_spill] sm:$0xff] %v3224_v62 }
  0xc4   : > { %v3234_v7 = vpop.f32.mrf.mxu0 }
  0xc6   : > { %v3236_v18 = vpop.f32.mrf.mxu1 }
  0xc7   : > { %1728 = vmatmul.bf16.gmra.mxu0 %v3232_v6 }
  0xc8   : > { %v3239_v20 = vpop.f32.mrf.mxu2 }
  0xca   : > { %v3243_v61 = vpop.f32.mrf.mxu3 }
  0xcb   : > { %3716 = vst [vmem:[#allocation14_spill] sm:$0xff] %v3243_v61  ;;  %v837_v61 = vunpack.c.l.b16 %v595_v5 }
  0xcc   : > { %v3249_v24 = vpop.f32.mrf.mxu0 }
  0xcd   : > { %1550 = vmatmul.bf16.gmra.mxu2 %v3241_v21 }
  0xce   : > { %v3252_v25 = vpop.f32.mrf.mxu1 }
  0xcf   : > { %1639 = vmatmul.bf16.gmra.mxu3 %v3059_v14 }
  0xd0   : > { %v3255_v42 = vpop.f32.mrf.mxu2 }
  0xd1   : > { %1466 = vmatmul.bf16.gmra.mxu1 %v3232_v6  ;;  %v598_v6 = vpack.c.bf16 %v566_v23, %v566_v23 }
  0xd2   : > { %v3258_v54 = vpop.f32.mrf.mxu3 }
  0xd3   : > { %3717 = vst [vmem:[#allocation15_spill] sm:$0xff] %v3258_v54  ;;  %v2736_v54 = vld [vmem:[%s3682_s1 + $0x218] sm:$0xff] }
  0xd4   : > { %v3262_v56 = vpop.f32.mrf.mxu0  ;;  %2055 = vmatpush.bf16.msra.mxu0 %v2736_v54  ;;  %v565_v54 = vld [vmem:[#allocation2 + $0xaa] sm:$0xff] }
  0xd5   : > { %v597_v35 = vpack.c.bf16 %v565_v54, %v565_v54  ;;  %v537_v54 = vpack.c.bf16 %v2973_v59, %v2973_v59  ;;  %v2727_v59 = vld [vmem:[%s3682_s1 + $0x1d0] sm:$0xff] }
  0xd6   : > { %v3264_v55 = vpop.f32.mrf.mxu1  ;;  %1967 = vmatpush.bf16.msra.mxu3 %v2727_v59 }
  0xd7   : > { %1733 = vmatmul.bf16.gmra.mxu0 %v3260_v45  ;;  %v839_v14 = vunpack.c.l.b16 %v597_v35  ;;  %v568_v35 = vld [vmem:[#allocation2 + $0xca] sm:$0xff] }
  0xd8   : > { %v3267_v60 = vpop.f32.mrf.mxu2 }
  0xda   : > { %v3271_v11 = vpop.f32.mrf.mxu3 }
  0xdb   : > { %3720 = vst [vmem:[#allocation18_spill] sm:$0xff] %v3271_v11 }
  0xdc   : > { %v3273_v29 = vpop.f32.mrf.mxu0 }
  0xdd   : > { %1555 = vmatmul.bf16.gmra.mxu2 %v3269_v48  ;;  %v840_v48 = vunpack.c.l.b16 %v598_v6 }
  0xde   : > { %v3276_v34 = vpop.f32.mrf.mxu1 }
  0xdf   : > { %1644 = vmatmul.bf16.gmra.mxu3 %v3098_v17 }
  0xe0   : > { %v3285_v4 = vpop.f32.mrf.mxu2 }
  0xe1   : > { %1471 = vmatmul.bf16.gmra.mxu1 %v3260_v45  ;;  %v838_v45 = vunpack.c.l.b16 %v596_v27 }
  0xe2   : > { %v3288_v11 = vpop.f32.mrf.mxu3 }
  0xe3   : > { %3721 = vst [vmem:[#allocation19_spill] sm:$0xff] %v3288_v11  ;;  %v3305_v43 = vpack.c.b16 %v838_v45, %v837_v61  ;;  %v751_v45 = vunpack.c.l.b16 %v535_v57  ;;  %v752_v11 = vunpack.c.l.b16 %v536_v51  ;;  %v3329_v51 = vpack.c.b16 %v840_v48, %v839_v14  ;;  %v2719_v48 = vld [vmem:[%s3682_s1 + $0x190] sm:$0xff] }
  0xe4   : > { %v3298_v17 = vpop.f32.mrf.mxu0  ;;  %v753_v14 = vunpack.c.l.b16 %v537_v54  ;;  %1878 = vmatpush.bf16.msra.mxu2 %v2719_v48 }
  0xe5   : > { %3723 = vst [vmem:[#allocation21_spill] sm:$0xff] %v3305_v43  ;;  %v3323_v62 = vpack.c.b16 %v752_v11, %v751_v45  ;;  %v538_v11 = vpack.c.bf16 %v2977_v63, %v2977_v63  ;;  %v567_v45 = vld [vmem:[#allocation2 + $0xc2] sm:$0xff] }
  0xe6   : > { %v3300_v33 = vpop.f32.mrf.mxu1 }
  0xe7   : > { %1738 = vmatmul.bf16.gmra.mxu0 %v3290_v2  ;;  %3726 = vst [vmem:[#allocation24_spill] sm:$0xff] %v3323_v62 }
  0xe8   : > { %v3303_v36 = vpop.f32.mrf.mxu2 }
  0xea   : > { %v3307_v46 = vpop.f32.mrf.mxu3 }
  0xeb   : > { %3724 = vst [vmem:[#allocation22_spill] sm:$0xff] %v3307_v46 }
  0xec   : > { %v3313_v5 = vpop.f32.mrf.mxu0 }
  0xed   : > { %1560 = vmatmul.bf16.gmra.mxu2 %v3305_v43 }
  0xee   : > { %v1437_v27 = vpop.f32.mrf.mxu1 }
  0xef   : > { %1649 = vmatmul.bf16.gmra.mxu3 %v2979_v0  ;;  %v1438_v61 = vadd.f32 %v1437_v27, %v3195_v52 }
  0xf0   : > { %v3318_v46 = vpop.f32.mrf.mxu2 }
  0xf1   : > { %1476 = vmatmul.bf16.gmra.mxu1 %v3290_v2  ;;  %v600_v2 = vpack.c.bf16 %v568_v35, %v568_v35 }
  0xf2   : > { %v3321_v38 = vpop.f32.mrf.mxu3 }
  0xf3   : > { %3725 = vst [vmem:[#allocation23_spill] sm:$0xff] %v3321_v38  ;;  %v599_v38 = vpack.c.bf16 %v567_v45, %v567_v45 }
  0xf4   : > { %v1704_v43 = vpop.f32.mrf.mxu0 }
  0xf6   : > { %v1439_v26 = vpop.f32.mrf.mxu1 }
  0xf7   : > { %1743 = vmatmul.bf16.gmra.mxu0 %v3323_v62  ;;  %v1440_v52 = vadd.f32 %v1439_v26, %v3205_v32  ;;  %v754_v32 = vunpack.c.l.b16 %v538_v11  ;;  %v2711_v11 = vld [vmem:[%s3682_s1 + $0x150] sm:$0xff] }
  0xf8   : > { %v3327_v57 = vpop.f32.mrf.mxu2  ;;  %1789 = vmatpush.bf16.msra.mxu1 %v2711_v11  ;;  %v569_v11 = vld [vmem:[#allocation2 + $0xda] sm:$0xff] }
  0xf9   : > { %v3347_v54 = vpack.c.b16 %v754_v32, %v753_v14 }
  0xfa   : > { %v3331_v27 = vpop.f32.mrf.mxu3 }
  0xfb   : > { %3727 = vst [vmem:[#allocation25_spill] sm:$0xff] %v3331_v27 }
  0xfc   : > { %v1706_v23 = vpop.f32.mrf.mxu0 }
  0xfd   : > { %1565 = vmatmul.bf16.gmra.mxu2 %v3329_v51 }
  0xfe   : > { %v1442_v6 = vpop.f32.mrf.mxu1 }
  0xff   : > { %1654 = vmatmul.bf16.gmra.mxu3 %v3052_v3  ;;  %v1443_v26 = vadd.f32 %v1442_v6, %v3234_v7  ;;  %v2735_v6 = vld [vmem:[%s3682_s1 + $0x210] sm:$0xff] }
 0x100   : > { %v1526_v63 = vpop.f32.mrf.mxu2  ;;  %2056 = vmatpush.bf16.msra.mxu0 %v2735_v6 }
 0x101   : > { %v1527_v27 = vadd.f32 %v1526_v63, %v1438_v61  ;;  %1481 = vmatmul.bf16.gmra.mxu1 %v3323_v62  ;;  %v841_v61 = vunpack.c.l.b16 %v599_v38  ;;  %v842_v63 = vunpack.c.l.b16 %v600_v2  ;;  %v539_v62 = vpack.c.bf16 %v3033_v47, %v3033_v47 }
 0x102   : > { %v1615_v3 = vpop.f32.mrf.mxu3  ;;  %v540_v2 = vpack.c.bf16 %v3036_v49, %v3036_v49  ;;  %v601_v47 = vpack.c.bf16 %v569_v11, %v569_v11 }
 0x103   : > { %v1616_v7 = vadd.f32 %v1615_v3, %v1527_v27  ;;  %v3359_v32 = vpack.c.b16 %v842_v63, %v841_v61  ;;  %v755_v6 = vunpack.c.l.b16 %v539_v62 }
 0x104   : > { %v1709_v0 = vpop.f32.mrf.mxu0  ;;  %v756_v61 = vunpack.c.l.b16 %v540_v2  ;;  %v510_v2 = vld [vmem:[#allocation2 + $0x111] sm:$0xff] }
 0x105   : > { %v3355_v45 = vadd.f32 %v1704_v43, %v1616_v7 }
 0x106   : > { %v1444_v35 = vpop.f32.mrf.mxu1 }
 0x107   : > { %3728 = vst [vmem:[#allocation26_spill] sm:$0xff] %v3355_v45  ;;  %1748 = vmatmul.bf16.gmra.mxu0 %v3347_v54  ;;  %v1445_v3 = vadd.f32 %v1444_v35, %v3249_v24  ;;  %v570_v24 = vld [vmem:[#allocation2 + $0xe2] sm:$0xff] }
 0x108   : > { %v1528_v27 = vpop.f32.mrf.mxu2  ;;  %v602_v49 = vpack.c.bf16 %v570_v24, %v570_v24 }
 0x109   : > { %v1529_v14 = vadd.f32 %v1528_v27, %v1440_v52 }
 0x10a   : > { %v1617_v48 = vpop.f32.mrf.mxu3 }
 0x10b   : > { %v1618_v59 = vadd.f32 %v1617_v48, %v1529_v14  ;;  %v3371_v48 = vpack.c.b16 %v756_v61, %v755_v6  ;;  %v542_v61 = vpack.c.bf16 %v510_v2, %v510_v2 }
 0x10c   : > { %v1711_v38 = vpop.f32.mrf.mxu0 }
 0x10d   : > { %1570 = vmatmul.bf16.gmra.mxu2 %v3359_v32  ;;  %v3366_v43 = vadd.f32 %v1706_v23, %v1618_v59  ;;  %v843_v59 = vunpack.c.l.b16 %v601_v47 }
 0x10e   : > { %v1447_v7 = vpop.f32.mrf.mxu1 }
 0x10f   : > { %3729 = vst [vmem:[#allocation27_spill] sm:$0xff] %v3366_v43  ;;  %1659 = vmatmul.bf16.gmra.mxu3 %v3093_v1  ;;  %v1448_v52 = vadd.f32 %v1447_v7, %v3262_v56  ;;  %v844_v43 = vunpack.c.l.b16 %v602_v49  ;;  %v571_v49 = vld [vmem:[#allocation2 + $0xf2] sm:$0xff] }
 0x110   : > { %v1531_v63 = vpop.f32.mrf.mxu2 }
 0x111   : > { %v1532_v35 = vadd.f32 %v1531_v63, %v1443_v26  ;;  %1486 = vmatmul.bf16.gmra.mxu1 %v3347_v54  ;;  %v509_v26 = vld [vmem:[#allocation2 + $0x109] sm:$0xff]  ;;  %v3377_v11 = vpack.c.b16 %v844_v43, %v843_v59 }
 0x112   : > { %v1620_v27 = vpop.f32.mrf.mxu3  ;;  %v541_v6 = vpack.c.bf16 %v509_v26, %v509_v26  ;;  %v2718_v43 = vld [vmem:[%s3682_s1 + $0x188] sm:$0xff] }
 0x113   : > { %v1621_v14 = vadd.f32 %v1620_v27, %v1532_v35  ;;  %v572_v27 = vld [vmem:[#allocation2 + $0xfa] sm:$0xff]  ;;  %1879 = vmatpush.bf16.msra.mxu2 %v2718_v43  ;;  %v512_v43 = vld [vmem:[#allocation2 + $0x129] sm:$0xff] }
 0x114   : > { %v1714_v23 = vpop.f32.mrf.mxu0  ;;  %v604_v26 = vpack.c.bf16 %v572_v27, %v572_v27 }
 0x115   : > { %v3373_v45 = vadd.f32 %v1709_v0, %v1621_v14  ;;  %v2726_v14 = vld [vmem:[%s3682_s1 + $0x1c8] sm:$0xff] }
 0x116   : > { %v1449_v1 = vpop.f32.mrf.mxu1  ;;  %1968 = vmatpush.bf16.msra.mxu3 %v2726_v14 }
 0x117   : > { %1753 = vmatmul.bf16.gmra.mxu0 %v3371_v48  ;;  %v1450_v62 = vadd.f32 %v1449_v1, %v3273_v29  ;;  %v757_v29 = vunpack.c.l.b16 %v541_v6 }
 0x118   : > { %v1533_v56 = vpop.f32.mrf.mxu2 }
 0x119   : > { %v1534_v7 = vadd.f32 %v1533_v56, %v1445_v3  ;;  %v758_v3 = vunpack.c.l.b16 %v542_v61  ;;  %v603_v56 = vpack.c.bf16 %v571_v49, %v571_v49  ;;  %v846_v61 = vunpack.c.l.b16 %v604_v26 }
 0x11a   : > { %v1622_v24 = vpop.f32.mrf.mxu3 }
 0x11b   : > { %v1623_v63 = vadd.f32 %v1622_v24, %v1534_v7  ;;  %v3391_v7 = vpack.c.b16 %v758_v3, %v757_v29  ;;  %v2710_v24 = vld [vmem:[%s3682_s1 + $0x148] sm:$0xff] }
 0x11c   : > { %v1716_v35 = vpop.f32.mrf.mxu0  ;;  %1790 = vmatpush.bf16.msra.mxu1 %v2710_v24  ;;  %v511_v3 = vld [vmem:[#allocation2 + $0x121] sm:$0xff]  ;;  %v573_v24 = vld [vmem:[#allocation2 + $0x10a] sm:$0xff] }
 0x11d   : > { %1575 = vmatmul.bf16.gmra.mxu2 %v3377_v11  ;;  %v3380_v0 = vadd.f32 %v1711_v38, %v1623_v63  ;;  %3731 = vst [vmem:[#allocation29_spill] sm:$0xff] %v3391_v7  ;;  %v2734_v63 = vld [vmem:[%s3682_s1 + $0x208] sm:$0xff] }
 0x11e   : > { %v1452_v47 = vpop.f32.mrf.mxu1  ;;  %2057 = vmatpush.bf16.msra.mxu0 %v2734_v63  ;;  %v574_v63 = vld [vmem:[#allocation2 + $0x112] sm:$0xff] }
 0x11f   : > { %3730 = vst [vmem:[#allocation28_spill] sm:$0xff] %v3380_v0  ;;  %1664 = vmatmul.bf16.gmra.mxu3 %v3117_v50  ;;  %v1453_v1 = vadd.f32 %v1452_v47, %v3298_v17  ;;  %v543_v0 = vpack.c.bf16 %v511_v3, %v511_v3 }
 0x120   : > { %v1536_v59 = vpop.f32.mrf.mxu2 }
 0x121   : > { %v1537_v38 = vadd.f32 %v1536_v59, %v1448_v52  ;;  %1491 = vmatmul.bf16.gmra.mxu1 %v3371_v48  ;;  %v845_v52 = vunpack.c.l.b16 %v603_v56  ;;  %v544_v56 = vpack.c.bf16 %v512_v43, %v512_v43 }
 0x122   : > { %v1625_v2 = vpop.f32.mrf.mxu3 }
 0x123   : > { %v1626_v17 = vadd.f32 %v1625_v2, %v1537_v38  ;;  %v3403_v59 = vpack.c.b16 %v846_v61, %v845_v52  ;;  %v605_v52 = vpack.c.bf16 %v573_v24, %v573_v24  ;;  %v606_v61 = vpack.c.bf16 %v574_v63, %v574_v63 }
 0x124   : > { %v1719_v6 = vpop.f32.mrf.mxu0 }
 0x125   : > { %v3399_v47 = vadd.f32 %v1714_v23, %v1626_v17 }
 0x126   : > { %v1454_v49 = vpop.f32.mrf.mxu1 }
 0x127   : > { %3732 = vst [vmem:[#allocation30_spill] sm:$0xff] %v3399_v47  ;;  %1758 = vmatmul.bf16.gmra.mxu0 %v3391_v7  ;;  %v1455_v27 = vadd.f32 %v1454_v49, %v3313_v5  ;;  %v759_v5 = vunpack.c.l.b16 %v543_v0  ;;  %v760_v49 = vunpack.c.l.b16 %v544_v56  ;;  %v513_v56 = vld [vmem:[#allocation2 + $0x139] sm:$0xff] }
 0x128   : > { %v1538_v29 = vpop.f32.mrf.mxu2 }
 0x129   : > { %v1539_v14 = vadd.f32 %v1538_v29, %v1450_v62  ;;  %v3410_v43 = vpack.c.b16 %v760_v49, %v759_v5 }
 0x12a   : > { %v1627_v38 = vpop.f32.mrf.mxu3 }
 0x12b   : > { %v1628_v2 = vadd.f32 %v1627_v38, %v1539_v14  ;;  %3734 = vst [vmem:[#allocation32_spill] sm:$0xff] %v3410_v43  ;;  %v848_v38 = vunpack.c.l.b16 %v606_v61  ;;  %v575_v61 = vld [vmem:[#allocation2 + $0x122] sm:$0xff] }
 0x12c   : > { %v1721_v26 = vpop.f32.mrf.mxu0 }
 0x12d   : > { %1580 = vmatmul.bf16.gmra.mxu2 %v3403_v59  ;;  %v3406_v23 = vadd.f32 %v1716_v35, %v1628_v2  ;;  %v847_v35 = vunpack.c.l.b16 %v605_v52 }
 0x12e   : > { %v1457_v17 = vpop.f32.mrf.mxu1 }
 0x12f   : > { %3733 = vst [vmem:[#allocation31_spill] sm:$0xff] %v3406_v23  ;;  %1669 = vmatmul.bf16.gmra.mxu3 %v2986_v8  ;;  %v514_v8 = vld [vmem:[#allocation2 + $0x141] sm:$0xff] }
 0x130   : > { %v1541_v47 = vpop.f32.mrf.mxu2  ;;  %v546_v5 = vpack.c.bf16 %v514_v8, %v514_v8  ;;  %v2725_v8 = vld [vmem:[%s3682_s1 + $0x1c0] sm:$0xff] }
 0x131   : > { %v1542_v62 = vadd.f32 %v1541_v47, %v1453_v1  ;;  %1496 = vmatmul.bf16.gmra.mxu1 %v3391_v7  ;;  %v3415_v47 = vpack.c.b16 %v848_v38, %v847_v35  ;;  %v2717_v38 = vld [vmem:[%s3682_s1 + $0x180] sm:$0xff]  ;;  %1969 = vmatpush.bf16.msra.mxu3 %v2725_v8 }
 0x132   : > { %v1630_v29 = vpop.f32.mrf.mxu3  ;;  %v762_v35 = vunpack.c.l.b16 %v546_v5  ;;  %1880 = vmatpush.bf16.msra.mxu2 %v2717_v38  ;;  %v2709_v5 = vld [vmem:[%s3682_s1 + $0x140] sm:$0xff] }
 0x133   : > { %v1631_v3 = vadd.f32 %v1630_v29, %v1542_v62  ;;  %v545_v62 = vpack.c.bf16 %v513_v56, %v513_v56  ;;  %v576_v29 = vld [vmem:[#allocation2 + $0x12a] sm:$0xff]  ;;  %v3432_v56 = vld [vmem:[%s2831_s21 + $0xf8] sm:$0xff]  ;;  %1791 = vmatpush.bf16.msra.mxu1 %v2709_v5 }
 0x134   : > { %v1724_v14 = vpop.f32.mrf.mxu0  ;;  %278 = vst [vmem:[#allocation2 + $0x171] sm:$0xff] %v3432_v56  ;;  %v577_v5 = vld [vmem:[#allocation2 + $0x13a] sm:$0xff] }
 0x135   : > { %v3412_v2 = vadd.f32 %v1719_v6, %v1631_v3  ;;  %v1458_v3 = vadd.f32 %v1457_v17, %v3187_v15  ;;  %v607_v15 = vpack.c.bf16 %v575_v61, %v575_v61  ;;  %v608_v17 = vpack.c.bf16 %v576_v29, %v576_v29 }
 0x136   : > { %v1459_v23 = vpop.f32.mrf.mxu1 }
 0x137   : > { %3735 = vst [vmem:[#allocation33_spill] sm:$0xff] %v3412_v2  ;;  %1763 = vmatmul.bf16.gmra.mxu0 %v3410_v43  ;;  %v849_v29 = vunpack.c.l.b16 %v607_v15  ;;  %v850_v38 = vunpack.c.l.b16 %v608_v17 }
 0x138   : > { %v1543_v0 = vpop.f32.mrf.mxu2 }
 0x139   : > { %v1544_v1 = vadd.f32 %v1543_v0, %v1455_v27  ;;  %v761_v27 = vunpack.c.l.b16 %v545_v62 }
 0x13a   : > { %v1632_v24 = vpop.f32.mrf.mxu3 }
 0x13b   : > { %v1633_v63 = vadd.f32 %v1632_v24, %v1544_v1  ;;  %v3437_v62 = vpack.c.b16 %v762_v35, %v761_v27  ;;  %v515_v35 = vld [vmem:[#allocation2 + $0x151] sm:$0xff] }
 0x13c   : > { %v1726_v49 = vpop.f32.mrf.mxu0  ;;  %v547_v7 = vpack.c.bf16 %v515_v35, %v515_v35 }
 0x13d   : > { %1585 = vmatmul.bf16.gmra.mxu2 %v3415_v47  ;;  %v3418_v6 = vadd.f32 %v1721_v26, %v1633_v63  ;;  %v3429_v26 = vld [vmem:[%s2831_s21 + $0xf0] sm:$0xff] }
 0x13e   : > { %v1462_v52 = vpop.f32.mrf.mxu1  ;;  %277 = vst [vmem:[#allocation2 + $0x169] sm:$0xff] %v3429_v26 }
 0x13f   : > { %3736 = vst [vmem:[#allocation34_spill] sm:$0xff] %v3418_v6  ;;  %1674 = vmatmul.bf16.gmra.mxu3 %v3055_v9 }
 0x140   : > { %v1546_v0 = vpop.f32.mrf.mxu2 }
 0x141   : > { %v1547_v1 = vadd.f32 %v1546_v0, %v1458_v3  ;;  %1501 = vmatmul.bf16.gmra.mxu1 %v3410_v43  ;;  %v2733_v3 = vld [vmem:[%s3682_s1 + $0x200] sm:$0xff]  ;;  %v3449_v43 = vpack.c.b16 %v850_v38, %v849_v29 }
 0x142   : > { %v1635_v24 = vpop.f32.mrf.mxu3  ;;  %2058 = vmatpush.bf16.msra.mxu0 %v2733_v3  ;;  %v763_v3 = vunpack.c.l.b16 %v547_v7 }
 0x143   : > { %v1636_v63 = vadd.f32 %v1635_v24, %v1547_v1  ;;  %v1460_v1 = vadd.f32 %v1459_v23, %v3200_v30  ;;  %v516_v24 = vld [vmem:[#allocation2 + $0x159] sm:$0xff]  ;;  %v578_v30 = vld [vmem:[#allocation2 + $0x142] sm:$0xff]  ;;  %v1463_v23 = vadd.f32 %v1462_v52, %v3212_v39 }
 0x144   : > { %v1729_v61 = vpop.f32.mrf.mxu0  ;;  %v548_v15 = vpack.c.bf16 %v516_v24, %v516_v24 }
 0x145   : > { %v3445_v0 = vadd.f32 %v1724_v14, %v1636_v63 }
 0x146   : > { %v1464_v8 = vpop.f32.mrf.mxu1 }
 0x147   : > { %3737 = vst [vmem:[#allocation35_spill] sm:$0xff] %v3445_v0  ;;  %1768 = vmatmul.bf16.gmra.mxu0 %v3437_v62  ;;  %v1465_v52 = vadd.f32 %v1464_v8, %v3236_v18  ;;  %v579_v8 = vld [vmem:[#allocation2 + $0x152] sm:$0xff] }
 0x148   : > { %v1548_v27 = vpop.f32.mrf.mxu2 }
 0x149   : > { %v1549_v6 = vadd.f32 %v1548_v27, %v1460_v1  ;;  %v764_v1 = vunpack.c.l.b16 %v548_v15 }
 0x14a   : > { %v1637_v2 = vpop.f32.mrf.mxu3 }
 0x14b   : > { %v1638_v9 = vadd.f32 %v1637_v2, %v1549_v6  ;;  %v609_v2 = vpack.c.bf16 %v577_v5, %v577_v5  ;;  %v610_v6 = vpack.c.bf16 %v578_v30, %v578_v30  ;;  %v3457_v24 = vpack.c.b16 %v764_v1, %v763_v3 }
 0x14c   : > { %v1731_v17 = vpop.f32.mrf.mxu0  ;;  %v549_v3 = vpack.c.bf16 %v3429_v26, %v3429_v26  ;;  %v550_v1 = vpack.c.bf16 %v3432_v56, %v3432_v56  ;;  %v454_v26 = vld [vmem:[#allocation2 + $0x170] sm:$0xff]  ;;  %v611_v56 = vpack.c.bf16 %v579_v8, %v579_v8 }
 0x14d   : > { %1590 = vmatmul.bf16.gmra.mxu2 %v3449_v43  ;;  %v3452_v14 = vadd.f32 %v1726_v49, %v1638_v9  ;;  %v851_v49 = vunpack.c.l.b16 %v609_v2 }
 0x14e   : > { %v1467_v63 = vpop.f32.mrf.mxu1 }
 0x14f   : > { %3738 = vst [vmem:[#allocation36_spill] sm:$0xff] %v3452_v14  ;;  %1679 = vmatmul.bf16.gmra.mxu3 %v3095_v10  ;;  %v852_v14 = vunpack.c.l.b16 %v610_v6  ;;  %v1468_v2 = vadd.f32 %v1467_v63, %v3252_v25  ;;  %v894_v6 = vunpack.c.l.b16 %v550_v1  ;;  %v853_v25 = vunpack.c.l.b16 %v611_v56 }
 0x150   : > { %v1551_v29 = vpop.f32.mrf.mxu2 }
 0x151   : > { %v1552_v38 = vadd.f32 %v1551_v29, %v1463_v23  ;;  %1506 = vmatmul.bf16.gmra.mxu1 %v3437_v62  ;;  %v3463_v23 = vpack.c.b16 %v852_v14, %v851_v49  ;;  %v893_v14 = vunpack.c.l.b16 %v549_v3 }
 0x152   : > { %v1640_v27 = vpop.f32.mrf.mxu3 }
 0x153   : > { %v1641_v35 = vadd.f32 %v1640_v27, %v1552_v38  ;;  %v580_v38 = vld [vmem:[#allocation2 + $0x15a] sm:$0xff] }
 0x154   : > { %v1734_v9 = vpop.f32.mrf.mxu0 }
 0x155   : > { %v3459_v0 = vadd.f32 %v1729_v61, %v1641_v35  ;;  %v453_v35 = vld [vmem:[#allocation2 + $0x168] sm:$0xff] }
 0x156   : > { %v1469_v39 = vpop.f32.mrf.mxu1 }
 0x157   : > { %3739 = vst [vmem:[#allocation37_spill] sm:$0xff] %v3459_v0  ;;  %1773 = vmatmul.bf16.gmra.mxu0 %v3457_v24  ;;  %v1470_v1 = vadd.f32 %v1469_v39, %v3264_v55 }
 0x158   : > { %v1553_v7 = vpop.f32.mrf.mxu2 }
 0x159   : > { %v1554_v15 = vadd.f32 %v1553_v7, %v1465_v52  ;;  %v612_v52 = vpack.c.bf16 %v580_v38, %v580_v38 }
 0x15a   : > { %v1642_v5 = vpop.f32.mrf.mxu3 }
 0x15b   : > { %v1643_v30 = vadd.f32 %v1642_v5, %v1554_v15  ;;  %v485_v15 = vpack.c.bf16 %v453_v35, %v453_v35  ;;  %v486_v5 = vpack.c.bf16 %v454_v26, %v454_v26  ;;  %v854_v63 = vunpack.c.l.b16 %v612_v52 }
 0x15c   : > { %v1736_v29 = vpop.f32.mrf.mxu0 }
 0x15d   : > { %1595 = vmatmul.bf16.gmra.mxu2 %v3463_v23  ;;  %v3470_v61 = vadd.f32 %v1731_v17, %v1643_v30  ;;  %v3475_v30 = vpack.c.b16 %v894_v6, %v893_v14 }
 0x15e   : > { %v1472_v18 = vpop.f32.mrf.mxu1 }
 0x15f   : > { %3740 = vst [vmem:[#allocation38_spill] sm:$0xff] %v3470_v61  ;;  %1684 = vmatmul.bf16.gmra.mxu3 %v3119_v53  ;;  %v887_v53 = vunpack.c.l.b16 %v485_v15  ;;  %v1473_v55 = vadd.f32 %v1472_v18, %v3276_v34 }
 0x160   : > { %v1556_v27 = vpop.f32.mrf.mxu2 }
 0x161   : > { %v1557_v49 = vadd.f32 %v1556_v27, %v1468_v2  ;;  %1511 = vmatmul.bf16.gmra.mxu1 %v3457_v24  ;;  %v888_v2 = vunpack.c.l.b16 %v486_v5  ;;  %v3481_v27 = vpack.c.b16 %v854_v63, %v853_v25 }
 0x162   : > { %v1645_v7 = vpop.f32.mrf.mxu3 }
 0x163   : > { %v1646_v17 = vadd.f32 %v1645_v7, %v1557_v49  ;;  %v3483_v14 = vpack.c.b16 %v888_v2, %v887_v53 }
 0x164   : > { %v1739_v61 = vpop.f32.mrf.mxu0 }
 0x165   : > { %v3477_v0 = vadd.f32 %v1734_v9, %v1646_v17 }
 0x166   : > { %v1474_v3 = vpop.f32.mrf.mxu1 }
 0x167   : > { %1778 = vmatmul.bf16.gmra.mxu0 %v3475_v30  ;;  %v1475_v5 = vadd.f32 %v1474_v3, %v3300_v33 }
 0x168   : > { %v1558_v8 = vpop.f32.mrf.mxu2 }
 0x169   : > { %v1559_v38 = vadd.f32 %v1558_v8, %v1470_v1 }
 0x16a   : > { %v1647_v35 = vpop.f32.mrf.mxu3 }
 0x16b   : > { %v1648_v26 = vadd.f32 %v1647_v35, %v1559_v38 }
 0x16c   : > { %v1741_v6 = vpop.f32.mrf.mxu0 }
 0x16d   : > { %1600 = vmatmul.bf16.gmra.mxu2 %v3481_v27  ;;  %v3486_v9 = vadd.f32 %v1736_v29, %v1648_v26 }
 0x16e   : > { %v1477_v49 = vpop.f32.mrf.mxu1 }
 0x16f   : > { %1689 = vmatmul.bf16.gmra.mxu3 %v3483_v14  ;;  %v1478_v2 = vadd.f32 %v1477_v49, %v3221_v58 }
 0x170   : > { %v1561_v39 = vpop.f32.mrf.mxu2 }
 0x171   : > { %v1562_v56 = vadd.f32 %v1561_v39, %v1473_v55  ;;  %1792 = vmatmul.bf16.vlgmr.msra.gmra.mxu1 %v3155_v28 }
 0x172   : > { %v1650_v52 = vpop.f32.mrf.mxu3 }
 0x173   : > { %v1651_v7 = vadd.f32 %v1650_v52, %v1562_v56 }
 0x174   : > { %v1744_v17 = vpop.f32.mrf.mxu0 }
 0x175   : > { %v3491_v15 = vadd.f32 %v1739_v61, %v1651_v7 }
 0x176   : > { %v1479_v53 = vpop.f32.mrf.mxu1 }
 0x177   : > { %2059 = vmatmul.bf16.vlgmr.msra.gmra.mxu0 %v3161_v40  ;;  %v1480_v55 = vadd.f32 %v1479_v53, %v3239_v20 }
 0x178   : > { %v1563_v29 = vpop.f32.mrf.mxu2 }
 0x179   : > { %v1564_v25 = vadd.f32 %v1563_v29, %v1475_v5 }
 0x17a   : > { %v1652_v63 = vpop.f32.mrf.mxu3 }
 0x17b   : > { %v1653_v34 = vadd.f32 %v1652_v63, %v1564_v25 }
 0x17c   : > { %v1746_v18 = vpop.f32.mrf.mxu0 }
 0x17d   : > { %1881 = vmatmul.bf16.vlgmr.msra.gmra.mxu2 %v3084_v41  ;;  %v3496_v1 = vadd.f32 %v1741_v6, %v1653_v34 }
 0x17e   : > { %v1482_v28 = vpop.f32.mrf.mxu1 }
 0x17f   : > { %1970 = vmatmul.bf16.vlgmr.msra.gmra.mxu3 %v3131_v13  ;;  %v1483_v56 = vadd.f32 %v1482_v28, %v3255_v42 }
 0x180   : > { %v1566_v61 = vpop.f32.mrf.mxu2 }
 0x181   : > { %v1567_v8 = vadd.f32 %v1566_v61, %v1478_v2  ;;  %1797 = vmatmul.bf16.gmra.mxu1 %v3161_v40 }
 0x182   : > { %v1655_v33 = vpop.f32.mrf.mxu3 }
 0x183   : > { %v1656_v3 = vadd.f32 %v1655_v33, %v1567_v8 }
 0x184   : > { %v1749_v38 = vpop.f32.mrf.mxu0 }
 0x185   : > { %v3501_v35 = vadd.f32 %v1744_v17, %v1656_v3 }
 0x186   : > { %v1484_v26 = vpop.f32.mrf.mxu1 }
 0x187   : > { %2064 = vmatmul.bf16.gmra.mxu0 %v3185_v12  ;;  %v1485_v25 = vadd.f32 %v1484_v26, %v3267_v60 }
 0x188   : > { %v1568_v41 = vpop.f32.mrf.mxu2 }
 0x189   : > { %v1569_v6 = vadd.f32 %v1568_v41, %v1480_v55 }
 0x18a   : > { %v1657_v39 = vpop.f32.mrf.mxu3 }
 0x18b   : > { %v1658_v58 = vadd.f32 %v1657_v39, %v1569_v6 }
 0x18c   : > { %v1751_v49 = vpop.f32.mrf.mxu0 }
 0x18d   : > { %1886 = vmatmul.bf16.gmra.mxu2 %v3114_v37  ;;  %v3506_v13 = vadd.f32 %v1746_v18, %v1658_v58  ;;  %v3741_v58 = vld [vmem:[#allocation11_spill] sm:$0xff] }
 0x18e   : > { %v1487_v40 = vpop.f32.mrf.mxu1 }
 0x18f   : > { %1975 = vmatmul.bf16.gmra.mxu3 %v3143_v22  ;;  %v1488_v28 = vadd.f32 %v1487_v40, %v3285_v4 }
 0x190   : > { %v1571_v52 = vpop.f32.mrf.mxu2 }
 0x191   : > { %v1572_v7 = vadd.f32 %v1571_v52, %v1483_v56  ;;  %1802 = vmatmul.bf16.gmra.mxu1 %v3185_v12 }
 0x192   : > { %v1660_v20 = vpop.f32.mrf.mxu3 }
 0x193   : > { %v1661_v17 = vadd.f32 %v1660_v20, %v1572_v7 }
 0x194   : > { %v1754_v53 = vpop.f32.mrf.mxu0 }
 0x195   : > { %v3511_v5 = vadd.f32 %v1749_v38, %v1661_v17 }
 0x196   : > { %v1489_v29 = vpop.f32.mrf.mxu1 }
 0x197   : > { %2069 = vmatmul.bf16.gmra.mxu0 %v3203_v31  ;;  %v1490_v26 = vadd.f32 %v1489_v29, %v3303_v36 }
 0x198   : > { %v1573_v37 = vpop.f32.mrf.mxu2 }
 0x199   : > { %v1574_v63 = vadd.f32 %v1573_v37, %v1485_v25 }
 0x19a   : > { %v1662_v34 = vpop.f32.mrf.mxu3 }
 0x19b   : > { %v1663_v42 = vadd.f32 %v1662_v34, %v1574_v63  ;;  %v3743_v63 = vld [vmem:[#allocation7_spill] sm:$0xff] }
 0x19c   : > { %v1756_v18 = vpop.f32.mrf.mxu0 }
 0x19d   : > { %1891 = vmatmul.bf16.gmra.mxu2 %v2887_v19  ;;  %v3516_v22 = vadd.f32 %v1751_v49, %v1663_v42  ;;  %v3744_v42 = vld [vmem:[#allocation12_spill] sm:$0xff] }
 0x19e   : > { %v1492_v12 = vpop.f32.mrf.mxu1 }
 0x19f   : > { %1980 = vmatmul.bf16.gmra.mxu3 %v3182_v44  ;;  %v1493_v39 = vadd.f32 %v1492_v12, %v3318_v46  ;;  %v3745_v12 = vld [vmem:[#allocation13_spill] sm:$0xff] }
 0x1a0   : > { %v1576_v2 = vpop.f32.mrf.mxu2 }
 0x1a1   : > { %v1577_v61 = vadd.f32 %v1576_v2, %v1488_v28  ;;  %1807 = vmatmul.bf16.gmra.mxu1 %v3203_v31 }
 0x1a2   : > { %v1665_v60 = vpop.f32.mrf.mxu3 }
 0x1a3   : > { %v1666_v8 = vadd.f32 %v1665_v60, %v1577_v61 }
 0x1a4   : > { %v1759_v33 = vpop.f32.mrf.mxu0 }
 0x1a5   : > { %v3521_v3 = vadd.f32 %v1754_v53, %v1666_v8 }
 0x1a6   : > { %v1494_v38 = vpop.f32.mrf.mxu1 }
 0x1a7   : > { %2074 = vmatmul.bf16.gmra.mxu0 %v3241_v21  ;;  %v1495_v17 = vadd.f32 %v1494_v38, %v3327_v57  ;;  %v3746_v38 = vld [vmem:[#allocation14_spill] sm:$0xff] }
 0x1a8   : > { %v1578_v19 = vpop.f32.mrf.mxu2 }
 0x1a9   : > { %v1579_v55 = vadd.f32 %v1578_v19, %v1490_v26  ;;  %v3747_v19 = vld [vmem:[#allocation21_spill] sm:$0xff] }
 0x1aa   : > { %v1667_v41 = vpop.f32.mrf.mxu3 }
 0x1ab   : > { %v1668_v4 = vadd.f32 %v1667_v41, %v1579_v55 }
 0x1ac   : > { %v1761_v6 = vpop.f32.mrf.mxu0 }
 0x1ad   : > { %1896 = vmatmul.bf16.gmra.mxu2 %v2996_v16  ;;  %v3526_v44 = vadd.f32 %v1756_v18, %v1668_v4  ;;  %v3742_v16 = vld [vmem:[#allocation17_spill] sm:$0xff] }
 0x1ae   : > { %v1497_v31 = vpop.f32.mrf.mxu1 }
 0x1af   : > { %1985 = vmatmul.bf16.gmra.mxu3 %v3741_v58  ;;  %v1498_v18 = vadd.f32 %v1497_v31, %v3744_v42 }
 0x1b0   : > { %v1581_v49 = vpop.f32.mrf.mxu2 }
 0x1b1   : > { %v1582_v40 = vadd.f32 %v1581_v49, %v1493_v39  ;;  %1812 = vmatmul.bf16.gmra.mxu1 %v3241_v21  ;;  %v3748_v39 = vld [vmem:[#allocation9_spill] sm:$0xff] }
 0x1b2   : > { %v1670_v36 = vpop.f32.mrf.mxu3 }
 0x1b3   : > { %v1671_v56 = vadd.f32 %v1670_v36, %v1582_v40  ;;  %v3749_v40 = vld [vmem:[#allocation15_spill] sm:$0xff] }
 0x1b4   : > { %v1764_v52 = vpop.f32.mrf.mxu0 }
 0x1b5   : > { %v3531_v7 = vadd.f32 %v1759_v33, %v1671_v56  ;;  %v3750_v56 = vld [vmem:[#allocation16_spill] sm:$0xff] }
 0x1b6   : > { %v1499_v20 = vpop.f32.mrf.mxu1 }
 0x1b7   : > { %2079 = vmatmul.bf16.gmra.mxu0 %v3742_v16  ;;  %v1500_v26 = vadd.f32 %v1499_v20, %v3746_v38 }
 0x1b8   : > { %v1583_v53 = vpop.f32.mrf.mxu2 }
 0x1b9   : > { %v1584_v29 = vadd.f32 %v1583_v53, %v1495_v17 }
 0x1ba   : > { %v1672_v25 = vpop.f32.mrf.mxu3 }
 0x1bb   : > { %v1673_v46 = vadd.f32 %v1672_v25, %v1584_v29 }
 0x1bc   : > { %v1766_v37 = vpop.f32.mrf.mxu0 }
 0x1bd   : > { %1901 = vmatmul.bf16.gmra.mxu2 %v3743_v63  ;;  %v3536_v34 = vadd.f32 %v1761_v6, %v1673_v46  ;;  %v3751_v46 = vld [vmem:[#allocation18_spill] sm:$0xff] }
 0x1be   : > { %v1502_v21 = vpop.f32.mrf.mxu1 }
 0x1bf   : > { %1990 = vmatmul.bf16.gmra.mxu3 %v3745_v12  ;;  %v1503_v36 = vadd.f32 %v1502_v21, %v3749_v40 }
 0x1c0   : > { %v1586_v28 = vpop.f32.mrf.mxu2 }
 0x1c1   : > { %v1587_v2 = vadd.f32 %v1586_v28, %v1498_v18  ;;  %1817 = vmatmul.bf16.gmra.mxu1 %v3742_v16  ;;  %v3752_v28 = vld [vmem:[#allocation3_spill] sm:$0xff] }
 0x1c2   : > { %v1675_v57 = vpop.f32.mrf.mxu3 }
 0x1c3   : > { %v1676_v61 = vadd.f32 %v1675_v57, %v1587_v2 }
 0x1c4   : > { %v1769_v60 = vpop.f32.mrf.mxu0 }
 0x1c5   : > { %v3541_v8 = vadd.f32 %v1764_v52, %v1676_v61  ;;  %v3753_v61 = vld [vmem:[#allocation19_spill] sm:$0xff] }
 0x1c6   : > { %v1504_v33 = vpop.f32.mrf.mxu1 }
 0x1c7   : > { %2084 = vmatmul.bf16.gmra.mxu0 %v3747_v19  ;;  %v1505_v63 = vadd.f32 %v1504_v33, %v3751_v46 }
 0x1c8   : > { %v1588_v55 = vpop.f32.mrf.mxu2 }
 0x1c9   : > { %v1589_v41 = vadd.f32 %v1588_v55, %v1500_v26  ;;  %v3754_v26 = vld [vmem:[#allocation20_spill] sm:$0xff] }
 0x1ca   : > { %v1677_v4 = vpop.f32.mrf.mxu3 }
 0x1cb   : > { %v1678_v6 = vadd.f32 %v1677_v4, %v1589_v41 }
 0x1cc   : > { %v1771_v31 = vpop.f32.mrf.mxu0 }
 0x1cd   : > { %1906 = vmatmul.bf16.gmra.mxu2 %v3748_v39  ;;  %v3546_v58 = vadd.f32 %v1766_v37, %v1678_v6  ;;  %v3755_v39 = vld [vmem:[#allocation22_spill] sm:$0xff] }
 0x1ce   : > { %v1507_v49 = vpop.f32.mrf.mxu1 }
 0x1cf   : > { %1995 = vmatmul.bf16.gmra.mxu3 %v3750_v56  ;;  %v1508_v38 = vadd.f32 %v1507_v49, %v3753_v61  ;;  %v3759_v61 = vld [vmem:[#allocation25_spill] sm:$0xff] }
 0x1d0   : > { %v1591_v52 = vpop.f32.mrf.mxu2 }
 0x1d1   : > { %v1592_v17 = vadd.f32 %v1591_v52, %v1503_v36  ;;  %1822 = vmatmul.bf16.gmra.mxu1 %v3747_v19 }
 0x1d2   : > { %v1680_v20 = vpop.f32.mrf.mxu3 }
 0x1d3   : > { %v1681_v16 = vadd.f32 %v1680_v20, %v1592_v17  ;;  %v3756_v17 = vld [vmem:[#allocation5_spill] sm:$0xff] }
 0x1d4   : > { %v1774_v53 = vpop.f32.mrf.mxu0 }
 0x1d5   : > { %v3551_v29 = vadd.f32 %v1769_v60, %v1681_v16  ;;  %v3757_v16 = vld [vmem:[#allocation23_spill] sm:$0xff] }
 0x1d6   : > { %v1509_v25 = vpop.f32.mrf.mxu1 }
 0x1d7   : > { %2089 = vmatmul.bf16.gmra.mxu0 %v3329_v51  ;;  %v1510_v40 = vadd.f32 %v1509_v25, %v3755_v39  ;;  %v3761_v39 = vld [vmem:[#allocation26_spill] sm:$0xff] }
 0x1d8   : > { %v1593_v37 = vpop.f32.mrf.mxu2 }
 0x1d9   : > { %v1594_v42 = vadd.f32 %v1593_v37, %v1505_v63  ;;  %v3758_v63 = vld [vmem:[#allocation24_spill] sm:$0xff] }
 0x1da   : > { %v1682_v18 = vpop.f32.mrf.mxu3 }
 0x1db   : > { %v1683_v21 = vadd.f32 %v1682_v18, %v1594_v42 }
 0x1dc   : > { %v1776_v12 = vpop.f32.mrf.mxu0 }
 0x1dd   : > { %1911 = vmatmul.bf16.gmra.mxu2 %v3752_v28  ;;  %v3556_v2 = vadd.f32 %v1771_v31, %v1683_v21 }
 0x1de   : > { %v1512_v57 = vpop.f32.mrf.mxu1 }
 0x1df   : > { %2000 = vmatmul.bf16.gmra.mxu3 %v3754_v26  ;;  %v1513_v46 = vadd.f32 %v1512_v57, %v3757_v16 }
 0x1e0   : > { %v1596_v60 = vpop.f32.mrf.mxu2 }
 0x1e1   : > { %v1597_v19 = vadd.f32 %v1596_v60, %v1508_v38  ;;  %1827 = vmatmul.bf16.gmra.mxu1 %v3329_v51 }
 0x1e2   : > { %v1685_v33 = vpop.f32.mrf.mxu3 }
 0x1e3   : > { %v1686_v55 = vadd.f32 %v1685_v33, %v1597_v19  ;;  %v3760_v33 = vld [vmem:[#allocation8_spill] sm:$0xff] }
 0x1e4   : > { %v1779_v41 = vpop.f32.mrf.mxu0 }
 0x1e5   : > { %v3561_v4 = vadd.f32 %v1774_v53, %v1686_v55 }
 0x1e6   : > { %v1514_v6 = vpop.f32.mrf.mxu1 }
 0x1e7   : > { %2094 = vmatmul.bf16.gmra.mxu0 %v3359_v32  ;;  %v1515_v38 = vadd.f32 %v1514_v6, %v3759_v61 }
 0x1e8   : > { %v1598_v31 = vpop.f32.mrf.mxu2 }
 0x1e9   : > { %v1599_v36 = vadd.f32 %v1598_v31, %v1510_v40 }
 0x1ea   : > { %v1687_v56 = vpop.f32.mrf.mxu3 }
 0x1eb   : > { %v1688_v49 = vadd.f32 %v1687_v56, %v1599_v36 }
 0x1ec   : > { %v1781_v52 = vpop.f32.mrf.mxu0 }
 0x1ed   : > { %1916 = vmatmul.bf16.gmra.mxu2 %v3756_v17  ;;  %v3566_v20 = vadd.f32 %v1776_v12, %v1688_v49  ;;  %v3762_v17 = vld [vmem:[#allocation27_spill] sm:$0xff] }
 0x1ee   : > { %v1793_v51 = vpop.f32.mrf.mxu1 }
 0x1ef   : > { %2005 = vmatmul.bf16.gmra.mxu3 %v3758_v63  ;;  %v1794_v40 = vadd.f32 %v1793_v51, %v3761_v39 }
 0x1f0   : > { %v1601_v53 = vpop.f32.mrf.mxu2 }
 0x1f1   : > { %v1602_v37 = vadd.f32 %v1601_v53, %v1513_v46  ;;  %1832 = vmatmul.bf16.gmra.mxu1 %v3359_v32 }
 0x1f2   : > { %v1690_v25 = vpop.f32.mrf.mxu3 }
 0x1f3   : > { %v1691_v42 = vadd.f32 %v1690_v25, %v1602_v37 }
 0x1f4   : > { %v2060_v18 = vpop.f32.mrf.mxu0 }
 0x1f5   : > { %v3571_v21 = vadd.f32 %v1779_v41, %v1691_v42 }
 0x1f6   : > { %v1795_v28 = vpop.f32.mrf.mxu1 }
 0x1f7   : > { %2099 = vmatmul.bf16.gmra.mxu0 %v3377_v11 }
 0x1f8   : > { %v1603_v12 = vpop.f32.mrf.mxu2 }
 0x1f9   : > { %v1604_v26 = vadd.f32 %v1603_v12, %v1515_v38 }
 0x1fa   : > { %v1692_v57 = vpop.f32.mrf.mxu3 }
 0x1fb   : > { %v1693_v60 = vadd.f32 %v1692_v57, %v1604_v26 }
 0x1fc   : > { %v2062_v19 = vpop.f32.mrf.mxu0 }
 0x1fd   : > { %1921 = vmatmul.bf16.gmra.mxu2 %v3760_v33  ;;  %v3576_v55 = vadd.f32 %v1781_v52, %v1693_v60 }
 0x1fe   : > { %v1798_v32 = vpop.f32.mrf.mxu1 }
 0x1ff   : > { %2010 = vmatmul.bf16.gmra.mxu3 %v3347_v54  ;;  %v1796_v54 = vadd.f32 %v1795_v28, %v3762_v17  ;;  %v1799_v37 = vadd.f32 %v1798_v32, %v3373_v45  ;;  %v3763_v32 = vld [vmem:[#allocation28_spill] sm:$0xff] }
 0x200   : > { %v1882_v41 = vpop.f32.mrf.mxu2 }
 0x201   : > { %v1883_v31 = vadd.f32 %v1882_v41, %v1794_v40  ;;  %1837 = vmatmul.bf16.gmra.mxu1 %v3377_v11 }
 0x202   : > { %v1971_v6 = vpop.f32.mrf.mxu3 }
 0x203   : > { %v1972_v36 = vadd.f32 %v1971_v6, %v1883_v31 }
 0x204   : > { %v2065_v56 = vpop.f32.mrf.mxu0 }
 0x205   : > { %v2061_v49 = vadd.f32 %v2060_v18, %v1972_v36 }
 0x206   : > { %v1800_v52 = vpop.f32.mrf.mxu1 }
 0x207   : > { %2140 = vst [vmem:[%s3586_s25] sm:$0xff] %v2061_v49  ;;  %2104 = vmatmul.bf16.gmra.mxu0 %v3403_v59  ;;  %v2209_v42 = vmul.f32 %v2061_v49, %v2061_v49  ;;  %v1801_v39 = vadd.f32 %v1800_v52, %v3763_v32 }
 0x208   : > { %v1884_v51 = vpop.f32.mrf.mxu2 }
 0x209   : > { %v1885_v11 = vadd.f32 %v1884_v51, %v1796_v54  ;;  %v3765_v51 = vld [vmem:[#allocation30_spill] sm:$0xff] }
 0x20a   : > { %v1973_v16 = vpop.f32.mrf.mxu3 }
 0x20b   : > { %v1974_v46 = vadd.f32 %v1973_v16, %v1885_v11  ;;  %v3766_v16 = vld [vmem:[#allocation29_spill] sm:$0xff] }
 0x20c   : > { %v2067_v63 = vpop.f32.mrf.mxu0 }
 0x20d   : > { %v2063_v53 = vadd.f32 %v2062_v19, %v1974_v46  ;;  %1926 = vmatmul.bf16.gmra.mxu2 %v3117_v50 }
 0x20e   : > { %v1803_v25 = vpop.f32.mrf.mxu1 }
 0x20f   : > { %2141 = vst [vmem:[%s3586_s25 + $0x8] sm:$0xff] %v2063_v53  ;;  %v2172_v18 = vadd.f32 %v2063_v53, %v2061_v49  ;;  %v2210_v61 = vmul.f32 %v2063_v53, %v2063_v53  ;;  %2015 = vmatmul.bf16.gmra.mxu3 %v3371_v48  ;;  %v3764_v49 = vld [vmem:[#allocation4_spill] sm:$0xff]  ;;  %v1804_v11 = vadd.f32 %v1803_v25, %v3765_v51 }
 0x210   : > { %v1887_v28 = vpop.f32.mrf.mxu2 }
 0x211   : > { %v2241_v38 = vadd.f32 %v2210_v61, %v2209_v42  ;;  %v1888_v12 = vadd.f32 %v1887_v28, %v1799_v37  ;;  %1842 = vmatmul.bf16.gmra.mxu1 %v3403_v59 }
 0x212   : > { %v1976_v26 = vpop.f32.mrf.mxu3 }
 0x213   : > { %v1977_v57 = vadd.f32 %v1976_v26, %v1888_v12  ;;  %v3767_v12 = vld [vmem:[#allocation31_spill] sm:$0xff] }
 0x214   : > { %v2070_v60 = vpop.f32.mrf.mxu0 }
 0x215   : > { %v2066_v19 = vadd.f32 %v2065_v56, %v1977_v57 }
 0x216   : > { %v1805_v50 = vpop.f32.mrf.mxu1 }
 0x217   : > { %2142 = vst [vmem:[%s3586_s25 + $0x10] sm:$0xff] %v2066_v19  ;;  %v2173_v45 = vadd.f32 %v2172_v18, %v2066_v19  ;;  %v2211_v33 = vmul.f32 %v2066_v19, %v2066_v19  ;;  %2109 = vmatmul.bf16.gmra.mxu0 %v3415_v47  ;;  %v1806_v26 = vadd.f32 %v1805_v50, %v3767_v12 }
 0x218   : > { %v1889_v40 = vpop.f32.mrf.mxu2 }
 0x219   : > { %v2242_v48 = vadd.f32 %v2241_v38, %v2211_v33  ;;  %v1890_v41 = vadd.f32 %v1889_v40, %v1801_v39  ;;  %v3768_v39 = vld [vmem:[#allocation6_spill] sm:$0xff] }
 0x21a   : > { %v1978_v31 = vpop.f32.mrf.mxu3 }
 0x21b   : > { %v1979_v6 = vadd.f32 %v1978_v31, %v1890_v41  ;;  %v3769_v41 = vld [vmem:[#allocation33_spill] sm:$0xff] }
 0x21c   : > { %v2072_v36 = vpop.f32.mrf.mxu0 }
 0x21d   : > { %v2068_v59 = vadd.f32 %v2067_v63, %v1979_v6  ;;  %1931 = vmatmul.bf16.gmra.mxu2 %v3764_v49  ;;  %v3770_v6 = vld [vmem:[#allocation32_spill] sm:$0xff] }
 0x21e   : > { %v1808_v56 = vpop.f32.mrf.mxu1 }
 0x21f   : > { %2143 = vst [vmem:[%s3586_s25 + $0x18] sm:$0xff] %v2068_v59  ;;  %v2174_v17 = vadd.f32 %v2173_v45, %v2068_v59  ;;  %v2212_v54 = vmul.f32 %v2068_v59, %v2068_v59  ;;  %2020 = vmatmul.bf16.gmra.mxu3 %v3766_v16  ;;  %v1809_v31 = vadd.f32 %v1808_v56, %v3769_v41  ;;  %v3773_v41 = vld [vmem:[#allocation36_spill] sm:$0xff] }
 0x220   : > { %v1892_v52 = vpop.f32.mrf.mxu2 }
 0x221   : > { %v2243_v46 = vadd.f32 %v2242_v48, %v2212_v54  ;;  %v1893_v53 = vadd.f32 %v1892_v52, %v1804_v11  ;;  %1847 = vmatmul.bf16.gmra.mxu1 %v3415_v47 }
 0x222   : > { %v1981_v37 = vpop.f32.mrf.mxu3 }
 0x223   : > { %v1982_v42 = vadd.f32 %v1981_v37, %v1893_v53 }
 0x224   : > { %v2075_v18 = vpop.f32.mrf.mxu0 }
 0x225   : > { %v2071_v63 = vadd.f32 %v2070_v60, %v1982_v42 }
 0x226   : > { %v1810_v61 = vpop.f32.mrf.mxu1 }
 0x227   : > { %2144 = vst [vmem:[%s3586_s25 + $0x20] sm:$0xff] %v2071_v63  ;;  %v2175_v28 = vadd.f32 %v2174_v17, %v2071_v63  ;;  %v2213_v38 = vmul.f32 %v2071_v63, %v2071_v63  ;;  %2114 = vmatmul.bf16.gmra.mxu0 %v3449_v43 }
 0x228   : > { %v1894_v25 = vpop.f32.mrf.mxu2 }
 0x229   : > { %v2244_v57 = vadd.f32 %v2243_v46, %v2213_v38  ;;  %v1895_v19 = vadd.f32 %v1894_v25, %v1806_v26  ;;  %v3771_v46 = vld [vmem:[#allocation34_spill] sm:$0xff]  ;;  %v3772_v25 = vld [vmem:[#allocation35_spill] sm:$0xff] }
 0x22a   : > { %v1983_v45 = vpop.f32.mrf.mxu3  ;;  %v1811_v53 = vadd.f32 %v1810_v61, %v3771_v46 }
 0x22b   : > { %v1984_v33 = vadd.f32 %v1983_v45, %v1895_v19 }
 0x22c   : > { %v2077_v32 = vpop.f32.mrf.mxu0 }
 0x22d   : > { %v2073_v47 = vadd.f32 %v2072_v36, %v1984_v33  ;;  %1936 = vmatmul.bf16.gmra.mxu2 %v3768_v39 }
 0x22e   : > { %v1813_v60 = vpop.f32.mrf.mxu1 }
 0x22f   : > { %2145 = vst [vmem:[%s3586_s25 + $0x28] sm:$0xff] %v2073_v47  ;;  %v2176_v40 = vadd.f32 %v2175_v28, %v2073_v47  ;;  %v2214_v48 = vmul.f32 %v2073_v47, %v2073_v47  ;;  %2025 = vmatmul.bf16.gmra.mxu3 %v3770_v6  ;;  %v582_v6 = vld [vmem:[#allocation2 + $0x172] sm:$0xff] }
 0x230   : > { %v1897_v50 = vpop.f32.mrf.mxu2 }
 0x231   : > { %v2245_v59 = vadd.f32 %v2244_v57, %v2214_v48  ;;  %v1898_v49 = vadd.f32 %v1897_v50, %v1809_v31  ;;  %1852 = vmatmul.bf16.gmra.mxu1 %v3449_v43  ;;  %v1814_v57 = vadd.f32 %v1813_v60, %v3772_v25  ;;  %v581_v60 = vld [vmem:[#allocation2 + $0x16a] sm:$0xff] }
 0x232   : > { %v1986_v17 = vpop.f32.mrf.mxu3 }
 0x233   : > { %v1987_v54 = vadd.f32 %v1986_v17, %v1898_v49 }
 0x234   : > { %v2080_v51 = vpop.f32.mrf.mxu0 }
 0x235   : > { %v2076_v36 = vadd.f32 %v2075_v18, %v1987_v54  ;;  %v614_v54 = vpack.c.bf16 %v582_v6, %v582_v6 }
 0x236   : > { %v1815_v11 = vpop.f32.mrf.mxu1 }
 0x237   : > { %2146 = vst [vmem:[%s3586_s25 + $0x30] sm:$0xff] %v2076_v36  ;;  %v2177_v16 = vadd.f32 %v2176_v40, %v2076_v36  ;;  %v2215_v52 = vmul.f32 %v2076_v36, %v2076_v36  ;;  %2119 = vmatmul.bf16.gmra.mxu0 %v3463_v23  ;;  %v1816_v31 = vadd.f32 %v1815_v11, %v3773_v41 }
 0x238   : > { %v1899_v56 = vpop.f32.mrf.mxu2 }
 0x239   : > { %v2246_v37 = vadd.f32 %v2245_v59, %v2215_v52  ;;  %v1900_v42 = vadd.f32 %v1899_v56, %v1811_v53  ;;  %v3775_v56 = vld [vmem:[#allocation37_spill] sm:$0xff] }
 0x23a   : > { %v1988_v63 = vpop.f32.mrf.mxu3 }
 0x23b   : > { %v1989_v28 = vadd.f32 %v1988_v63, %v1900_v42  ;;  %v900_v42 = vunpack.c.l.b16 %v614_v54 }
 0x23c   : > { %v2082_v38 = vpop.f32.mrf.mxu0 }
 0x23d   : > { %v2078_v43 = vadd.f32 %v2077_v32, %v1989_v28  ;;  %1941 = vmatmul.bf16.gmra.mxu2 %v3095_v10 }
 0x23e   : > { %v1818_v18 = vpop.f32.mrf.mxu1 }
 0x23f   : > { %2147 = vst [vmem:[%s3586_s25 + $0x38] sm:$0xff] %v2078_v43  ;;  %v2178_v12 = vadd.f32 %v2177_v16, %v2078_v43  ;;  %v2216_v26 = vmul.f32 %v2078_v43, %v2078_v43  ;;  %2030 = vmatmul.bf16.gmra.mxu3 %v3437_v62  ;;  %v3774_v16 = vld [vmem:[#allocation10_spill] sm:$0xff] }
 0x240   : > { %v1902_v61 = vpop.f32.mrf.mxu2 }
 0x241   : > { %v2247_v19 = vadd.f32 %v2246_v37, %v2216_v26  ;;  %v1903_v45 = vadd.f32 %v1902_v61, %v1814_v57  ;;  %1857 = vmatmul.bf16.gmra.mxu1 %v3463_v23  ;;  %v613_v23 = vpack.c.bf16 %v581_v60, %v581_v60  ;;  %v1819_v37 = vadd.f32 %v1818_v18, %v3775_v56 }
 0x242   : > { %v1991_v33 = vpop.f32.mrf.mxu3 }
 0x243   : > { %v1992_v47 = vadd.f32 %v1991_v33, %v1903_v45  ;;  %v899_v46 = vunpack.c.l.b16 %v613_v23  ;;  %v3776_v33 = vld [vmem:[#allocation38_spill] sm:$0xff] }
 0x244   : > { %v2085_v39 = vpop.f32.mrf.mxu0 }
 0x245   : > { %v2081_v32 = vadd.f32 %v2080_v51, %v1992_v47  ;;  %v901_v26 = vpack.c.b16 %v900_v42, %v899_v46 }
 0x246   : > { %v1820_v40 = vpop.f32.mrf.mxu1 }
 0x247   : > { %2148 = vst [vmem:[%s3586_s25 + $0x40] sm:$0xff] %v2081_v32  ;;  %v2179_v10 = vadd.f32 %v2178_v12, %v2081_v32  ;;  %v2217_v48 = vmul.f32 %v2081_v32, %v2081_v32  ;;  %2124 = vmatmul.bf16.gmra.mxu0 %v3481_v27  ;;  %v1821_v18 = vadd.f32 %v1820_v40, %v3776_v33 }
 0x248   : > { %v1904_v62 = vpop.f32.mrf.mxu2 }
 0x249   : > { %v2248_v50 = vadd.f32 %v2247_v19, %v2217_v48  ;;  %v1905_v59 = vadd.f32 %v1904_v62, %v1816_v31 }
 0x24a   : > { %v1993_v49 = vpop.f32.mrf.mxu3 }
 0x24b   : > { %v1994_v17 = vadd.f32 %v1993_v49, %v1905_v59  ;;  %v3777_v59 = vmov 0  }
 0x24c   : > { %v2087_v36 = vpop.f32.mrf.mxu0  ;;  %v904_v49 = vunpack.c.l.b16 %v3777_v59 }
 0x24d   : > { %v2083_v51 = vadd.f32 %v2082_v38, %v1994_v17  ;;  %1946 = vmatmul.bf16.gmra.mxu2 %v3774_v16 }
 0x24e   : > { %v1823_v52 = vpop.f32.mrf.mxu1 }
 0x24f   : > { %2149 = vst [vmem:[%s3586_s25 + $0x48] sm:$0xff] %v2083_v51  ;;  %v2180_v11 = vadd.f32 %v2179_v10, %v2083_v51  ;;  %v2218_v53 = vmul.f32 %v2083_v51, %v2083_v51  ;;  %2035 = vmatmul.bf16.gmra.mxu3 %v3457_v24  ;;  %v1824_v62 = vadd.f32 %v1823_v52, %v3477_v0 }
 0x250   : > { %v1907_v63 = vpop.f32.mrf.mxu2 }
 0x251   : > { %v2249_v28 = vadd.f32 %v2248_v50, %v2218_v53  ;;  %v1908_v43 = vadd.f32 %v1907_v63, %v1819_v37  ;;  %1862 = vmatmul.bf16.gmra.mxu1 %v3481_v27 }
 0x252   : > { %v1996_v12 = vpop.f32.mrf.mxu3 }
 0x253   : > { %v1997_v38 = vadd.f32 %v1996_v12, %v1908_v43 }
 0x254   : > { %v2090_v25 = vpop.f32.mrf.mxu0 }
 0x255   : > { %v2086_v57 = vadd.f32 %v2085_v39, %v1997_v38 }
 0x256   : > { %v1825_v61 = vpop.f32.mrf.mxu1 }
 0x257   : > { %2150 = vst [vmem:[%s3586_s25 + $0x50] sm:$0xff] %v2086_v57  ;;  %v2181_v19 = vadd.f32 %v2180_v11, %v2086_v57  ;;  %v2219_v45 = vmul.f32 %v2086_v57, %v2086_v57  ;;  %2129 = vmatmul.bf16.gmra.mxu0 %v901_v26  ;;  %v1826_v0 = vadd.f32 %v1825_v61, %v3486_v9 }
 0x258   : > { %v1909_v24 = vpop.f32.mrf.mxu2 }
 0x259   : > { %v2250_v47 = vadd.f32 %v2249_v28, %v2219_v45  ;;  %v1910_v32 = vadd.f32 %v1909_v24, %v1821_v18 }
 0x25a   : > { %v1998_v10 = vpop.f32.mrf.mxu3 }
 0x25b   : > { %v1999_v48 = vadd.f32 %v1998_v10, %v1910_v32 }
 0x25c   : > { %v2092_v41 = vpop.f32.mrf.mxu0 }
 0x25d   : > { %v2088_v27 = vadd.f32 %v2087_v36, %v1999_v48  ;;  %1951 = vmatmul.bf16.gmra.mxu2 %v3483_v14  ;;  %v905_v14 = vpack.c.b16 %v904_v49, %v904_v49 }
 0x25e   : > { %v1828_v31 = vpop.f32.mrf.mxu1 }
 0x25f   : > { %2151 = vst [vmem:[%s3586_s25 + $0x58] sm:$0xff] %v2088_v27  ;;  %v2182_v39 = vadd.f32 %v2181_v19, %v2088_v27  ;;  %v2220_v60 = vmul.f32 %v2088_v27, %v2088_v27  ;;  %2040 = vmatmul.bf16.gmra.mxu3 %v3475_v30  ;;  %v1829_v12 = vadd.f32 %v1828_v31, %v3491_v15 }
 0x260   : > { %v1912_v40 = vpop.f32.mrf.mxu2 }
 0x261   : > { %v2251_v6 = vadd.f32 %v2250_v47, %v2220_v60  ;;  %v1913_v50 = vadd.f32 %v1912_v40, %v1824_v62  ;;  %1867 = vmatmul.bf16.gmra.mxu1 %v901_v26 }
 0x262   : > { %v2001_v23 = vpop.f32.mrf.mxu3 }
 0x263   : > { %v2002_v17 = vadd.f32 %v2001_v23, %v1913_v50 }
 0x264   : > { %v2095_v54 = vpop.f32.mrf.mxu0 }
 0x265   : > { %v2091_v36 = vadd.f32 %v2090_v25, %v2002_v17 }
 0x266   : > { %v1830_v51 = vpop.f32.mrf.mxu1 }
 0x267   : > { %2152 = vst [vmem:[%s3586_s25 + $0x60] sm:$0xff] %v2091_v36  ;;  %v2183_v16 = vadd.f32 %v2182_v39, %v2091_v36  ;;  %v2221_v46 = vmul.f32 %v2091_v36, %v2091_v36  ;;  %2134 = vmatmul.bf16.gmra.mxu0 %v905_v14  ;;  %v1831_v24 = vadd.f32 %v1830_v51, %v3496_v1 }
 0x268   : > { %v1914_v30 = vpop.f32.mrf.mxu2 }
 0x269   : > { %v2252_v52 = vadd.f32 %v2251_v6, %v2221_v46  ;;  %v1915_v11 = vadd.f32 %v1914_v30, %v1826_v0 }
 0x26a   : > { %v2003_v53 = vpop.f32.mrf.mxu3 }
 0x26b   : > { %v2004_v56 = vadd.f32 %v2003_v53, %v1915_v11 }
 0x26c   : > { %v2097_v37 = vpop.f32.mrf.mxu0 }
 0x26d   : > { %v2093_v42 = vadd.f32 %v2092_v41, %v2004_v56  ;;  %1956 = vmatmul.bf16.gmra.mxu2 %v905_v14 }
 0x26e   : > { %v1833_v63 = vpop.f32.mrf.mxu1 }
 0x26f   : > { %2153 = vst [vmem:[%s3586_s25 + $0x68] sm:$0xff] %v2093_v42  ;;  %v2184_v28 = vadd.f32 %v2183_v16, %v2093_v42  ;;  %v2222_v43 = vmul.f32 %v2093_v42, %v2093_v42  ;;  %2045 = vmatmul.bf16.gmra.mxu3 %v905_v14  ;;  %v1834_v62 = vadd.f32 %v1833_v63, %v3501_v35 }
 0x270   : > { %v1917_v38 = vpop.f32.mrf.mxu2 }
 0x271   : > { %v2253_v26 = vadd.f32 %v2252_v52, %v2222_v43  ;;  %v1918_v9 = vadd.f32 %v1917_v38, %v1829_v12 }
 0x272   : > { %v2006_v25 = vpop.f32.mrf.mxu3 }
 0x273   : > { %v2007_v57 = vadd.f32 %v2006_v25, %v1918_v9 }
 0x274   : > { %v2100_v61 = vpop.f32.mrf.mxu0 }
 0x275   : > { %v2096_v19 = vadd.f32 %v2095_v54, %v2007_v57 }
 0x276   : > { %v1835_v45 = vpop.f32.mrf.mxu1 }
 0x277   : > { %2154 = vst [vmem:[%s3586_s25 + $0x70] sm:$0xff] %v2096_v19  ;;  %v2185_v33 = vadd.f32 %v2184_v28, %v2096_v19  ;;  %v2223_v18 = vmul.f32 %v2096_v19, %v2096_v19  ;;  %v1836_v14 = vadd.f32 %v1835_v45, %v3506_v13 }
 0x278   : > { %v1919_v47 = vpop.f32.mrf.mxu2 }
 0x279   : > { %v2254_v32 = vadd.f32 %v2253_v26, %v2223_v18  ;;  %v1920_v10 = vadd.f32 %v1919_v47, %v1831_v24 }
 0x27a   : > { %v2008_v48 = vpop.f32.mrf.mxu3 }
 0x27b   : > { %v2009_v15 = vadd.f32 %v2008_v48, %v1920_v10 }
 0x27c   : > { %v2102_v41 = vpop.f32.mrf.mxu0 }
 0x27d   : > { %v2098_v27 = vadd.f32 %v2097_v37, %v2009_v15 }
 0x27e   : > { %v1838_v31 = vpop.f32.mrf.mxu1 }
 0x27f   : > { %2155 = vst [vmem:[%s3586_s25 + $0x78] sm:$0xff] %v2098_v27  ;;  %v2186_v39 = vadd.f32 %v2185_v33, %v2098_v27  ;;  %v2224_v60 = vmul.f32 %v2098_v27, %v2098_v27  ;;  %v1839_v37 = vadd.f32 %v1838_v31, %v3511_v5 }
 0x280   : > { %v1922_v40 = vpop.f32.mrf.mxu2 }
 0x281   : > { %v2255_v6 = vadd.f32 %v2254_v32, %v2224_v60  ;;  %v1923_v50 = vadd.f32 %v1922_v40, %v1834_v62 }
 0x282   : > { %v2011_v59 = vpop.f32.mrf.mxu3 }
 0x283   : > { %v2012_v49 = vadd.f32 %v2011_v59, %v1923_v50 }
 0x284   : > { %v2105_v1 = vpop.f32.mrf.mxu0 }
 0x285   : > { %v2101_v23 = vadd.f32 %v2100_v61, %v2012_v49 }
 0x286   : > { %v1840_v17 = vpop.f32.mrf.mxu1 }
 0x287   : > { %2156 = vst [vmem:[%s3586_s25 + $0x80] sm:$0xff] %v2101_v23  ;;  %v2187_v54 = vadd.f32 %v2186_v39, %v2101_v23  ;;  %v2225_v36 = vmul.f32 %v2101_v23, %v2101_v23  ;;  %v1841_v57 = vadd.f32 %v1840_v17, %v3516_v22 }
 0x288   : > { %v1924_v51 = vpop.f32.mrf.mxu2 }
 0x289   : > { %v2256_v16 = vadd.f32 %v2255_v6, %v2225_v36  ;;  %v1925_v46 = vadd.f32 %v1924_v51, %v1836_v14 }
 0x28a   : > { %v2013_v0 = vpop.f32.mrf.mxu3 }
 0x28b   : > { %v2014_v30 = vadd.f32 %v2013_v0, %v1925_v46 }
 0x28c   : > { %v2107_v35 = vpop.f32.mrf.mxu0 }
 0x28d   : > { %v2103_v52 = vadd.f32 %v2102_v41, %v2014_v30 }
 0x28e   : > { %v1843_v11 = vpop.f32.mrf.mxu1 }
 0x28f   : > { %2157 = vst [vmem:[%s3586_s25 + $0x88] sm:$0xff] %v2103_v52  ;;  %v2188_v53 = vadd.f32 %v2187_v54, %v2103_v52  ;;  %v2226_v56 = vmul.f32 %v2103_v52, %v2103_v52  ;;  %v1844_v48 = vadd.f32 %v1843_v11, %v3521_v3 }
 0x290   : > { %v1927_v42 = vpop.f32.mrf.mxu2 }
 0x291   : > { %v2257_v63 = vadd.f32 %v2256_v16, %v2226_v56  ;;  %v1928_v28 = vadd.f32 %v1927_v42, %v1839_v37 }
 0x292   : > { %v2016_v43 = vpop.f32.mrf.mxu3 }
 0x293   : > { %v2017_v12 = vadd.f32 %v2016_v43, %v1928_v28 }
 0x294   : > { %v2110_v13 = vpop.f32.mrf.mxu0 }
 0x295   : > { %v2106_v38 = vadd.f32 %v2105_v1, %v2017_v12 }
 0x296   : > { %v1845_v26 = vpop.f32.mrf.mxu1 }
 0x297   : > { %2158 = vst [vmem:[%s3586_s25 + $0x90] sm:$0xff] %v2106_v38  ;;  %v2189_v9 = vadd.f32 %v2188_v53, %v2106_v38  ;;  %v2227_v25 = vmul.f32 %v2106_v38, %v2106_v38  ;;  %v1846_v50 = vadd.f32 %v1845_v26, %v3526_v44 }
 0x298   : > { %v1929_v61 = vpop.f32.mrf.mxu2 }
 0x299   : > { %v2258_v19 = vadd.f32 %v2257_v63, %v2227_v25  ;;  %v1930_v45 = vadd.f32 %v1929_v61, %v1841_v57 }
 0x29a   : > { %v2018_v33 = vpop.f32.mrf.mxu3 }
 0x29b   : > { %v2019_v18 = vadd.f32 %v2018_v33, %v1930_v45 }
 0x29c   : > { %v2112_v5 = vpop.f32.mrf.mxu0 }
 0x29d   : > { %v2108_v24 = vadd.f32 %v2107_v35, %v2019_v18 }
 0x29e   : > { %v1848_v47 = vpop.f32.mrf.mxu1 }
 0x29f   : > { %2159 = vst [vmem:[%s3586_s25 + $0x98] sm:$0xff] %v2108_v24  ;;  %v2190_v32 = vadd.f32 %v2189_v9, %v2108_v24  ;;  %v2228_v10 = vmul.f32 %v2108_v24, %v2108_v24  ;;  %v1849_v16 = vadd.f32 %v1848_v47, %v3531_v7 }
 0x2a0   : > { %v1932_v15 = vpop.f32.mrf.mxu2 }
 0x2a1   : > { %v2259_v41 = vadd.f32 %v2258_v19, %v2228_v10  ;;  %v1933_v27 = vadd.f32 %v1932_v15, %v1844_v48 }
 0x2a2   : > { %v2021_v31 = vpop.f32.mrf.mxu3 }
 0x2a3   : > { %v2022_v39 = vadd.f32 %v2021_v31, %v1933_v27 }
 0x2a4   : > { %v2115_v22 = vpop.f32.mrf.mxu0 }
 0x2a5   : > { %v2111_v60 = vadd.f32 %v2110_v13, %v2022_v39 }
 0x2a6   : > { %v1850_v62 = vpop.f32.mrf.mxu1 }
 0x2a7   : > { %2160 = vst [vmem:[%s3586_s25 + $0xa0] sm:$0xff] %v2111_v60  ;;  %v2191_v40 = vadd.f32 %v2190_v32, %v2111_v60  ;;  %v2229_v6 = vmul.f32 %v2111_v60, %v2111_v60  ;;  %v1851_v37 = vadd.f32 %v1850_v62, %v3536_v34 }
 0x2a8   : > { %v1934_v59 = vpop.f32.mrf.mxu2 }
 0x2a9   : > { %v2260_v49 = vadd.f32 %v2259_v41, %v2229_v6  ;;  %v1935_v1 = vadd.f32 %v1934_v59, %v1846_v50 }
 0x2aa   : > { %v2023_v23 = vpop.f32.mrf.mxu3 }
 0x2ab   : > { %v2024_v3 = vadd.f32 %v2023_v23, %v1935_v1 }
 0x2ac   : > { %v2117_v17 = vpop.f32.mrf.mxu0 }
 0x2ad   : > { %v2113_v54 = vadd.f32 %v2112_v5, %v2024_v3 }
 0x2ae   : > { %v1853_v36 = vpop.f32.mrf.mxu1 }
 0x2af   : > { %2161 = vst [vmem:[%s3586_s25 + $0xa8] sm:$0xff] %v2113_v54  ;;  %v2192_v14 = vadd.f32 %v2191_v40, %v2113_v54  ;;  %v2230_v51 = vmul.f32 %v2113_v54, %v2113_v54  ;;  %v1854_v9 = vadd.f32 %v1853_v36, %v3541_v8 }
 0x2b0   : > { %v1937_v46 = vpop.f32.mrf.mxu2 }
 0x2b1   : > { %v2261_v0 = vadd.f32 %v2260_v49, %v2230_v51  ;;  %v1938_v30 = vadd.f32 %v1937_v46, %v1849_v16 }
 0x2b2   : > { %v2026_v35 = vpop.f32.mrf.mxu3 }
 0x2b3   : > { %v2027_v44 = vadd.f32 %v2026_v35, %v1938_v30 }
 0x2b4   : > { %v2120_v11 = vpop.f32.mrf.mxu0 }
 0x2b5   : > { %v2116_v52 = vadd.f32 %v2115_v22, %v2027_v44 }
 0x2b6   : > { %v1855_v63 = vpop.f32.mrf.mxu1 }
 0x2b7   : > { %2162 = vst [vmem:[%s3586_s25 + $0xb0] sm:$0xff] %v2116_v52  ;;  %v2193_v53 = vadd.f32 %v2192_v14, %v2116_v52  ;;  %v2231_v56 = vmul.f32 %v2116_v52, %v2116_v52  ;;  %v1856_v47 = vadd.f32 %v1855_v63, %v3546_v58 }
 0x2b8   : > { %v1939_v42 = vpop.f32.mrf.mxu2 }
 0x2b9   : > { %v2262_v28 = vadd.f32 %v2261_v0, %v2231_v56  ;;  %v1940_v43 = vadd.f32 %v1939_v42, %v1851_v37 }
 0x2ba   : > { %v2028_v12 = vpop.f32.mrf.mxu3 }
 0x2bb   : > { %v2029_v7 = vadd.f32 %v2028_v12, %v1940_v43 }
 0x2bc   : > { %v2122_v57 = vpop.f32.mrf.mxu0 }
 0x2bd   : > { %v2118_v13 = vadd.f32 %v2117_v17, %v2029_v7 }
 0x2be   : > { %v1858_v34 = vpop.f32.mrf.mxu1 }
 0x2bf   : > { %2163 = vst [vmem:[%s3586_s25 + $0xb8] sm:$0xff] %v2118_v13  ;;  %v2194_v38 = vadd.f32 %v2193_v53, %v2118_v13  ;;  %v2232_v26 = vmul.f32 %v2118_v13, %v2118_v13  ;;  %v1859_v60 = vadd.f32 %v1858_v34, %v3551_v29 }
 0x2c0   : > { %v1942_v25 = vpop.f32.mrf.mxu2 }
 0x2c1   : > { %v2263_v61 = vadd.f32 %v2262_v28, %v2232_v26  ;;  %v1943_v19 = vadd.f32 %v1942_v25, %v1854_v9 }
 0x2c2   : > { %v2031_v45 = vpop.f32.mrf.mxu3 }
 0x2c3   : > { %v2032_v33 = vadd.f32 %v2031_v45, %v1943_v19 }
 0x2c4   : > { %v2125_v41 = vpop.f32.mrf.mxu0 }
 0x2c5   : > { %v2121_v18 = vadd.f32 %v2120_v11, %v2032_v33 }
 0x2c6   : > { %v1860_v27 = vpop.f32.mrf.mxu1 }
 0x2c7   : > { %2164 = vst [vmem:[%s3586_s25 + $0xc0] sm:$0xff] %v2121_v18  ;;  %v2195_v5 = vadd.f32 %v2194_v38, %v2121_v18  ;;  %v2233_v24 = vmul.f32 %v2121_v18, %v2121_v18  ;;  %v1861_v17 = vadd.f32 %v1860_v27, %v3556_v2 }
 0x2c8   : > { %v1944_v32 = vpop.f32.mrf.mxu2 }
 0x2c9   : > { %v2264_v10 = vadd.f32 %v2263_v61, %v2233_v24  ;;  %v1945_v48 = vadd.f32 %v1944_v32, %v1856_v47 }
 0x2ca   : > { %v2033_v15 = vpop.f32.mrf.mxu3 }
 0x2cb   : > { %v2034_v8 = vadd.f32 %v2033_v15, %v1945_v48 }
 0x2cc   : > { %v2127_v59 = vpop.f32.mrf.mxu0 }
 0x2cd   : > { %v2123_v31 = vadd.f32 %v2122_v57, %v2034_v8 }
 0x2ce   : > { %v1863_v1 = vpop.f32.mrf.mxu1 }
 0x2cf   : > { %2165 = vst [vmem:[%s3586_s25 + $0xc8] sm:$0xff] %v2123_v31  ;;  %v2196_v39 = vadd.f32 %v2195_v5, %v2123_v31  ;;  %v2234_v22 = vmul.f32 %v2123_v31, %v2123_v31  ;;  %v1864_v35 = vadd.f32 %v1863_v1, %v3561_v4 }
 0x2d0   : > { %v1947_v62 = vpop.f32.mrf.mxu2 }
 0x2d1   : > { %v2265_v40 = vadd.f32 %v2264_v10, %v2234_v22  ;;  %v1948_v6 = vadd.f32 %v1947_v62, %v1859_v60 }
 0x2d2   : > { %v2036_v50 = vpop.f32.mrf.mxu3 }
 0x2d3   : > { %v2037_v58 = vadd.f32 %v2036_v50, %v1948_v6 }
 0x2d4   : > { %v2130_v46 = vpop.f32.mrf.mxu0 }
 0x2d5   : > { %v2126_v49 = vadd.f32 %v2125_v41, %v2037_v58 }
 0x2d6   : > { %v1865_v52 = vpop.f32.mrf.mxu1 }
 0x2d7   : > { %2166 = vst [vmem:[%s3586_s25 + $0xd0] sm:$0xff] %v2126_v49  ;;  %v2197_v23 = vadd.f32 %v2196_v39, %v2126_v49  ;;  %v2235_v3 = vmul.f32 %v2126_v49, %v2126_v49  ;;  %v1866_v28 = vadd.f32 %v1865_v52, %v3566_v20 }
 0x2d8   : > { %v1949_v54 = vpop.f32.mrf.mxu2 }
 0x2d9   : > { %v2266_v36 = vadd.f32 %v2265_v40, %v2235_v3  ;;  %v1950_v14 = vadd.f32 %v1949_v54, %v1861_v17 }
 0x2da   : > { %v2038_v51 = vpop.f32.mrf.mxu3 }
 0x2db   : > { %v2039_v29 = vadd.f32 %v2038_v51, %v1950_v14 }
 0x2dc   : > { %v2132_v43 = vpop.f32.mrf.mxu0 }
 0x2dd   : > { %v2128_v16 = vadd.f32 %v2127_v59, %v2039_v29 }
 0x2de   : > { %v1868_v4 = vpop.f32.mrf.mxu1 }
 0x2df   : > { %2167 = vst [vmem:[%s3586_s25 + $0xd8] sm:$0xff] %v2128_v16  ;;  %v2198_v0 = vadd.f32 %v2197_v23, %v2128_v16  ;;  %v2236_v30 = vmul.f32 %v2128_v16, %v2128_v16  ;;  %v1869_v61 = vadd.f32 %v1868_v4, %v3571_v21 }
 0x2e0   : > { %v1952_v44 = vpop.f32.mrf.mxu2 }
 0x2e1   : > { %v2267_v11 = vadd.f32 %v2266_v36, %v2236_v30  ;;  %v1953_v53 = vadd.f32 %v1952_v44, %v1864_v35 }
 0x2e2   : > { %v2041_v56 = vpop.f32.mrf.mxu3 }
 0x2e3   : > { %v2042_v2 = vadd.f32 %v2041_v56, %v1953_v53 }
 0x2e4   : > { %v2135_v33 = vpop.f32.mrf.mxu0 }
 0x2e5   : > { %v2131_v37 = vadd.f32 %v2130_v46, %v2042_v2 }
 0x2e6   : > { %v1870_v5 = vpop.f32.mrf.mxu1 }
 0x2e7   : > { %2168 = vst [vmem:[%s3586_s25 + $0xe0] sm:$0xff] %v2131_v37  ;;  %v2199_v42 = vadd.f32 %v2198_v0, %v2131_v37  ;;  %v2237_v63 = vmul.f32 %v2131_v37, %v2131_v37  ;;  %v1871_v10 = vadd.f32 %v1870_v5, %v3576_v55 }
 0x2e8   : > { %v1954_v12 = vpop.f32.mrf.mxu2 }
 0x2e9   : > { %v2268_v7 = vadd.f32 %v2267_v11, %v2237_v63  ;;  %v1955_v13 = vadd.f32 %v1954_v12, %v1866_v28 }
 0x2ea   : > { %v2043_v38 = vpop.f32.mrf.mxu3 }
 0x2eb   : > { %v2044_v26 = vadd.f32 %v2043_v38, %v1955_v13 }
 0x2ec   : > { %v2137_v21 = vpop.f32.mrf.mxu0 }
 0x2ed   : > { %v2133_v9 = vadd.f32 %v2132_v43, %v2044_v26 }
 0x2ef   : > { %2169 = vst [vmem:[%s3586_s25 + $0xe8] sm:$0xff] %v2133_v9  ;;  %v2200_v25 = vadd.f32 %v2199_v42, %v2133_v9  ;;  %v2238_v57 = vmul.f32 %v2133_v9, %v2133_v9 }
 0x2f0   : > { %v1957_v19 = vpop.f32.mrf.mxu2 }
 0x2f1   : > { %v2269_v45 = vadd.f32 %v2268_v7, %v2238_v57  ;;  %v1958_v34 = vadd.f32 %v1957_v19, %v1869_v61 }
 0x2f2   : > { %v2046_v20 = vpop.f32.mrf.mxu3 }
 0x2f3   : > { %v2047_v18 = vadd.f32 %v2046_v20, %v1958_v34 }
 0x2f5   : > { %v2136_v24 = vadd.f32 %v2135_v33, %v2047_v18 }
 0x2f7   : > { %2170 = vst [vmem:[%s3586_s25 + $0xf0] sm:$0xff] %v2136_v24  ;;  %v2201_v47 = vadd.f32 %v2200_v25, %v2136_v24  ;;  %v2239_v32 = vmul.f32 %v2136_v24, %v2136_v24 }
 0x2f8   : > { %v1959_v48 = vpop.f32.mrf.mxu2 }
 0x2f9   : > { %v2270_v15 = vadd.f32 %v2269_v45, %v2239_v32  ;;  %v1960_v41 = vadd.f32 %v1959_v48, %v1871_v10 }
 0x2fa   : > { %v2048_v8 = vpop.f32.mrf.mxu3 }
 0x2fb   : > { %v2049_v27 = vadd.f32 %v2048_v8, %v1960_v41 }
 0x2fd   : > { %v2138_v31 = vadd.f32 %v2137_v21, %v2049_v27 }
 0x2ff   : > { %2171 = vst [vmem:[%s3586_s25 + $0xf8] sm:$0xff] %v2138_v31  ;;  %v2202_v39 = vadd.f32 %v2201_v47, %v2138_v31  ;;  %v2240_v22 = vmul.f32 %v2138_v31, %v2138_v31 }
 0x301   : > { %v2203_v60 = vrot.slane %v2202_v39, 4  ;;  %v2271_v62 = vadd.f32 %v2270_v15, %v2240_v22 }
 0x303   : > { %v2204_v40 = vadd.f32 %v2203_v60, %v2202_v39  ;;  %v2272_v6 = vrot.slane %v2271_v62, 4 }
 0x305   : > { %v2205_v50 = vrot.slane %v2204_v40, 2  ;;  %v2273_v58 = vadd.f32 %v2272_v6, %v2271_v62 }
 0x307   : > { %v2206_v59 = vadd.f32 %v2205_v50, %v2204_v40  ;;  %v2274_v49 = vrot.slane %v2273_v58, 2 }
 0x309   : > { %v2207_v55 = vrot.slane %v2206_v59, 1  ;;  %v2275_v1 = vadd.f32 %v2274_v49, %v2273_v58 }
 0x30b   : > { %v2276_v23 = vrot.slane %v2275_v1, 1  ;;  %v2208_v3 = vadd.f32 %v2207_v55, %v2206_v59 }
 0x30d   : > { %v2277_v17 = vadd.f32 %v2276_v23, %v2275_v1 }
 0x30f   : > { %v2279_v54 = vsel %vm2278_vm0, %v2208_v3, %v2277_v17 }
 0x310   : > { %2280 = vst [vmem:[%s181_s28] sm:$0x3] %v2279_v54 }
 0x311 PF: > { %s14_s12 = sadd.s32 1, %s2781_s12  }
 0x312   : > { %p11_p4 = scmp.ge.s32.totalorder %s14_s12, 4  }
 0x314   :  { %13 = sbr.rel (!%p11_p4) target bundleno = 1 (0x1), region = 70 }

// kernel: encoder_block_forward.4
= control target key start
LH: loop header
LB: loop body
LE: loop exit
PB: predicated region body
PF: predicated region fallthrough
CT: control target
= control target key end

     0   :  { %s2977_s18 = smov 0   ;;  %s3919_s0 = inlined_call_operand.vmem [shape: f32[2,16,16,128], index: 0, kind: input, shape index: {}]   ;;  %s3920_s1 = inlined_call_operand.vmem [shape: f32[1,128], index: 1, kind: input, shape index: {}]   ;;  %s3921_s2 = inlined_call_operand.vmem [shape: f32[1,128], index: 2, kind: input, shape index: {}]   ;;  %s3922_s3 = inlined_call_operand.vmem [shape: bf16[1152,128], index: 3, kind: input, shape index: {}]   ;;  %s3923_s4 = inlined_call_operand.vmem [shape: f32[2,16,16,128], index: 4, kind: output, shape index: {0}]   ;;  %s3924_s5 = inlined_call_operand.vmem [shape: f32[2,2,128], index: 5, kind: output, shape index: {1}]  }
   0x1 LB: > { %s2525_s19 = sadd.s32 4294967295, %s2943_s18   ;;  %p2529_p0 = scmp.ge.s32.totalorder %s2943_s18, 1  ;;  %s2943_s18 = sphi %s2977_s18, %s16_s18  }
   0x2   : > { %p190_p1 = scmp.lt.s32.totalorder %s2943_s18, 3 }
   0x4   : > { %p191_p2 = pnand %p2529_p0, %p190_p1 }
   0x6   : > { %194 = sbr.rel (%p191_p2) target bundleno = 785 (0x311), region = 36 }
   0xb   : > { %v2834_v0 = vld [vmem:[%s3922_s3 + $0x38] sm:$0xff]  ;;  %p222_p3 = scmp.lt.s32.totalorder %s2525_s19, 1  ;;  %v2945_v1 = vmov 0.0   ;;  %v2833_v2 = vld [vmem:[%s3922_s3 + $0x30] sm:$0xff]  ;;  %v2997_v3 = vld [vmem:[%s3920_s1] ss:$0 sm:$0xff] }
   0xc   : > { %376 = vst [vmem:[#allocation2 + $0x48] sm:$0x1] %v2945_v1  ;;  %2899 = vmatpush.bf16.msra.mxu1 %v2834_v0  ;;  %2900 = vmatpush.bf16.msra.mxu2 %v2834_v0  ;;  %v3011_v4 = vld [vmem:[%s3921_s2] ss:$0 sm:$0xff]  ;;  %v2832_v5 = vld [vmem:[%s3922_s3 + $0x28] sm:$0xff]  ;;  %v2830_v15 = vld [vmem:[%s3922_s3 + $0x18] sm:$0xff] }
   0xd   : > { %s4019_s19 = smov (!%p222_p3, %s2525_s19), 1  ;;  %2901 = vmatpush.bf16.msra.mxu3 %v2834_v0  ;;  %1497 = vmatpush.bf16.msra.mxu0 %v2834_v0  ;;  %373 = vst [vmem:[#allocation2] sm:$0x1] %v2945_v1  ;;  %v2831_v12 = vld [vmem:[%s3922_s3 + $0x20] sm:$0xff]  ;;  %v2829_v16 = vld [vmem:[%s3922_s3 + $0x10] sm:$0xff]  ;;  %v2828_v20 = vld [vmem:[%s3922_s3 + $0x8] sm:$0xff] }
   0xe   : > { %s2825_s26 = sshll.u32 %s4019_s19, 8  ;;  %374 = vst [vmem:[#allocation2 + $0x18] sm:$0x1] %v2945_v1  ;;  %v2827_v29 = vld [vmem:[%s3922_s3] sm:$0xff]  ;;  %v2850_v35 = vld [vmem:[%s3922_s3 + $0xb8] sm:$0xff]  ;;  %v2849_v51 = vld [vmem:[%s3922_s3 + $0xb0] sm:$0xff] }
   0xf   : > { %s3006_s29 = scalar_lea.vmem %s3919_s0, %s2825_s26  ;;  %375 = vst [vmem:[#allocation2 + $0x30] sm:$0x1] %v2945_v1  ;;  %v2858_v36 = vld [vmem:[%s3922_s3 + $0xf8] sm:$0xff]  ;;  %v2857_v52 = vld [vmem:[%s3922_s3 + $0xf0] sm:$0xff]  ;;  %v3925_v60 = vmov 0   ;;  %s3824_s30 = scalar_lea.vmem %s3923_s4, %s2825_s26  ;;  %vm2436_vm0 = vcmask 1040384  }
  0x10   : > { %2902 = vmatpush.bf16.msra.mxu1 %v2833_v2  ;;  %2903 = vmatpush.bf16.msra.mxu2 %v2833_v2  ;;  %v243_v6 = vld [vmem:[%s3006_s29 + $0x30] sm:$0xff]  ;;  %v244_v7 = vld [vmem:[%s3006_s29 + $0x38] sm:$0xff]  ;;  %377 = vst [vmem:[#allocation2 + $0x60] sm:$0x1] %v2945_v1  ;;  %v245_v31 = vld [vmem:[%s3006_s29 + $0x40] sm:$0xff]  ;;  %s2534_s26 = sshll.u32 %s4019_s19, 1 }
  0x11   : > { %2904 = vmatpush.bf16.msra.mxu3 %v2833_v2  ;;  %1498 = vmatpush.bf16.msra.mxu0 %v2833_v2  ;;  %v279_v8 = vmul.f32 %v2997_v3, %v243_v6  ;;  %v280_v9 = vmul.f32 %v2997_v3, %v244_v7  ;;  %378 = vst [vmem:[#allocation2 + $0x78] sm:$0x1] %v2945_v1  ;;  %v251_v22 = vld [vmem:[%s3006_s29 + $0x70] sm:$0xff]  ;;  %v252_v23 = vld [vmem:[%s3006_s29 + $0x78] sm:$0xff]  ;;  %v246_v33 = vld [vmem:[%s3006_s29 + $0x48] sm:$0xff]  ;;  %s235_s8 = scalar_lea.vmem %s3924_s5, %s2534_s26 }
  0x12   : > { %379 = vst [vmem:[#allocation2 + $0x90] sm:$0x1] %v2945_v1  ;;  %v259_v24 = vld [vmem:[%s3006_s29 + $0xb0] sm:$0xff]  ;;  %v287_v27 = vmul.f32 %v2997_v3, %v251_v22  ;;  %v260_v28 = vld [vmem:[%s3006_s29 + $0xb8] sm:$0xff]  ;;  %v288_v30 = vmul.f32 %v2997_v3, %v252_v23  ;;  %v253_v37 = vld [vmem:[%s3006_s29 + $0x80] sm:$0xff]  ;;  %v281_v41 = vmul.f32 %v2997_v3, %v245_v31  ;;  %v282_v45 = vmul.f32 %v2997_v3, %v246_v33 }
  0x13   : > { %v315_v10 = vadd.f32 %v3011_v4, %v279_v8  ;;  %v316_v11 = vadd.f32 %v3011_v4, %v280_v9  ;;  %380 = vst [vmem:[#allocation2 + $0xa8] sm:$0x1] %v2945_v1  ;;  %v295_v32 = vmul.f32 %v2997_v3, %v259_v24  ;;  %v296_v34 = vmul.f32 %v2997_v3, %v260_v28  ;;  %v2866_v40 = vld [vmem:[%s3922_s3 + $0x138] sm:$0xff]  ;;  %v254_v42 = vld [vmem:[%s3006_s29 + $0x88] sm:$0xff]  ;;  %v261_v46 = vld [vmem:[%s3006_s29 + $0xc0] sm:$0xff] }
  0x14   : > { %2905 = vmatpush.bf16.msra.mxu1 %v2832_v5  ;;  %2906 = vmatpush.bf16.msra.mxu2 %v2832_v5  ;;  %381 = vst [vmem:[#allocation2 + $0xc0] sm:$0x1] %v2945_v1  ;;  %v323_v39 = vadd.f32 %v3011_v4, %v287_v27  ;;  %v324_v43 = vadd.f32 %v3011_v4, %v288_v30  ;;  %v2842_v44 = vld [vmem:[%s3922_s3 + $0x78] sm:$0xff]  ;;  %v262_v49 = vld [vmem:[%s3006_s29 + $0xc8] sm:$0xff]  ;;  %v237_v54 = vld [vmem:[%s3006_s29] sm:$0xff] }
  0x15   : > { %2907 = vmatpush.bf16.msra.mxu3 %v2832_v5  ;;  %1499 = vmatpush.bf16.msra.mxu0 %v2832_v5  ;;  %v3031_v13 = vmax.f32 %v315_v10, 0.0  ;;  %v3033_v14 = vmax.f32 %v316_v11, 0.0  ;;  %382 = vst [vmem:[#allocation2 + $0xd8] sm:$0x1] %v2945_v1  ;;  %v331_v47 = vadd.f32 %v3011_v4, %v295_v32  ;;  %v289_v48 = vmul.f32 %v2997_v3, %v253_v37  ;;  %v238_v58 = vld [vmem:[%s3006_s29 + $0x8] sm:$0xff]  ;;  %v2841_v61 = vld [vmem:[%s3922_s3 + $0x70] sm:$0xff] }
  0x16   : > { %383 = vst [vmem:[#allocation2 + $0xf0] sm:$0x1] %v2945_v1  ;;  %v332_v50 = vadd.f32 %v3011_v4, %v296_v34  ;;  %v290_v53 = vmul.f32 %v2997_v3, %v254_v42  ;;  %v355_v55 = vmax.f32 %v323_v39, 0.0  ;;  %v317_v56 = vadd.f32 %v3011_v4, %v281_v41  ;;  %v247_v0 = vld [vmem:[%s3006_s29 + $0x50] sm:$0xff]  ;;  %v248_v7 = vld [vmem:[%s3006_s29 + $0x58] sm:$0xff]  ;;  %v2856_v22 = vld [vmem:[%s3922_s3 + $0xe8] sm:$0xff] }
  0x17   : > { %411 = vst [vmem:[#allocation2 + $0x49] sm:$0xff] %v3031_v13  ;;  %v297_v57 = vmul.f32 %v2997_v3, %v261_v46  ;;  %v356_v59 = vmax.f32 %v324_v43, 0.0  ;;  %v318_v62 = vadd.f32 %v3011_v4, %v282_v45  ;;  %v298_v63 = vmul.f32 %v2997_v3, %v262_v49  ;;  %v255_v11 = vld [vmem:[%s3006_s29 + $0x90] sm:$0xff]  ;;  %v2840_v27 = vld [vmem:[%s3922_s3 + $0x68] sm:$0xff]  ;;  %v2847_v31 = vld [vmem:[%s3922_s3 + $0xa0] sm:$0xff] }
  0x18   : > { %2908 = vmatpush.bf16.msra.mxu1 %v2831_v12  ;;  %2909 = vmatpush.bf16.msra.mxu2 %v2831_v12  ;;  %412 = vst [vmem:[#allocation2 + $0x51] sm:$0xff] %v3033_v14  ;;  %v363_v2 = vmax.f32 %v331_v47, 0.0  ;;  %v325_v5 = vadd.f32 %v3011_v4, %v289_v48  ;;  %v273_v6 = vmul.f32 %v2997_v3, %v237_v54  ;;  %v364_v8 = vmax.f32 %v332_v50, 0.0  ;;  %v2865_v23 = vld [vmem:[%s3922_s3 + $0x130] sm:$0xff]  ;;  %v2855_v32 = vld [vmem:[%s3922_s3 + $0xe0] sm:$0xff]  ;;  %v240_v41 = vld [vmem:[%s3006_s29 + $0x18] sm:$0xff] }
  0x19   : > { %2910 = vmatpush.bf16.msra.mxu3 %v2831_v12  ;;  %1500 = vmatpush.bf16.msra.mxu0 %v2831_v12  ;;  %384 = vst [vmem:[#allocation2 + $0x108] sm:$0x1] %v2945_v1  ;;  %v326_v9 = vadd.f32 %v3011_v4, %v290_v53  ;;  %v274_v10 = vmul.f32 %v2997_v3, %v238_v58  ;;  %v3133_v12 = vmax.f32 %v317_v56, 0.0  ;;  %v239_v34 = vld [vmem:[%s3006_s29 + $0x10] sm:$0xff]  ;;  %v2839_v43 = vld [vmem:[%s3922_s3 + $0x60] sm:$0xff] }
  0x1a   : > { %385 = vst [vmem:[#allocation2 + $0x120] sm:$0x1] %v2945_v1  ;;  %v284_v24 = vmul.f32 %v2997_v3, %v248_v7  ;;  %v291_v28 = vmul.f32 %v2997_v3, %v255_v11  ;;  %v275_v47 = vmul.f32 %v2997_v3, %v239_v34 }
  0x1b   : > { %386 = vst [vmem:[#allocation2 + $0x138] sm:$0x1] %v2945_v1  ;;  %v310_v30 = vadd.f32 %v3011_v4, %v274_v10 }
  0x1c   : > { %2911 = vmatpush.bf16.msra.mxu1 %v2830_v15  ;;  %2912 = vmatpush.bf16.msra.mxu2 %v2830_v15  ;;  %387 = vst [vmem:[#allocation2 + $0x150] sm:$0x1] %v2945_v1  ;;  %v327_v46 = vadd.f32 %v3011_v4, %v291_v28 }
  0x1d   : > { %2913 = vmatpush.bf16.msra.mxu3 %v2830_v15  ;;  %1501 = vmatpush.bf16.msra.mxu0 %v2830_v15  ;;  %388 = vst [vmem:[#allocation2 + $0x168] sm:$0x1] %v2945_v1  ;;  %v333_v15 = vadd.f32 %v3011_v4, %v297_v57  ;;  %v3184_v49 = vmax.f32 %v310_v30, 0.0 }
  0x1e   : > { %v587_v17 = vld [vmem:[#allocation2 + $0x48] sm:$0xff]  ;;  %389 = vst [vmem:[#allocation2 + $0x11] sm:$0x1] %v2945_v1 }
  0x1f   : > { %v588_v18 = vld [vmem:[#allocation2 + $0x50] sm:$0xff]  ;;  %v619_v19 = vpack.c.bf16 %v587_v17, %v587_v17  ;;  %390 = vst [vmem:[#allocation2 + $0x29] sm:$0x1] %v2945_v1  ;;  %v256_v17 = vld [vmem:[%s3006_s29 + $0x98] sm:$0xff] }
  0x20   : > { %2914 = vmatpush.bf16.msra.mxu1 %v2829_v16  ;;  %2915 = vmatpush.bf16.msra.mxu2 %v2829_v16  ;;  %v620_v21 = vpack.c.bf16 %v588_v18, %v588_v18  ;;  %391 = vst [vmem:[#allocation2 + $0x41] sm:$0x1] %v2945_v1  ;;  %v263_v18 = vld [vmem:[%s3006_s29 + $0xd0] sm:$0xff]  ;;  %v292_v33 = vmul.f32 %v2997_v3, %v256_v17 }
  0x21   : > { %2916 = vmatpush.bf16.msra.mxu3 %v2829_v16  ;;  %1502 = vmatpush.bf16.msra.mxu0 %v2829_v16  ;;  %392 = vst [vmem:[#allocation2 + $0x59] sm:$0x1] %v2945_v1  ;;  %v809_v25 = vunpack.c.l.b16 %v619_v19  ;;  %v283_v16 = vmul.f32 %v2997_v3, %v247_v0  ;;  %v264_v19 = vld [vmem:[%s3006_s29 + $0xd8] sm:$0xff]  ;;  %v299_v39 = vmul.f32 %v2997_v3, %v263_v18  ;;  %v3195_v0 = vmax.f32 %v327_v46, 0.0  ;;  %v249_v18 = vld [vmem:[%s3006_s29 + $0x60] sm:$0xff] }
  0x22   : > { %v810_v26 = vunpack.c.l.b16 %v620_v21  ;;  %393 = vst [vmem:[#allocation2 + $0x71] sm:$0x1] %v2945_v1  ;;  %v2848_v21 = vld [vmem:[%s3922_s3 + $0xa8] sm:$0xff]  ;;  %v328_v50 = vadd.f32 %v3011_v4, %v292_v33  ;;  %v2846_v46 = vld [vmem:[%s3922_s3 + $0x98] sm:$0xff] }
  0x23   : > { %394 = vst [vmem:[#allocation2 + $0x89] sm:$0x1] %v2945_v1  ;;  %v319_v37 = vadd.f32 %v3011_v4, %v283_v16 }
  0x24   : > { %2917 = vmatpush.bf16.msra.mxu1 %v2828_v20  ;;  %2918 = vmatpush.bf16.msra.mxu2 %v2828_v20  ;;  %395 = vst [vmem:[#allocation2 + $0xa1] sm:$0x1] %v2945_v1  ;;  %v3082_v38 = vpack.c.b16 %v810_v26, %v809_v25  ;;  %v357_v25 = vmax.f32 %v325_v5, 0.0  ;;  %v309_v26 = vadd.f32 %v3011_v4, %v273_v6 }
  0x25   : > { %2919 = vmatpush.bf16.msra.mxu3 %v2828_v20  ;;  %1503 = vmatpush.bf16.msra.mxu0 %v2828_v20  ;;  %396 = vst [vmem:[#allocation2 + $0xb9] sm:$0x1] %v2945_v1  ;;  %v334_v20 = vadd.f32 %v3011_v4, %v298_v63  ;;  %v3188_v54 = vmax.f32 %v319_v37, 0.0 }
  0x26   : > { %397 = vst [vmem:[#allocation2 + $0xd1] sm:$0x1] %v2945_v1  ;;  %v3180_v45 = vmax.f32 %v309_v26, 0.0 }
  0x27   : > { %398 = vst [vmem:[#allocation2 + $0xe9] sm:$0x1] %v2945_v1  ;;  %v366_v42 = vmax.f32 %v334_v20, 0.0 }
  0x28   : > { %2920 = vmatpush.bf16.msra.mxu1 %v2827_v29  ;;  %2921 = vmatpush.bf16.msra.mxu2 %v2827_v29  ;;  %399 = vst [vmem:[#allocation2 + $0x101] sm:$0x1] %v2945_v1 }
  0x29   : > { %2922 = vmatpush.bf16.msra.mxu3 %v2827_v29  ;;  %1504 = vmatpush.bf16.msra.mxu0 %v2827_v29  ;;  %400 = vst [vmem:[#allocation2 + $0x119] sm:$0x1] %v2945_v1  ;;  %v358_v29 = vmax.f32 %v326_v9, 0.0 }
  0x2a   : > { %401 = vst [vmem:[#allocation2 + $0x131] sm:$0x1] %v2945_v1 }
  0x2b   : > { %1525 = vmatmul.bf16.vlgmr.msra.gmra.mxu1 %v3082_v38  ;;  %402 = vst [vmem:[#allocation2 + $0x149] sm:$0x1] %v2945_v1 }
  0x2c   : > { %1675 = vmatpush.bf16.msrb.mxu2 %v2850_v35  ;;  %1505 = vmatmul.bf16.vlgmr.msra.gmra.mxu0 %v3925_v60  ;;  %403 = vst [vmem:[#allocation2 + $0x161] sm:$0x1] %v2945_v1  ;;  %v365_v35 = vmax.f32 %v333_v15, 0.0 }
  0x2d   : > { %1764 = vmatpush.bf16.msrb.mxu3 %v2858_v36  ;;  %1853 = vmatpush.bf16.msrb.mxu0 %v2866_v40  ;;  %404 = vst [vmem:[#allocation2 + $0x179] sm:$0x1] %v2945_v1  ;;  %v3140_v1 = vmax.f32 %v318_v62, 0.0  ;;  %v2864_v36 = vld [vmem:[%s3922_s3 + $0x128] sm:$0xff]  ;;  %v300_v40 = vmul.f32 %v2997_v3, %v264_v19 }
  0x2e   : > { %1586 = vmatpush.bf16.msrb.mxu1 %v2842_v44  ;;  %419 = vst [vmem:[#allocation2 + $0xa9] sm:$0xff] %v355_v55  ;;  %v320_v44 = vadd.f32 %v3011_v4, %v284_v24  ;;  %v335_v55 = vadd.f32 %v3011_v4, %v299_v39  ;;  %v250_v19 = vld [vmem:[%s3006_s29 + $0x68] sm:$0xff]  ;;  %v257_v24 = vld [vmem:[%s3006_s29 + $0xa0] sm:$0xff] }
  0x2f   : > { %420 = vst [vmem:[#allocation2 + $0xb1] sm:$0xff] %v356_v59  ;;  %v336_v56 = vadd.f32 %v3011_v4, %v300_v40  ;;  %v293_v30 = vmul.f32 %v2997_v3, %v257_v24 }
  0x30   : > { %1676 = vmatpush.bf16.msrb.mxu2 %v2849_v51  ;;  %427 = vst [vmem:[#allocation2 + $0x109] sm:$0xff] %v363_v2  ;;  %v276_v51 = vmul.f32 %v2997_v3, %v240_v41  ;;  %v3192_v59 = vmax.f32 %v320_v44, 0.0  ;;  %v311_v2 = vadd.f32 %v3011_v4, %v275_v47  ;;  %v367_v16 = vmax.f32 %v335_v55, 0.0  ;;  %v265_v41 = vld [vmem:[%s3006_s29 + $0xe0] sm:$0xff]  ;;  %v2854_v47 = vld [vmem:[%s3922_s3 + $0xd8] sm:$0xff] }
  0x31   : > { %1765 = vmatpush.bf16.msrb.mxu3 %v2857_v52  ;;  %428 = vst [vmem:[#allocation2 + $0x111] sm:$0xff] %v364_v8  ;;  %1854 = vmatpush.bf16.msrb.mxu0 %v2865_v23  ;;  %v3199_v8 = vmax.f32 %v328_v50, 0.0  ;;  %v368_v17 = vmax.f32 %v336_v56, 0.0  ;;  %v285_v23 = vmul.f32 %v2997_v3, %v249_v18  ;;  %v2838_v55 = vld [vmem:[%s3922_s3 + $0x58] sm:$0xff]  ;;  %v301_v18 = vmul.f32 %v2997_v3, %v265_v41 }
  0x32   : > { %1587 = vmatpush.bf16.msrb.mxu1 %v2841_v61  ;;  %413 = vst [vmem:[#allocation2 + $0x61] sm:$0xff] %v3133_v12  ;;  %v312_v9 = vadd.f32 %v3011_v4, %v276_v51  ;;  %v3212_v28 = vmax.f32 %v311_v2, 0.0 }
  0x33   : > { %414 = vst [vmem:[#allocation2 + $0x69] sm:$0xff] %v3140_v1 }
  0x34   : > { %1677 = vmatpush.bf16.msrb.mxu2 %v2848_v21  ;;  %421 = vst [vmem:[#allocation2 + $0xc1] sm:$0xff] %v357_v25  ;;  %v258_v25 = vld [vmem:[%s3006_s29 + $0xa8] sm:$0xff]  ;;  %v3220_v34 = vmax.f32 %v312_v9, 0.0 }
  0x35   : > { %1766 = vmatpush.bf16.msrb.mxu3 %v2856_v22  ;;  %v595_v48 = vld [vmem:[#allocation2 + $0xa8] sm:$0xff]  ;;  %422 = vst [vmem:[#allocation2 + $0xc9] sm:$0xff] %v358_v29  ;;  %1855 = vmatpush.bf16.msrb.mxu0 %v2864_v36  ;;  %v286_v29 = vmul.f32 %v2997_v3, %v250_v19  ;;  %v294_v40 = vmul.f32 %v2997_v3, %v258_v25 }
  0x36   : > { %1588 = vmatpush.bf16.msrb.mxu1 %v2840_v27  ;;  %v596_v52 = vld [vmem:[#allocation2 + $0xb0] sm:$0xff]  ;;  %v627_v53 = vpack.c.bf16 %v595_v48, %v595_v48  ;;  %429 = vst [vmem:[#allocation2 + $0x121] sm:$0xff] %v365_v35  ;;  %v321_v35 = vadd.f32 %v3011_v4, %v285_v23 }
  0x37   : > { %v628_v57 = vpack.c.bf16 %v596_v52, %v596_v52  ;;  %v603_v58 = vld [vmem:[#allocation2 + $0x108] sm:$0xff]  ;;  %430 = vst [vmem:[#allocation2 + $0x129] sm:$0xff] %v366_v42  ;;  %v322_v39 = vadd.f32 %v3011_v4, %v286_v29  ;;  %v330_v9 = vadd.f32 %v3011_v4, %v294_v40  ;;  %v241_v29 = vld [vmem:[%s3006_s29 + $0x20] sm:$0xff] }
  0x38   : > { %1678 = vmatpush.bf16.msrb.mxu2 %v2847_v31  ;;  %v817_v61 = vunpack.c.l.b16 %v627_v53  ;;  %v604_v62 = vld [vmem:[#allocation2 + $0x110] sm:$0xff]  ;;  %v635_v63 = vpack.c.bf16 %v603_v58, %v603_v58  ;;  %405 = vst [vmem:[#allocation2 + $0x1] sm:$0xff] %v3180_v45  ;;  %v3235_v48 = vmax.f32 %v321_v35, 0.0  ;;  %v2863_v53 = vld [vmem:[%s3922_s3 + $0x120] sm:$0xff]  ;;  %v277_v41 = vmul.f32 %v2997_v3, %v241_v29 }
  0x39   : > { %1767 = vmatpush.bf16.msrb.mxu3 %v2855_v32  ;;  %v818_v5 = vunpack.c.l.b16 %v628_v57  ;;  %v636_v6 = vpack.c.bf16 %v604_v62, %v604_v62  ;;  %v589_v7 = vld [vmem:[#allocation2 + $0x60] sm:$0xff]  ;;  %406 = vst [vmem:[#allocation2 + $0x9] sm:$0xff] %v3184_v49  ;;  %v3244_v56 = vmax.f32 %v322_v39, 0.0  ;;  %v329_v57 = vadd.f32 %v3011_v4, %v293_v30  ;;  %v2845_v62 = vld [vmem:[%s3922_s3 + $0x90] sm:$0xff]  ;;  %1856 = vmatpush.bf16.msrb.mxu0 %v2863_v53 }
  0x3a   : > { %1589 = vmatpush.bf16.msrb.mxu1 %v2839_v43  ;;  %v825_v10 = vunpack.c.l.b16 %v635_v63  ;;  %v590_v11 = vld [vmem:[#allocation2 + $0x68] sm:$0xff]  ;;  %v621_v15 = vpack.c.bf16 %v589_v7, %v589_v7  ;;  %415 = vst [vmem:[#allocation2 + $0x79] sm:$0xff] %v3188_v54  ;;  %v2862_v7 = vld [vmem:[%s3922_s3 + $0x118] sm:$0xff]  ;;  %v2835_v29 = vld [vmem:[%s3922_s3 + $0x40] sm:$0xff] }
  0x3b   : > { %v3205_v20 = vpack.c.b16 %v818_v5, %v817_v61  ;;  %v826_v21 = vunpack.c.l.b16 %v636_v6  ;;  %v622_v22 = vpack.c.bf16 %v590_v11, %v590_v11  ;;  %416 = vst [vmem:[#allocation2 + $0x81] sm:$0xff] %v3192_v59  ;;  %v597_v27 = vld [vmem:[#allocation2 + $0xc0] sm:$0xff]  ;;  %v266_v63 = vld [vmem:[%s3006_s29 + $0xe8] sm:$0xff]  ;;  %v2853_v6 = vld [vmem:[%s3922_s3 + $0xd0] sm:$0xff] }
  0x3c   : > { %v811_v26 = vunpack.c.l.b16 %v621_v15  ;;  %423 = vst [vmem:[#allocation2 + $0xd9] sm:$0xff] %v3195_v0  ;;  %v598_v33 = vld [vmem:[#allocation2 + $0xc8] sm:$0xff]  ;;  %v629_v43 = vpack.c.bf16 %v597_v27, %v597_v27  ;;  %1679 = vmatpush.bf16.msrb.mxu2 %v2846_v46  ;;  %v302_v23 = vmul.f32 %v2997_v3, %v266_v63  ;;  %v337_v27 = vadd.f32 %v3011_v4, %v301_v18  ;;  %v2843_v18 = vld [vmem:[%s3922_s3 + $0x80] sm:$0xff] }
  0x3d   : > { %3945 = vst [vmem:[#allocation3_spill] sm:$0xff] %v3205_v20  ;;  %1545 = vmatmul.bf16.vlgmr.msra.gmra.mxu2 %v3205_v20  ;;  %v3217_v31 = vpack.c.b16 %v826_v21, %v825_v10  ;;  %v812_v32 = vunpack.c.l.b16 %v622_v22  ;;  %v605_v36 = vld [vmem:[#allocation2 + $0x120] sm:$0xff]  ;;  %v630_v50 = vpack.c.bf16 %v598_v33, %v598_v33  ;;  %1768 = vmatpush.bf16.msrb.mxu3 %v2854_v47  ;;  %v3261_v10 = vmax.f32 %v329_v57, 0.0 }
  0x3e   : > { %424 = vst [vmem:[#allocation2 + $0xe1] sm:$0xff] %v3199_v8  ;;  %v606_v37 = vld [vmem:[#allocation2 + $0x128] sm:$0xff]  ;;  %v637_v11 = vpack.c.bf16 %v605_v36, %v605_v36  ;;  %1590 = vmatpush.bf16.msrb.mxu1 %v2838_v55  ;;  %v819_v19 = vunpack.c.l.b16 %v629_v43  ;;  %v3268_v22 = vmax.f32 %v330_v9, 0.0  ;;  %1857 = vmatpush.bf16.msrb.mxu0 %v2862_v7  ;;  %v338_v30 = vadd.f32 %v3011_v4, %v302_v23 }
  0x3f   : > { %3946 = vst [vmem:[#allocation4_spill] sm:$0xff] %v3217_v31  ;;  %1565 = vmatmul.bf16.vlgmr.msra.gmra.mxu3 %v3217_v31  ;;  %v3227_v42 = vpack.c.b16 %v812_v32, %v811_v26  ;;  %v581_v44 = vld [vmem:[#allocation2] sm:$0xff]  ;;  %v638_v15 = vpack.c.bf16 %v606_v37, %v606_v37  ;;  %v820_v21 = vunpack.c.l.b16 %v630_v50  ;;  %v242_v32 = vld [vmem:[%s3006_s29 + $0x28] sm:$0xff]  ;;  %v369_v36 = vmax.f32 %v337_v27, 0.0 }
  0x40   : > { %431 = vst [vmem:[#allocation2 + $0x139] sm:$0xff] %v367_v16  ;;  %v582_v51 = vld [vmem:[#allocation2 + $0x8] sm:$0xff]  ;;  %v613_v52 = vpack.c.bf16 %v581_v44, %v581_v44  ;;  %1680 = vmatpush.bf16.msrb.mxu2 %v2845_v62  ;;  %v827_v33 = vunpack.c.l.b16 %v637_v11  ;;  %v370_v40 = vmax.f32 %v338_v30, 0.0  ;;  %v278_v47 = vmul.f32 %v2997_v3, %v242_v32 }
  0x41   : > { %432 = vst [vmem:[#allocation2 + $0x141] sm:$0xff] %v368_v17  ;;  %1530 = vmatmul.bf16.gmra.mxu1 %v3227_v42  ;;  %v614_v58 = vpack.c.bf16 %v582_v51, %v582_v51  ;;  %v591_v61 = vld [vmem:[#allocation2 + $0x78] sm:$0xff]  ;;  %v2837_v17 = vld [vmem:[%s3922_s3 + $0x50] sm:$0xff]  ;;  %1769 = vmatpush.bf16.msrb.mxu3 %v2853_v6  ;;  %v828_v35 = vunpack.c.l.b16 %v638_v15  ;;  %v3281_v43 = vpack.c.b16 %v820_v21, %v819_v19  ;;  %v2836_v11 = vld [vmem:[%s3922_s3 + $0x48] sm:$0xff] }
  0x42   : > { %407 = vst [vmem:[#allocation2 + $0x19] sm:$0xff] %v3212_v28  ;;  %v803_v2 = vunpack.c.l.b16 %v613_v52  ;;  %v592_v5 = vld [vmem:[#allocation2 + $0x80] sm:$0xff]  ;;  %v623_v25 = vpack.c.bf16 %v591_v61, %v591_v61  ;;  %1591 = vmatpush.bf16.msrb.mxu1 %v2837_v17  ;;  %v313_v50 = vadd.f32 %v3011_v4, %v277_v41  ;;  %v314_v55 = vadd.f32 %v3011_v4, %v278_v47  ;;  %v2844_v4 = vld [vmem:[%s3922_s3 + $0x88] sm:$0xff]  ;;  %v2861_v6 = vld [vmem:[%s3922_s3 + $0x110] sm:$0xff] }
  0x43   : > { %408 = vst [vmem:[#allocation2 + $0x21] sm:$0xff] %v3220_v34  ;;  %v804_v16 = vunpack.c.l.b16 %v614_v58  ;;  %v624_v26 = vpack.c.bf16 %v592_v5, %v592_v5  ;;  %v3285_v51 = vpack.c.b16 %v828_v35, %v827_v33  ;;  %v599_v62 = vld [vmem:[#allocation2 + $0xd8] sm:$0xff]  ;;  %v2852_v5 = vld [vmem:[%s3922_s3 + $0xc8] sm:$0xff]  ;;  %1858 = vmatpush.bf16.msrb.mxu0 %v2861_v6  ;;  %v2851_v21 = vld [vmem:[%s3922_s3 + $0xc0] sm:$0xff] }
  0x44   : > { %417 = vst [vmem:[#allocation2 + $0x91] sm:$0xff] %v3235_v48  ;;  %v813_v44 = vunpack.c.l.b16 %v623_v25  ;;  %v3288_v57 = vmax.f32 %v313_v50, 0.0  ;;  %v3293_v61 = vmax.f32 %v314_v55, 0.0  ;;  %v631_v15 = vpack.c.bf16 %v599_v62, %v599_v62  ;;  %1681 = vmatpush.bf16.msrb.mxu2 %v2844_v4  ;;  %v2860_v23 = vld [vmem:[%s3922_s3 + $0x108] sm:$0xff]  ;;  %v2882_v6 = vld [vmem:[%s3922_s3 + $0x1b8] sm:$0xff] }
  0x45   : > { %418 = vst [vmem:[#allocation2 + $0x99] sm:$0xff] %v3244_v56  ;;  %v3272_v24 = vpack.c.b16 %v804_v16, %v803_v2  ;;  %v814_v46 = vunpack.c.l.b16 %v624_v26  ;;  %v600_v63 = vld [vmem:[#allocation2 + $0xe0] sm:$0xff]  ;;  %1770 = vmatpush.bf16.msrb.mxu3 %v2852_v5 }
  0x46   : > { %425 = vst [vmem:[#allocation2 + $0xf1] sm:$0xff] %v3261_v10  ;;  %v632_v16 = vpack.c.bf16 %v600_v63, %v600_v63  ;;  %1592 = vmatpush.bf16.msrb.mxu1 %v2836_v11  ;;  %v821_v30 = vunpack.c.l.b16 %v631_v15  ;;  %v2898_v11 = vld [vmem:[%s3922_s3 + $0x238] sm:$0xff] }
  0x47   : > { %426 = vst [vmem:[#allocation2 + $0xf9] sm:$0xff] %v3268_v22  ;;  %1510 = vmatmul.bf16.gmra.mxu0 %v3272_v24  ;;  %v3291_v58 = vpack.c.b16 %v814_v46, %v813_v44  ;;  %v607_v7 = vld [vmem:[#allocation2 + $0x138] sm:$0xff] }
  0x48   : > { %3947 = vst [vmem:[#allocation5_spill] sm:$0xff] %v3281_v43  ;;  %v608_v9 = vld [vmem:[#allocation2 + $0x140] sm:$0xff]  ;;  %v639_v25 = vpack.c.bf16 %v607_v7, %v607_v7  ;;  %v822_v32 = vunpack.c.l.b16 %v632_v16  ;;  %1682 = vmatpush.bf16.msrb.mxu2 %v2843_v18  ;;  %1859 = vmatpush.bf16.msrb.mxu0 %v2860_v23  ;;  %v2890_v7 = vld [vmem:[%s3922_s3 + $0x1f8] sm:$0xff] }
  0x49   : > { %v583_v37 = vld [vmem:[#allocation2 + $0x18] sm:$0xff]  ;;  %433 = vst [vmem:[#allocation2 + $0x151] sm:$0xff] %v369_v36  ;;  %v640_v26 = vpack.c.bf16 %v608_v9, %v608_v9  ;;  %1771 = vmatpush.bf16.msrb.mxu3 %v2851_v21  ;;  %v2859_v36 = vld [vmem:[%s3922_s3 + $0x100] sm:$0xff] }
  0x4a   : > { %v584_v39 = vld [vmem:[#allocation2 + $0x20] sm:$0xff]  ;;  %434 = vst [vmem:[#allocation2 + $0x159] sm:$0xff] %v370_v40  ;;  %v615_v52 = vpack.c.bf16 %v583_v37, %v583_v37  ;;  %v829_v37 = vunpack.c.l.b16 %v639_v25  ;;  %1593 = vmatpush.bf16.msrb.mxu1 %v2835_v29  ;;  %v3329_v44 = vpack.c.b16 %v822_v32, %v821_v30  ;;  %v2874_v9 = vld [vmem:[%s3922_s3 + $0x178] sm:$0xff]  ;;  %v677_v32 = vpack.c.bf16 %v3180_v45, %v3180_v45 }
  0x4b   : > { %3948 = vst [vmem:[#allocation6_spill] sm:$0xff] %v3285_v51  ;;  %v616_v53 = vpack.c.bf16 %v584_v39, %v584_v39  ;;  %v593_v17 = vld [vmem:[#allocation2 + $0x90] sm:$0xff]  ;;  %v830_v39 = vunpack.c.l.b16 %v640_v26 }
  0x4c   : > { %3949 = vst [vmem:[#allocation7_spill] sm:$0xff] %v3291_v58  ;;  %v805_v3 = vunpack.c.l.b16 %v615_v52  ;;  %v594_v19 = vld [vmem:[#allocation2 + $0x98] sm:$0xff]  ;;  %v625_v33 = vpack.c.bf16 %v593_v17, %v593_v17  ;;  %1860 = vmatpush.bf16.msrb.mxu0 %v2859_v36  ;;  %2031 = vmatpush.bf16.msra.mxu2 %v2882_v6  ;;  %v680_v36 = vpack.c.bf16 %v3220_v34, %v3220_v34 }
  0x4d   : > { %1550 = vmatmul.bf16.gmra.mxu2 %v3281_v43  ;;  %409 = vst [vmem:[#allocation2 + $0x31] sm:$0xff] %v3288_v57  ;;  %v806_v2 = vunpack.c.l.b16 %v616_v53  ;;  %v626_v35 = vpack.c.bf16 %v594_v19, %v594_v19  ;;  %v3331_v50 = vpack.c.b16 %v830_v39, %v829_v37  ;;  %v601_v62 = vld [vmem:[#allocation2 + $0xf0] sm:$0xff]  ;;  %2120 = vmatpush.bf16.msra.mxu3 %v2890_v7  ;;  %v711_v7 = vld [vmem:[#allocation2 + $0x1a] sm:$0xff] }
  0x4e   : > { %410 = vst [vmem:[#allocation2 + $0x39] sm:$0xff] %v3293_v61  ;;  %v815_v46 = vunpack.c.l.b16 %v625_v33  ;;  %v602_v63 = vld [vmem:[#allocation2 + $0xf8] sm:$0xff]  ;;  %v633_v15 = vpack.c.bf16 %v601_v62, %v601_v62  ;;  %1942 = vmatpush.bf16.msra.mxu1 %v2874_v9  ;;  %v678_v33 = vpack.c.bf16 %v3184_v49, %v3184_v49  ;;  %v896_v39 = vunpack.c.l.b16 %v680_v36  ;;  %v2881_v62 = vld [vmem:[%s3922_s3 + $0x1b0] sm:$0xff]  ;;  %v712_v9 = vld [vmem:[#allocation2 + $0x22] sm:$0xff] }
  0x4f   : > { %1570 = vmatmul.bf16.gmra.mxu3 %v3285_v51  ;;  %v3320_v27 = vpack.c.b16 %v806_v2, %v805_v3  ;;  %3950 = vst [vmem:[#allocation8_spill] sm:$0xff] %v3329_v44  ;;  %v816_v47 = vunpack.c.l.b16 %v626_v35  ;;  %v634_v16 = vpack.c.bf16 %v602_v63, %v602_v63  ;;  %v679_v35 = vpack.c.bf16 %v3212_v28, %v3212_v28  ;;  %v2888_v36 = vld [vmem:[%s3922_s3 + $0x1e8] sm:$0xff] }
  0x50   : > { %v609_v3 = vld [vmem:[#allocation2 + $0x150] sm:$0xff]  ;;  %2209 = vmatpush.bf16.msra.mxu0 %v2898_v11  ;;  %v823_v21 = vunpack.c.l.b16 %v633_v15  ;;  %v681_v49 = vpack.c.bf16 %v3288_v57, %v3288_v57  ;;  %v682_v28 = vpack.c.bf16 %v3293_v61, %v3293_v61  ;;  %2032 = vmatpush.bf16.msra.mxu2 %v2881_v62  ;;  %v743_v11 = vpack.c.bf16 %v711_v7, %v711_v7 }
  0x51   : > { %1535 = vmatmul.bf16.gmra.mxu1 %v3291_v58  ;;  %v3334_v55 = vpack.c.b16 %v816_v47, %v815_v46  ;;  %v610_v2 = vld [vmem:[#allocation2 + $0x158] sm:$0xff]  ;;  %v641_v17 = vpack.c.bf16 %v609_v3, %v609_v3  ;;  %v824_v23 = vunpack.c.l.b16 %v634_v16  ;;  %v895_v37 = vunpack.c.l.b16 %v679_v35  ;;  %v2889_v57 = vld [vmem:[%s3922_s3 + $0x1f0] sm:$0xff]  ;;  %v2880_v35 = vld [vmem:[%s3922_s3 + $0x1a8] sm:$0xff] }
  0x52   : > { %v642_v18 = vpack.c.bf16 %v610_v2, %v610_v2  ;;  %v897_v34 = vunpack.c.l.b16 %v681_v49  ;;  %v898_v47 = vunpack.c.l.b16 %v682_v28  ;;  %v2873_v61 = vld [vmem:[%s3922_s3 + $0x170] sm:$0xff]  ;;  %2121 = vmatpush.bf16.msra.mxu3 %v2889_v57  ;;  %v744_v15 = vpack.c.bf16 %v712_v9, %v712_v9 }
  0x53   : > { %3951 = vst [vmem:[#allocation9_spill] sm:$0xff] %v3334_v55  ;;  %v831_v25 = vunpack.c.l.b16 %v641_v17  ;;  %v3353_v29 = vpack.c.b16 %v824_v23, %v823_v21  ;;  %v3367_v46 = vpack.c.b16 %v896_v39, %v895_v37  ;;  %v2897_v3 = vld [vmem:[%s3922_s3 + $0x230] sm:$0xff]  ;;  %1943 = vmatpush.bf16.msra.mxu1 %v2873_v61  ;;  %v985_v16 = vunpack.c.l.b16 %v743_v11  ;;  %v2872_v37 = vld [vmem:[%s3922_s3 + $0x168] sm:$0xff] }
  0x54   : > { %v585_v40 = vld [vmem:[#allocation2 + $0x30] sm:$0xff]  ;;  %v832_v26 = vunpack.c.l.b16 %v642_v18  ;;  %v3379_v63 = vpack.c.b16 %v898_v47, %v897_v34  ;;  %2210 = vmatpush.bf16.msra.mxu0 %v2897_v3  ;;  %v986_v17 = vunpack.c.l.b16 %v744_v15  ;;  %v683_v21 = vpack.c.bf16 %v3031_v13, %v3031_v13  ;;  %2033 = vmatpush.bf16.msra.mxu2 %v2880_v35  ;;  %v2896_v39 = vld [vmem:[%s3922_s3 + $0x228] sm:$0xff]  ;;  %v2871_v35 = vld [vmem:[%s3922_s3 + $0x160] sm:$0xff] }
  0x55   : > { %v586_v41 = vld [vmem:[#allocation2 + $0x38] sm:$0xff]  ;;  %v617_v52 = vpack.c.bf16 %v585_v40, %v585_v40  ;;  %v893_v40 = vunpack.c.l.b16 %v677_v32  ;;  %v684_v23 = vpack.c.bf16 %v3033_v14, %v3033_v14  ;;  %v685_v34 = vpack.c.bf16 %v3133_v12, %v3133_v12 }
  0x56   : > { %v618_v53 = vpack.c.bf16 %v586_v41, %v586_v41  ;;  %v3355_v30 = vpack.c.b16 %v832_v26, %v831_v25  ;;  %v894_v41 = vunpack.c.l.b16 %v678_v33  ;;  %v3397_v18 = vpack.c.b16 %v986_v17, %v985_v16  ;;  %v713_v25 = vld [vmem:[#allocation2 + $0x32] sm:$0xff]  ;;  %v714_v26 = vld [vmem:[#allocation2 + $0x3a] sm:$0xff]  ;;  %2122 = vmatpush.bf16.msra.mxu3 %v2888_v36  ;;  %v717_v16 = vld [vmem:[#allocation2 + $0x62] sm:$0xff] }
  0x57   : > { %1515 = vmatmul.bf16.gmra.mxu0 %v3320_v27  ;;  %v807_v4 = vunpack.c.l.b16 %v617_v52  ;;  %v709_v52 = vld [vmem:[#allocation2 + $0x2] sm:$0xff]  ;;  %v899_v32 = vunpack.c.l.b16 %v683_v21  ;;  %v900_v33 = vunpack.c.l.b16 %v684_v23  ;;  %v745_v13 = vpack.c.bf16 %v713_v25, %v713_v25  ;;  %1944 = vmatpush.bf16.msra.mxu1 %v2872_v37  ;;  %v718_v17 = vld [vmem:[#allocation2 + $0x6a] sm:$0xff] }
  0x58   : > { %v808_v5 = vunpack.c.l.b16 %v618_v53  ;;  %3952 = vst [vmem:[#allocation10_spill] sm:$0xff] %v3355_v30  ;;  %v923_v45 = vpack.c.b16 %v894_v41, %v893_v40  ;;  %v710_v53 = vld [vmem:[#allocation2 + $0xa] sm:$0xff]  ;;  %v746_v14 = vpack.c.bf16 %v714_v26, %v714_v26  ;;  %2211 = vmatpush.bf16.msra.mxu0 %v2896_v39  ;;  %v686_v47 = vpack.c.bf16 %v3140_v1, %v3140_v1  ;;  %v2879_v25 = vld [vmem:[%s3922_s3 + $0x1a0] sm:$0xff] }
  0x59   : > { %v742_v2 = vpack.c.bf16 %v710_v53, %v710_v53  ;;  %v3418_v40 = vpack.c.b16 %v900_v33, %v899_v32  ;;  %v987_v41 = vunpack.c.l.b16 %v745_v13  ;;  %v716_v53 = vld [vmem:[#allocation2 + $0x52] sm:$0xff]  ;;  %v901_v62 = vunpack.c.l.b16 %v685_v34  ;;  %2034 = vmatpush.bf16.msra.mxu2 %v2879_v25  ;;  %v2895_v36 = vld [vmem:[%s3922_s3 + $0x220] sm:$0xff] }
  0x5a   : > { %v3350_v19 = vpack.c.b16 %v808_v5, %v807_v4  ;;  %v902_v57 = vunpack.c.l.b16 %v686_v47  ;;  %v687_v9 = vpack.c.bf16 %v3188_v54, %v3188_v54  ;;  %v688_v11 = vpack.c.bf16 %v3192_v59, %v3192_v59  ;;  %v2887_v54 = vld [vmem:[%s3922_s3 + $0x1e0] sm:$0xff] }
  0x5b   : > { %v984_v5 = vunpack.c.l.b16 %v742_v2  ;;  %v749_v59 = vpack.c.bf16 %v717_v16, %v717_v16  ;;  %v750_v32 = vpack.c.bf16 %v718_v17, %v718_v17  ;;  %2123 = vmatpush.bf16.msra.mxu3 %v2887_v54  ;;  %1945 = vmatpush.bf16.msra.mxu1 %v2871_v35 }
  0x5c   : > { %v3434_v2 = vpack.c.b16 %v902_v57, %v901_v62  ;;  %v903_v21 = vunpack.c.l.b16 %v687_v9  ;;  %v904_v23 = vunpack.c.l.b16 %v688_v11  ;;  %2212 = vmatpush.bf16.msra.mxu0 %v2895_v36 }
  0x5d   : > { %1555 = vmatmul.bf16.gmra.mxu2 %v3329_v44  ;;  %v991_v37 = vunpack.c.l.b16 %v749_v59  ;;  %v992_v39 = vunpack.c.l.b16 %v750_v32  ;;  %v659_v59 = vld [vmem:[#allocation2 + $0xa9] sm:$0xff]  ;;  %v660_v32 = vld [vmem:[#allocation2 + $0xb1] sm:$0xff] }
  0x5e   : > { %3953 = vst [vmem:[#allocation11_spill] sm:$0xff] %v3434_v2  ;;  %v3468_v13 = vpack.c.b16 %v904_v23, %v903_v21 }
  0x5f   : > { %1575 = vmatmul.bf16.gmra.mxu3 %v3331_v50  ;;  %v3477_v34 = vpack.c.b16 %v992_v39, %v991_v37  ;;  %v691_v37 = vpack.c.bf16 %v659_v59, %v659_v59  ;;  %v692_v39 = vpack.c.bf16 %v660_v32, %v660_v32 }
  0x60   : > { %3955 = vst [vmem:[#allocation13_spill] sm:$0xff] %v3468_v13 }
  0x61   : > { %1540 = vmatmul.bf16.gmra.mxu1 %v3334_v55 }
  0x67   : > { %1520 = vmatmul.bf16.gmra.mxu0 %v3350_v19 }
  0x6d   : > { %1560 = vmatmul.bf16.gmra.mxu2 %v3353_v29 }
  0x6f   : > { %1580 = vmatmul.bf16.gmra.mxu3 %v3355_v30 }
  0x71   : > { %1594 = vmatmul.bf16.vlgmr.msrb.gmra.mxu1 %v3925_v60 }
  0x77   : > { %1861 = vmatmul.bf16.vlgmr.msrb.gmra.mxu0 %v923_v45 }
  0x7d   : > { %1683 = vmatmul.bf16.vlgmr.msrb.gmra.mxu2 %v3925_v60  ;;  %v2894_v60 = vld [vmem:[%s3922_s3 + $0x218] sm:$0xff] }
  0x7e   : > { %2213 = vmatpush.bf16.msra.mxu0 %v2894_v60  ;;  %v723_v60 = vld [vmem:[#allocation2 + $0xaa] sm:$0xff] }
  0x7f   : > { %1772 = vmatmul.bf16.vlgmr.msrb.gmra.mxu3 %v3272_v24  ;;  %v741_v24 = vpack.c.bf16 %v709_v52, %v709_v52  ;;  %v715_v52 = vld [vmem:[#allocation2 + $0x4a] sm:$0xff] }
  0x80   : > { %v747_v3 = vpack.c.bf16 %v715_v52, %v715_v52  ;;  %v689_v52 = vpack.c.bf16 %v3235_v48, %v3235_v48 }
  0x81   : > { %1599 = vmatmul.bf16.gmra.mxu1 %v923_v45  ;;  %v983_v4 = vunpack.c.l.b16 %v741_v24  ;;  %v988_v45 = vunpack.c.l.b16 %v746_v14  ;;  %v748_v24 = vpack.c.bf16 %v716_v53, %v716_v53  ;;  %v690_v53 = vpack.c.bf16 %v3244_v56, %v3244_v56 }
  0x83   : > { %v3391_v6 = vpack.c.b16 %v984_v5, %v983_v4  ;;  %v3421_v49 = vpack.c.b16 %v988_v45, %v987_v41  ;;  %v989_v4 = vunpack.c.l.b16 %v747_v3  ;;  %v990_v1 = vunpack.c.l.b16 %v748_v24  ;;  %v719_v3 = vld [vmem:[#allocation2 + $0x7a] sm:$0xff]  ;;  %v720_v24 = vld [vmem:[#allocation2 + $0x82] sm:$0xff] }
  0x84   : > { %v751_v48 = vpack.c.bf16 %v719_v3, %v719_v3  ;;  %v752_v11 = vpack.c.bf16 %v720_v24, %v720_v24  ;;  %v721_v3 = vld [vmem:[#allocation2 + $0x92] sm:$0xff]  ;;  %v722_v24 = vld [vmem:[#allocation2 + $0x9a] sm:$0xff] }
  0x85   : > { %v3439_v5 = vpack.c.b16 %v990_v1, %v989_v4  ;;  %v905_v4 = vunpack.c.l.b16 %v689_v52  ;;  %v906_v1 = vunpack.c.l.b16 %v690_v53  ;;  %v754_v59 = vpack.c.bf16 %v722_v24, %v722_v24 }
  0x86   : > { %v993_v21 = vunpack.c.l.b16 %v751_v48  ;;  %v994_v23 = vunpack.c.l.b16 %v752_v11  ;;  %v2878_v48 = vld [vmem:[%s3922_s3 + $0x198] sm:$0xff] }
  0x87   : > { %1866 = vmatmul.bf16.gmra.mxu0 %v3367_v46  ;;  %v3496_v56 = vpack.c.b16 %v906_v1, %v905_v4  ;;  %v907_v4 = vunpack.c.l.b16 %v691_v37  ;;  %v908_v1 = vunpack.c.l.b16 %v692_v39  ;;  %v2886_v11 = vld [vmem:[%s3922_s3 + $0x1d8] sm:$0xff]  ;;  %2035 = vmatpush.bf16.msra.mxu2 %v2878_v48 }
  0x88   : > { %v3505_v35 = vpack.c.b16 %v994_v23, %v993_v21  ;;  %v753_v23 = vpack.c.bf16 %v721_v3, %v721_v3  ;;  %2124 = vmatpush.bf16.msra.mxu3 %v2886_v11  ;;  %v2870_v39 = vld [vmem:[%s3922_s3 + $0x158] sm:$0xff] }
  0x89   : > { %3958 = vst [vmem:[#allocation16_spill] sm:$0xff] %v3496_v56  ;;  %v3526_v37 = vpack.c.b16 %v908_v1, %v907_v4  ;;  %1946 = vmatpush.bf16.msra.mxu1 %v2870_v39  ;;  %v661_v4 = vld [vmem:[#allocation2 + $0xc1] sm:$0xff]  ;;  %v662_v1 = vld [vmem:[#allocation2 + $0xc9] sm:$0xff] }
  0x8a   : > { %3959 = vst [vmem:[#allocation17_spill] sm:$0xff] %v3505_v35 }
  0x8b   : > { %3962 = vst [vmem:[#allocation20_spill] sm:$0xff] %v3526_v37 }
  0x8d   : > { %1688 = vmatmul.bf16.gmra.mxu2 %v3391_v6 }
  0x8f   : > { %1777 = vmatmul.bf16.gmra.mxu3 %v3320_v27 }
  0x91   : > { %1604 = vmatmul.bf16.gmra.mxu1 %v3367_v46 }
  0x97   : > { %1871 = vmatmul.bf16.gmra.mxu0 %v3379_v63 }
  0x9d   : > { %1693 = vmatmul.bf16.gmra.mxu2 %v3397_v18 }
  0x9f   : > { %1782 = vmatmul.bf16.gmra.mxu3 %v3350_v19 }
  0xa1   : > { %1609 = vmatmul.bf16.gmra.mxu1 %v3379_v63 }
  0xa7   : > { %1876 = vmatmul.bf16.gmra.mxu0 %v3418_v40 }
  0xa8   : > { %v3423_v28 = vpop.f32.mrf.mxu1 }
  0xa9   : > { %v3431_v61 = vpop.f32.mrf.mxu0 }
  0xad   : > { %1698 = vmatmul.bf16.gmra.mxu2 %v3421_v49 }
  0xaf   : > { %1787 = vmatmul.bf16.gmra.mxu3 %v3082_v38 }
  0xb0   : > { %v3436_v12 = vpop.f32.mrf.mxu1 }
  0xb1   : > { %1614 = vmatmul.bf16.gmra.mxu1 %v3418_v40  ;;  %v3441_v7 = vpop.f32.mrf.mxu0 }
  0xb7   : > { %1881 = vmatmul.bf16.gmra.mxu0 %v3434_v2 }
  0xbd   : > { %1703 = vmatmul.bf16.gmra.mxu2 %v3439_v5 }
  0xbe   : > { %v3448_v15 = vpop.f32.mrf.mxu1 }
  0xbf   : > { %1792 = vmatmul.bf16.gmra.mxu3 %v3227_v42 }
  0xc0   : > { %v3457_v26 = vpop.f32.mrf.mxu2 }
  0xc1   : > { %1619 = vmatmul.bf16.gmra.mxu1 %v3434_v2 }
  0xc2   : > { %v3460_v33 = vpop.f32.mrf.mxu3 }
  0xc3   : > { %3954 = vst [vmem:[#allocation12_spill] sm:$0xff] %v3460_v33 }
  0xc4   : > { %v3470_v14 = vpop.f32.mrf.mxu0 }
  0xc6   : > { %v3472_v41 = vpop.f32.mrf.mxu1 }
  0xc7   : > { %1886 = vmatmul.bf16.gmra.mxu0 %v3468_v13 }
  0xc8   : > { %v3475_v45 = vpop.f32.mrf.mxu2 }
  0xca   : > { %v3479_v47 = vpop.f32.mrf.mxu3 }
  0xcb   : > { %3956 = vst [vmem:[#allocation14_spill] sm:$0xff] %v3479_v47 }
  0xcc   : > { %v3485_v62 = vpop.f32.mrf.mxu0 }
  0xcd   : > { %1708 = vmatmul.bf16.gmra.mxu2 %v3477_v34 }
  0xce   : > { %v3488_v57 = vpop.f32.mrf.mxu1 }
  0xcf   : > { %1797 = vmatmul.bf16.gmra.mxu3 %v3291_v58 }
  0xd0   : > { %v3491_v9 = vpop.f32.mrf.mxu2 }
  0xd1   : > { %1624 = vmatmul.bf16.gmra.mxu1 %v3468_v13 }
  0xd2   : > { %v3494_v16 = vpop.f32.mrf.mxu3 }
  0xd3   : > { %3957 = vst [vmem:[#allocation15_spill] sm:$0xff] %v3494_v16  ;;  %v995_v16 = vunpack.c.l.b16 %v753_v23 }
  0xd4   : > { %v3498_v17 = vpop.f32.mrf.mxu0 }
  0xd6   : > { %v3500_v25 = vpop.f32.mrf.mxu1 }
  0xd7   : > { %1891 = vmatmul.bf16.gmra.mxu0 %v3496_v56 }
  0xd8   : > { %v3503_v54 = vpop.f32.mrf.mxu2 }
  0xda   : > { %v3507_v36 = vpop.f32.mrf.mxu3 }
  0xdb   : > { %3960 = vst [vmem:[#allocation18_spill] sm:$0xff] %v3507_v36 }
  0xdc   : > { %v3509_v52 = vpop.f32.mrf.mxu0 }
  0xdd   : > { %1713 = vmatmul.bf16.gmra.mxu2 %v3505_v35 }
  0xde   : > { %v3512_v53 = vpop.f32.mrf.mxu1 }
  0xdf   : > { %1802 = vmatmul.bf16.gmra.mxu3 %v3334_v55  ;;  %v694_v55 = vpack.c.bf16 %v662_v1, %v662_v1 }
  0xe0   : > { %v3521_v21 = vpop.f32.mrf.mxu2 }
  0xe1   : > { %1629 = vmatmul.bf16.gmra.mxu1 %v3496_v56  ;;  %v996_v56 = vunpack.c.l.b16 %v754_v59  ;;  %v724_v59 = vld [vmem:[#allocation2 + $0xb2] sm:$0xff]  ;;  %v910_v33 = vunpack.c.l.b16 %v694_v55 }
  0xe2   : > { %v3524_v32 = vpop.f32.mrf.mxu3 }
  0xe3   : > { %3961 = vst [vmem:[#allocation19_spill] sm:$0xff] %v3524_v32  ;;  %v3541_v48 = vpack.c.b16 %v996_v56, %v995_v16  ;;  %v693_v32 = vpack.c.bf16 %v661_v4, %v661_v4  ;;  %v755_v16 = vpack.c.bf16 %v723_v60, %v723_v60  ;;  %v756_v56 = vpack.c.bf16 %v724_v59, %v724_v59 }
  0xe4   : > { %v3534_v36 = vpop.f32.mrf.mxu0  ;;  %v695_v60 = vpack.c.bf16 %v3195_v0, %v3195_v0  ;;  %v2885_v0 = vld [vmem:[%s3922_s3 + $0x1d0] sm:$0xff] }
  0xe5   : > { %3963 = vst [vmem:[#allocation21_spill] sm:$0xff] %v3541_v48  ;;  %v909_v13 = vunpack.c.l.b16 %v693_v32  ;;  %v998_v35 = vunpack.c.l.b16 %v756_v56  ;;  %v726_v56 = vld [vmem:[#allocation2 + $0xca] sm:$0xff]  ;;  %2125 = vmatpush.bf16.msra.mxu3 %v2885_v0 }
  0xe6   : > { %v3536_v3 = vpop.f32.mrf.mxu1 }
  0xe7   : > { %1896 = vmatmul.bf16.gmra.mxu0 %v3526_v37  ;;  %v3555_v1 = vpack.c.b16 %v910_v33, %v909_v13  ;;  %v696_v33 = vpack.c.bf16 %v3199_v8, %v3199_v8 }
  0xe8   : > { %v3539_v24 = vpop.f32.mrf.mxu2 }
  0xe9   : > { %3966 = vst [vmem:[#allocation24_spill] sm:$0xff] %v3555_v1 }
  0xea   : > { %v3543_v11 = vpop.f32.mrf.mxu3 }
  0xeb   : > { %3964 = vst [vmem:[#allocation22_spill] sm:$0xff] %v3543_v11 }
  0xec   : > { %v3545_v47 = vpop.f32.mrf.mxu0 }
  0xed   : > { %1718 = vmatmul.bf16.gmra.mxu2 %v3541_v48  ;;  %v997_v48 = vunpack.c.l.b16 %v755_v16  ;;  %v725_v16 = vld [vmem:[#allocation2 + $0xc2] sm:$0xff] }
  0xee   : > { %v1595_v23 = vpop.f32.mrf.mxu1 }
  0xef   : > { %1807 = vmatmul.bf16.gmra.mxu3 %v3205_v20  ;;  %v1596_v39 = vadd.f32 %v1595_v23, %v3431_v61  ;;  %v3561_v55 = vpack.c.b16 %v998_v35, %v997_v48  ;;  %v912_v35 = vunpack.c.l.b16 %v696_v33  ;;  %v2877_v48 = vld [vmem:[%s3922_s3 + $0x190] sm:$0xff] }
  0xf0   : > { %v3550_v58 = vpop.f32.mrf.mxu2  ;;  %2036 = vmatpush.bf16.msra.mxu2 %v2877_v48  ;;  %v2869_v33 = vld [vmem:[%s3922_s3 + $0x150] sm:$0xff] }
  0xf1   : > { %1634 = vmatmul.bf16.gmra.mxu1 %v3526_v37  ;;  %v758_v37 = vpack.c.bf16 %v726_v56, %v726_v56 }
  0xf2   : > { %v3553_v4 = vpop.f32.mrf.mxu3  ;;  %1947 = vmatpush.bf16.msra.mxu1 %v2869_v33  ;;  %v727_v33 = vld [vmem:[#allocation2 + $0xda] sm:$0xff] }
  0xf3   : > { %3965 = vst [vmem:[#allocation23_spill] sm:$0xff] %v3553_v4  ;;  %v757_v4 = vpack.c.bf16 %v725_v16, %v725_v16 }
  0xf4   : > { %v1862_v11 = vpop.f32.mrf.mxu0 }
  0xf6   : > { %v1597_v2 = vpop.f32.mrf.mxu1 }
  0xf7   : > { %1901 = vmatmul.bf16.gmra.mxu0 %v3555_v1  ;;  %v1598_v61 = vadd.f32 %v1597_v2, %v3441_v7  ;;  %v911_v7 = vunpack.c.l.b16 %v695_v60 }
  0xf8   : > { %v3559_v32 = vpop.f32.mrf.mxu2 }
  0xf9   : > { %v3579_v60 = vpack.c.b16 %v912_v35, %v911_v7 }
  0xfa   : > { %v3563_v23 = vpop.f32.mrf.mxu3 }
  0xfb   : > { %3967 = vst [vmem:[#allocation25_spill] sm:$0xff] %v3563_v23 }
  0xfc   : > { %v1864_v13 = vpop.f32.mrf.mxu0 }
  0xfd   : > { %1723 = vmatmul.bf16.gmra.mxu2 %v3561_v55 }
  0xfe   : > { %v1600_v59 = vpop.f32.mrf.mxu1 }
  0xff   : > { %1812 = vmatmul.bf16.gmra.mxu3 %v3281_v43  ;;  %v1601_v2 = vadd.f32 %v1600_v59, %v3470_v14  ;;  %v2893_v59 = vld [vmem:[%s3922_s3 + $0x210] sm:$0xff] }
 0x100   : > { %v1684_v8 = vpop.f32.mrf.mxu2  ;;  %2214 = vmatpush.bf16.msra.mxu0 %v2893_v59 }
 0x101   : > { %v1685_v23 = vadd.f32 %v1684_v8, %v1596_v39  ;;  %1639 = vmatmul.bf16.gmra.mxu1 %v3555_v1  ;;  %v999_v39 = vunpack.c.l.b16 %v757_v4  ;;  %v1000_v8 = vunpack.c.l.b16 %v758_v37  ;;  %v697_v1 = vpack.c.bf16 %v3261_v10, %v3261_v10 }
 0x102   : > { %v1773_v43 = vpop.f32.mrf.mxu3  ;;  %v698_v37 = vpack.c.bf16 %v3268_v22, %v3268_v22  ;;  %v759_v10 = vpack.c.bf16 %v727_v33, %v727_v33 }
 0x103   : > { %v1774_v14 = vadd.f32 %v1773_v43, %v1685_v23  ;;  %v3591_v35 = vpack.c.b16 %v1000_v8, %v999_v39  ;;  %v913_v59 = vunpack.c.l.b16 %v697_v1 }
 0x104   : > { %v1867_v20 = vpop.f32.mrf.mxu0  ;;  %v914_v39 = vunpack.c.l.b16 %v698_v37  ;;  %v668_v37 = vld [vmem:[#allocation2 + $0x111] sm:$0xff] }
 0x105   : > { %v3587_v16 = vadd.f32 %v1862_v11, %v1774_v14 }
 0x106   : > { %v1602_v56 = vpop.f32.mrf.mxu1 }
 0x107   : > { %3968 = vst [vmem:[#allocation26_spill] sm:$0xff] %v3587_v16  ;;  %1906 = vmatmul.bf16.gmra.mxu0 %v3579_v60  ;;  %v1603_v43 = vadd.f32 %v1602_v56, %v3485_v62  ;;  %v728_v62 = vld [vmem:[#allocation2 + $0xe2] sm:$0xff] }
 0x108   : > { %v1686_v23 = vpop.f32.mrf.mxu2  ;;  %v760_v22 = vpack.c.bf16 %v728_v62, %v728_v62 }
 0x109   : > { %v1687_v7 = vadd.f32 %v1686_v23, %v1598_v61 }
 0x10a   : > { %v1775_v48 = vpop.f32.mrf.mxu3 }
 0x10b   : > { %v1776_v0 = vadd.f32 %v1775_v48, %v1687_v7  ;;  %v3603_v48 = vpack.c.b16 %v914_v39, %v913_v59  ;;  %v700_v39 = vpack.c.bf16 %v668_v37, %v668_v37 }
 0x10c   : > { %v1869_v4 = vpop.f32.mrf.mxu0 }
 0x10d   : > { %1728 = vmatmul.bf16.gmra.mxu2 %v3591_v35  ;;  %v3598_v11 = vadd.f32 %v1864_v13, %v1776_v0  ;;  %v1001_v0 = vunpack.c.l.b16 %v759_v10 }
 0x10e   : > { %v1605_v14 = vpop.f32.mrf.mxu1 }
 0x10f   : > { %3969 = vst [vmem:[#allocation27_spill] sm:$0xff] %v3598_v11  ;;  %1817 = vmatmul.bf16.gmra.mxu3 %v3329_v44  ;;  %v1606_v61 = vadd.f32 %v1605_v14, %v3498_v17  ;;  %v1002_v11 = vunpack.c.l.b16 %v760_v22  ;;  %v729_v22 = vld [vmem:[#allocation2 + $0xf2] sm:$0xff] }
 0x110   : > { %v1689_v8 = vpop.f32.mrf.mxu2 }
 0x111   : > { %v1690_v56 = vadd.f32 %v1689_v8, %v1601_v2  ;;  %1644 = vmatmul.bf16.gmra.mxu1 %v3579_v60  ;;  %v667_v2 = vld [vmem:[#allocation2 + $0x109] sm:$0xff]  ;;  %v3609_v33 = vpack.c.b16 %v1002_v11, %v1001_v0 }
 0x112   : > { %v1778_v23 = vpop.f32.mrf.mxu3  ;;  %v699_v59 = vpack.c.bf16 %v667_v2, %v667_v2  ;;  %v2876_v11 = vld [vmem:[%s3922_s3 + $0x188] sm:$0xff] }
 0x113   : > { %v1779_v7 = vadd.f32 %v1778_v23, %v1690_v56  ;;  %v730_v23 = vld [vmem:[#allocation2 + $0xfa] sm:$0xff]  ;;  %2037 = vmatpush.bf16.msra.mxu2 %v2876_v11  ;;  %v670_v11 = vld [vmem:[#allocation2 + $0x129] sm:$0xff] }
 0x114   : > { %v1872_v13 = vpop.f32.mrf.mxu0  ;;  %v762_v2 = vpack.c.bf16 %v730_v23, %v730_v23 }
 0x115   : > { %v3605_v16 = vadd.f32 %v1867_v20, %v1779_v7  ;;  %v2884_v7 = vld [vmem:[%s3922_s3 + $0x1c8] sm:$0xff] }
 0x116   : > { %v1607_v44 = vpop.f32.mrf.mxu1  ;;  %2126 = vmatpush.bf16.msra.mxu3 %v2884_v7 }
 0x117   : > { %1911 = vmatmul.bf16.gmra.mxu0 %v3603_v48  ;;  %v1608_v17 = vadd.f32 %v1607_v44, %v3509_v52  ;;  %v915_v52 = vunpack.c.l.b16 %v699_v59 }
 0x118   : > { %v1691_v1 = vpop.f32.mrf.mxu2 }
 0x119   : > { %v1692_v14 = vadd.f32 %v1691_v1, %v1603_v43  ;;  %v916_v43 = vunpack.c.l.b16 %v700_v39  ;;  %v761_v1 = vpack.c.bf16 %v729_v22, %v729_v22  ;;  %v1004_v39 = vunpack.c.l.b16 %v762_v2 }
 0x11a   : > { %v1780_v62 = vpop.f32.mrf.mxu3 }
 0x11b   : > { %v1781_v8 = vadd.f32 %v1780_v62, %v1692_v14  ;;  %v3623_v14 = vpack.c.b16 %v916_v43, %v915_v52  ;;  %v2868_v62 = vld [vmem:[%s3922_s3 + $0x148] sm:$0xff] }
 0x11c   : > { %v1874_v56 = vpop.f32.mrf.mxu0  ;;  %1948 = vmatpush.bf16.msra.mxu1 %v2868_v62  ;;  %v669_v43 = vld [vmem:[#allocation2 + $0x121] sm:$0xff]  ;;  %v731_v62 = vld [vmem:[#allocation2 + $0x10a] sm:$0xff] }
 0x11d   : > { %1733 = vmatmul.bf16.gmra.mxu2 %v3609_v33  ;;  %v3612_v20 = vadd.f32 %v1869_v4, %v1781_v8  ;;  %3971 = vst [vmem:[#allocation29_spill] sm:$0xff] %v3623_v14  ;;  %v2892_v8 = vld [vmem:[%s3922_s3 + $0x208] sm:$0xff] }
 0x11e   : > { %v1610_v10 = vpop.f32.mrf.mxu1  ;;  %2215 = vmatpush.bf16.msra.mxu0 %v2892_v8  ;;  %v732_v8 = vld [vmem:[#allocation2 + $0x112] sm:$0xff] }
 0x11f   : > { %3970 = vst [vmem:[#allocation28_spill] sm:$0xff] %v3612_v20  ;;  %1822 = vmatmul.bf16.gmra.mxu3 %v3353_v29  ;;  %v1611_v44 = vadd.f32 %v1610_v10, %v3534_v36  ;;  %v701_v20 = vpack.c.bf16 %v669_v43, %v669_v43 }
 0x120   : > { %v1694_v0 = vpop.f32.mrf.mxu2 }
 0x121   : > { %v1695_v4 = vadd.f32 %v1694_v0, %v1606_v61  ;;  %1649 = vmatmul.bf16.gmra.mxu1 %v3603_v48  ;;  %v1003_v61 = vunpack.c.l.b16 %v761_v1  ;;  %v702_v1 = vpack.c.bf16 %v670_v11, %v670_v11 }
 0x122   : > { %v1783_v37 = vpop.f32.mrf.mxu3 }
 0x123   : > { %v1784_v36 = vadd.f32 %v1783_v37, %v1695_v4  ;;  %v3635_v0 = vpack.c.b16 %v1004_v39, %v1003_v61  ;;  %v763_v61 = vpack.c.bf16 %v731_v62, %v731_v62  ;;  %v764_v39 = vpack.c.bf16 %v732_v8, %v732_v8 }
 0x124   : > { %v1877_v59 = vpop.f32.mrf.mxu0 }
 0x125   : > { %v3631_v10 = vadd.f32 %v1872_v13, %v1784_v36 }
 0x126   : > { %v1612_v22 = vpop.f32.mrf.mxu1 }
 0x127   : > { %3972 = vst [vmem:[#allocation30_spill] sm:$0xff] %v3631_v10  ;;  %1916 = vmatmul.bf16.gmra.mxu0 %v3623_v14  ;;  %v1613_v23 = vadd.f32 %v1612_v22, %v3545_v47  ;;  %v917_v47 = vunpack.c.l.b16 %v701_v20  ;;  %v918_v22 = vunpack.c.l.b16 %v702_v1 }
 0x128   : > { %v1696_v52 = vpop.f32.mrf.mxu2 }
 0x129   : > { %v1697_v7 = vadd.f32 %v1696_v52, %v1608_v17  ;;  %v3642_v11 = vpack.c.b16 %v918_v22, %v917_v47 }
 0x12a   : > { %v1785_v4 = vpop.f32.mrf.mxu3 }
 0x12b   : > { %v1786_v37 = vadd.f32 %v1785_v4, %v1697_v7  ;;  %3974 = vst [vmem:[#allocation32_spill] sm:$0xff] %v3642_v11  ;;  %v1005_v7 = vunpack.c.l.b16 %v763_v61  ;;  %v1006_v4 = vunpack.c.l.b16 %v764_v39 }
 0x12c   : > { %v1879_v2 = vpop.f32.mrf.mxu0 }
 0x12d   : > { %1738 = vmatmul.bf16.gmra.mxu2 %v3635_v0  ;;  %v3638_v13 = vadd.f32 %v1874_v56, %v1786_v37  ;;  %v3647_v62 = vpack.c.b16 %v1006_v4, %v1005_v7  ;;  %v733_v7 = vld [vmem:[#allocation2 + $0x122] sm:$0xff]  ;;  %v734_v4 = vld [vmem:[#allocation2 + $0x12a] sm:$0xff] }
 0x12e   : > { %v1615_v36 = vpop.f32.mrf.mxu1 }
 0x12f   : > { %3973 = vst [vmem:[#allocation31_spill] sm:$0xff] %v3638_v13  ;;  %1827 = vmatmul.bf16.gmra.mxu3 %v3217_v31 }
 0x130   : > { %v1699_v10 = vpop.f32.mrf.mxu2 }
 0x131   : > { %v1700_v17 = vadd.f32 %v1699_v10, %v1611_v44  ;;  %1654 = vmatmul.bf16.gmra.mxu1 %v3623_v14  ;;  %v671_v44 = vld [vmem:[#allocation2 + $0x139] sm:$0xff]  ;;  %v672_v10 = vld [vmem:[#allocation2 + $0x141] sm:$0xff]  ;;  %v267_v14 = vld [vmem:[%s3006_s29 + $0xf0] sm:$0xff] }
 0x132   : > { %v1788_v52 = vpop.f32.mrf.mxu3  ;;  %v703_v47 = vpack.c.bf16 %v671_v44, %v671_v44  ;;  %v704_v22 = vpack.c.bf16 %v672_v10, %v672_v10 }
 0x133   : > { %v1789_v43 = vadd.f32 %v1788_v52, %v1700_v17  ;;  %v268_v52 = vld [vmem:[%s3006_s29 + $0xf8] sm:$0xff] }
 0x134   : > { %v1882_v56 = vpop.f32.mrf.mxu0 }
 0x135   : > { %v3644_v37 = vadd.f32 %v1877_v59, %v1789_v43  ;;  %v2935_v59 = vld [vmem:[%s3920_s1] ss:$0 sm:$0xff] }
 0x136   : > { %v1617_v13 = vpop.f32.mrf.mxu1  ;;  %v303_v61 = vmul.f32 %v2935_v59, %v267_v14  ;;  %v304_v39 = vmul.f32 %v2935_v59, %v268_v52  ;;  %v920_v14 = vunpack.c.l.b16 %v704_v22 }
 0x137   : > { %3975 = vst [vmem:[#allocation33_spill] sm:$0xff] %v3644_v37  ;;  %1921 = vmatmul.bf16.gmra.mxu0 %v3642_v11 }
 0x138   : > { %v1701_v20 = vpop.f32.mrf.mxu2 }
 0x139   : > { %v1702_v1 = vadd.f32 %v1701_v20, %v1613_v23  ;;  %v2936_v20 = vld [vmem:[%s3921_s2] ss:$0 sm:$0xff] }
 0x13a   : > { %v1790_v8 = vpop.f32.mrf.mxu3  ;;  %v339_v44 = vadd.f32 %v2936_v20, %v303_v61  ;;  %v340_v10 = vadd.f32 %v2936_v20, %v304_v39  ;;  %v2867_v20 = vld [vmem:[%s3922_s3 + $0x140] sm:$0xff] }
 0x13b   : > { %v1791_v17 = vadd.f32 %v1790_v8, %v1702_v1  ;;  %v1616_v1 = vadd.f32 %v1615_v36, %v3423_v28  ;;  %v919_v8 = vunpack.c.l.b16 %v703_v47  ;;  %v765_v28 = vpack.c.bf16 %v733_v7, %v733_v7  ;;  %1949 = vmatpush.bf16.msra.mxu1 %v2867_v20  ;;  %v735_v20 = vld [vmem:[#allocation2 + $0x13a] sm:$0xff] }
 0x13c   : > { %v1884_v31 = vpop.f32.mrf.mxu0  ;;  %v3668_v59 = vmax.f32 %v339_v44, 0.0  ;;  %v766_v36 = vpack.c.bf16 %v734_v4, %v734_v4  ;;  %v2891_v44 = vld [vmem:[%s3922_s3 + $0x200] sm:$0xff] }
 0x13d   : > { %1743 = vmatmul.bf16.gmra.mxu2 %v3647_v62  ;;  %v3655_v43 = vadd.f32 %v1879_v2, %v1791_v17  ;;  %v2875_v2 = vld [vmem:[%s3922_s3 + $0x180] sm:$0xff]  ;;  %v3674_v39 = vpack.c.b16 %v920_v14, %v919_v8  ;;  %v1007_v4 = vunpack.c.l.b16 %v765_v28  ;;  %2216 = vmatpush.bf16.msra.mxu0 %v2891_v44  ;;  %v1618_v8 = vadd.f32 %v1617_v13, %v3436_v12 }
 0x13e   : > { %v1620_v23 = vpop.f32.mrf.mxu1  ;;  %v2883_v17 = vld [vmem:[%s3922_s3 + $0x1c0] sm:$0xff]  ;;  %2038 = vmatpush.bf16.msra.mxu2 %v2875_v2  ;;  %435 = vst [vmem:[#allocation2 + $0x169] sm:$0xff] %v3668_v59 }
 0x13f   : > { %3976 = vst [vmem:[#allocation34_spill] sm:$0xff] %v3655_v43  ;;  %1832 = vmatmul.bf16.gmra.mxu3 %v3285_v51  ;;  %v3670_v43 = vmax.f32 %v340_v10, 0.0  ;;  %v1008_v10 = vunpack.c.l.b16 %v766_v36  ;;  %v736_v12 = vld [vmem:[#allocation2 + $0x142] sm:$0xff]  ;;  %v1621_v13 = vadd.f32 %v1620_v23, %v3448_v15 }
 0x140   : > { %v1704_v52 = vpop.f32.mrf.mxu2  ;;  %2127 = vmatpush.bf16.msra.mxu3 %v2883_v17  ;;  %v673_v17 = vld [vmem:[#allocation2 + $0x151] sm:$0xff] }
 0x141   : > { %v1705_v61 = vadd.f32 %v1704_v52, %v1616_v1  ;;  %1659 = vmatmul.bf16.gmra.mxu1 %v3642_v11  ;;  %436 = vst [vmem:[#allocation2 + $0x171] sm:$0xff] %v3670_v43  ;;  %v674_v52 = vld [vmem:[#allocation2 + $0x159] sm:$0xff]  ;;  %v705_v51 = vpack.c.bf16 %v673_v17, %v673_v17 }
 0x142   : > { %v1793_v47 = vpop.f32.mrf.mxu3  ;;  %v706_v28 = vpack.c.bf16 %v674_v52, %v674_v52 }
 0x143   : > { %v1794_v22 = vadd.f32 %v1793_v47, %v1705_v61  ;;  %v3687_v47 = vpack.c.b16 %v1008_v10, %v1007_v4  ;;  %v921_v44 = vunpack.c.l.b16 %v705_v51 }
 0x144   : > { %v1887_v7 = vpop.f32.mrf.mxu0 }
 0x145   : > { %v3683_v1 = vadd.f32 %v1882_v56, %v1794_v22 }
 0x146   : > { %v1622_v2 = vpop.f32.mrf.mxu1 }
 0x147   : > { %3977 = vst [vmem:[#allocation35_spill] sm:$0xff] %v3683_v1  ;;  %1926 = vmatmul.bf16.gmra.mxu0 %v3674_v39  ;;  %v1623_v23 = vadd.f32 %v1622_v2, %v3472_v41  ;;  %v737_v2 = vld [vmem:[#allocation2 + $0x152] sm:$0xff] }
 0x148   : > { %v1706_v14 = vpop.f32.mrf.mxu2 }
 0x149   : > { %v1707_v61 = vadd.f32 %v1706_v14, %v1618_v8  ;;  %v922_v8 = vunpack.c.l.b16 %v706_v28  ;;  %v768_v14 = vpack.c.bf16 %v736_v12, %v736_v12 }
 0x14a   : > { %v1795_v11 = vpop.f32.mrf.mxu3 }
 0x14b   : > { %v1796_v37 = vadd.f32 %v1795_v11, %v1707_v61  ;;  %v767_v11 = vpack.c.bf16 %v735_v20, %v735_v20  ;;  %v3695_v61 = vpack.c.b16 %v922_v8, %v921_v44  ;;  %v707_v44 = vpack.c.bf16 %v3668_v59, %v3668_v59  ;;  %v612_v59 = vld [vmem:[#allocation2 + $0x170] sm:$0xff] }
 0x14c   : > { %v1889_v36 = vpop.f32.mrf.mxu0  ;;  %v708_v8 = vpack.c.bf16 %v3670_v43, %v3670_v43  ;;  %v769_v43 = vpack.c.bf16 %v737_v2, %v737_v2 }
 0x14d   : > { %1748 = vmatmul.bf16.gmra.mxu2 %v3687_v47  ;;  %v3690_v56 = vadd.f32 %v1884_v31, %v1796_v37  ;;  %v1009_v37 = vunpack.c.l.b16 %v767_v11 }
 0x14e   : > { %v1625_v22 = vpop.f32.mrf.mxu1 }
 0x14f   : > { %3978 = vst [vmem:[#allocation36_spill] sm:$0xff] %v3690_v56  ;;  %1837 = vmatmul.bf16.gmra.mxu3 %v3331_v50  ;;  %v1010_v56 = vunpack.c.l.b16 %v768_v14  ;;  %v1626_v11 = vadd.f32 %v1625_v22, %v3488_v57  ;;  %v1052_v14 = vunpack.c.l.b16 %v708_v8  ;;  %v1011_v57 = vunpack.c.l.b16 %v769_v43 }
 0x150   : > { %v1709_v4 = vpop.f32.mrf.mxu2 }
 0x151   : > { %v1710_v10 = vadd.f32 %v1709_v4, %v1621_v13  ;;  %1664 = vmatmul.bf16.gmra.mxu1 %v3674_v39  ;;  %v3701_v13 = vpack.c.b16 %v1010_v56, %v1009_v37  ;;  %v1051_v56 = vunpack.c.l.b16 %v707_v44 }
 0x152   : > { %v1798_v17 = vpop.f32.mrf.mxu3 }
 0x153   : > { %v1799_v52 = vadd.f32 %v1798_v17, %v1710_v10  ;;  %v738_v10 = vld [vmem:[#allocation2 + $0x15a] sm:$0xff] }
 0x154   : > { %v1892_v31 = vpop.f32.mrf.mxu0 }
 0x155   : > { %v3697_v1 = vadd.f32 %v1887_v7, %v1799_v52  ;;  %v611_v52 = vld [vmem:[#allocation2 + $0x168] sm:$0xff] }
 0x156   : > { %v1627_v15 = vpop.f32.mrf.mxu1 }
 0x157   : > { %3979 = vst [vmem:[#allocation37_spill] sm:$0xff] %v3697_v1  ;;  %1931 = vmatmul.bf16.gmra.mxu0 %v3695_v61  ;;  %v1628_v8 = vadd.f32 %v1627_v15, %v3500_v25 }
 0x158   : > { %v1711_v51 = vpop.f32.mrf.mxu2 }
 0x159   : > { %v1712_v28 = vadd.f32 %v1711_v51, %v1623_v23  ;;  %v770_v23 = vpack.c.bf16 %v738_v10, %v738_v10 }
 0x15a   : > { %v1800_v20 = vpop.f32.mrf.mxu3 }
 0x15b   : > { %v1801_v12 = vadd.f32 %v1800_v20, %v1712_v28  ;;  %v643_v28 = vpack.c.bf16 %v611_v52, %v611_v52  ;;  %v644_v20 = vpack.c.bf16 %v612_v59, %v612_v59  ;;  %v1012_v22 = vunpack.c.l.b16 %v770_v23 }
 0x15c   : > { %v1894_v4 = vpop.f32.mrf.mxu0 }
 0x15d   : > { %1753 = vmatmul.bf16.gmra.mxu2 %v3701_v13  ;;  %v3708_v7 = vadd.f32 %v1889_v36, %v1801_v12  ;;  %v3713_v12 = vpack.c.b16 %v1052_v14, %v1051_v56 }
 0x15e   : > { %v1630_v41 = vpop.f32.mrf.mxu1 }
 0x15f   : > { %3980 = vst [vmem:[#allocation38_spill] sm:$0xff] %v3708_v7  ;;  %1842 = vmatmul.bf16.gmra.mxu3 %v3355_v30  ;;  %v1045_v30 = vunpack.c.l.b16 %v643_v28  ;;  %v1631_v25 = vadd.f32 %v1630_v41, %v3512_v53 }
 0x160   : > { %v1714_v17 = vpop.f32.mrf.mxu2 }
 0x161   : > { %v1715_v37 = vadd.f32 %v1714_v17, %v1626_v11  ;;  %1669 = vmatmul.bf16.gmra.mxu1 %v3695_v61  ;;  %v1046_v11 = vunpack.c.l.b16 %v644_v20  ;;  %v3719_v17 = vpack.c.b16 %v1012_v22, %v1011_v57 }
 0x162   : > { %v1803_v51 = vpop.f32.mrf.mxu3 }
 0x163   : > { %v1804_v36 = vadd.f32 %v1803_v51, %v1715_v37  ;;  %v3721_v56 = vpack.c.b16 %v1046_v11, %v1045_v30 }
 0x164   : > { %v1897_v7 = vpop.f32.mrf.mxu0 }
 0x165   : > { %v3715_v1 = vadd.f32 %v1892_v31, %v1804_v36 }
 0x166   : > { %v1632_v44 = vpop.f32.mrf.mxu1 }
 0x167   : > { %1936 = vmatmul.bf16.gmra.mxu0 %v3713_v12  ;;  %v1633_v20 = vadd.f32 %v1632_v44, %v3536_v3 }
 0x168   : > { %v1716_v2 = vpop.f32.mrf.mxu2 }
 0x169   : > { %v1717_v10 = vadd.f32 %v1716_v2, %v1628_v8 }
 0x16a   : > { %v1805_v52 = vpop.f32.mrf.mxu3 }
 0x16b   : > { %v1806_v59 = vadd.f32 %v1805_v52, %v1717_v10 }
 0x16c   : > { %v1899_v14 = vpop.f32.mrf.mxu0 }
 0x16d   : > { %1758 = vmatmul.bf16.gmra.mxu2 %v3719_v17  ;;  %v3724_v31 = vadd.f32 %v1894_v4, %v1806_v59 }
 0x16e   : > { %v1635_v37 = vpop.f32.mrf.mxu1 }
 0x16f   : > { %1847 = vmatmul.bf16.gmra.mxu3 %v3721_v56  ;;  %v1636_v11 = vadd.f32 %v1635_v37, %v3457_v26 }
 0x170   : > { %v1719_v15 = vpop.f32.mrf.mxu2 }
 0x171   : > { %v1720_v43 = vadd.f32 %v1719_v15, %v1631_v25  ;;  %1950 = vmatmul.bf16.vlgmr.msra.gmra.mxu1 %v3391_v6 }
 0x172   : > { %v1808_v23 = vpop.f32.mrf.mxu3 }
 0x173   : > { %v1809_v51 = vadd.f32 %v1808_v23, %v1720_v43 }
 0x174   : > { %v1902_v36 = vpop.f32.mrf.mxu0 }
 0x175   : > { %v3729_v28 = vadd.f32 %v1897_v7, %v1809_v51 }
 0x176   : > { %v1637_v30 = vpop.f32.mrf.mxu1 }
 0x177   : > { %2217 = vmatmul.bf16.vlgmr.msra.gmra.mxu0 %v3397_v18  ;;  %v1638_v25 = vadd.f32 %v1637_v30, %v3475_v45 }
 0x178   : > { %v1721_v4 = vpop.f32.mrf.mxu2 }
 0x179   : > { %v1722_v57 = vadd.f32 %v1721_v4, %v1633_v20 }
 0x17a   : > { %v1810_v22 = vpop.f32.mrf.mxu3 }
 0x17b   : > { %v1811_v53 = vadd.f32 %v1810_v22, %v1722_v57 }
 0x17c   : > { %v1904_v41 = vpop.f32.mrf.mxu0 }
 0x17d   : > { %2039 = vmatmul.bf16.vlgmr.msra.gmra.mxu2 %v3320_v27  ;;  %v3734_v8 = vadd.f32 %v1899_v14, %v1811_v53 }
 0x17e   : > { %v1640_v6 = vpop.f32.mrf.mxu1 }
 0x17f   : > { %2128 = vmatmul.bf16.vlgmr.msra.gmra.mxu3 %v3367_v46  ;;  %v1641_v43 = vadd.f32 %v1640_v6, %v3491_v9 }
 0x180   : > { %v1724_v7 = vpop.f32.mrf.mxu2 }
 0x181   : > { %v1725_v2 = vadd.f32 %v1724_v7, %v1636_v11  ;;  %1955 = vmatmul.bf16.gmra.mxu1 %v3397_v18 }
 0x182   : > { %v1813_v3 = vpop.f32.mrf.mxu3 }
 0x183   : > { %v1814_v44 = vadd.f32 %v1813_v3, %v1725_v2 }
 0x184   : > { %v1907_v10 = vpop.f32.mrf.mxu0 }
 0x185   : > { %v3739_v52 = vadd.f32 %v1902_v36, %v1814_v44 }
 0x186   : > { %v1642_v59 = vpop.f32.mrf.mxu1 }
 0x187   : > { %2222 = vmatmul.bf16.gmra.mxu0 %v3421_v49  ;;  %v1643_v57 = vadd.f32 %v1642_v59, %v3503_v54 }
 0x188   : > { %v1726_v27 = vpop.f32.mrf.mxu2 }
 0x189   : > { %v1727_v14 = vadd.f32 %v1726_v27, %v1638_v25 }
 0x18a   : > { %v1815_v15 = vpop.f32.mrf.mxu3 }
 0x18b   : > { %v1816_v26 = vadd.f32 %v1815_v15, %v1727_v14 }
 0x18c   : > { %v1909_v37 = vpop.f32.mrf.mxu0 }
 0x18d   : > { %2044 = vmatmul.bf16.gmra.mxu2 %v3350_v19  ;;  %v3744_v46 = vadd.f32 %v1904_v41, %v1816_v26  ;;  %v3981_v26 = vld [vmem:[#allocation11_spill] sm:$0xff] }
 0x18e   : > { %v1645_v18 = vpop.f32.mrf.mxu1 }
 0x18f   : > { %2133 = vmatmul.bf16.gmra.mxu3 %v3379_v63  ;;  %v1646_v6 = vadd.f32 %v1645_v18, %v3521_v21 }
 0x190   : > { %v1729_v23 = vpop.f32.mrf.mxu2 }
 0x191   : > { %v1730_v51 = vadd.f32 %v1729_v23, %v1641_v43  ;;  %1960 = vmatmul.bf16.gmra.mxu1 %v3421_v49 }
 0x192   : > { %v1818_v45 = vpop.f32.mrf.mxu3 }
 0x193   : > { %v1819_v36 = vadd.f32 %v1818_v45, %v1730_v51 }
 0x194   : > { %v1912_v30 = vpop.f32.mrf.mxu0 }
 0x195   : > { %v3749_v20 = vadd.f32 %v1907_v10, %v1819_v36 }
 0x196   : > { %v1647_v4 = vpop.f32.mrf.mxu1 }
 0x197   : > { %2227 = vmatmul.bf16.gmra.mxu0 %v3439_v5  ;;  %v1648_v59 = vadd.f32 %v1647_v4, %v3539_v24 }
 0x198   : > { %v1731_v19 = vpop.f32.mrf.mxu2 }
 0x199   : > { %v1732_v22 = vadd.f32 %v1731_v19, %v1643_v57 }
 0x19a   : > { %v1820_v53 = vpop.f32.mrf.mxu3 }
 0x19b   : > { %v1821_v9 = vadd.f32 %v1820_v53, %v1732_v22  ;;  %v3983_v22 = vld [vmem:[#allocation7_spill] sm:$0xff] }
 0x19c   : > { %v1914_v41 = vpop.f32.mrf.mxu0 }
 0x19d   : > { %2049 = vmatmul.bf16.gmra.mxu2 %v3082_v38  ;;  %v3754_v63 = vadd.f32 %v1909_v37, %v1821_v9  ;;  %v3984_v9 = vld [vmem:[#allocation12_spill] sm:$0xff] }
 0x19e   : > { %v1650_v49 = vpop.f32.mrf.mxu1 }
 0x19f   : > { %2138 = vmatmul.bf16.gmra.mxu3 %v3418_v40  ;;  %v1651_v15 = vadd.f32 %v1650_v49, %v3550_v58  ;;  %v3985_v49 = vld [vmem:[#allocation13_spill] sm:$0xff] }
 0x1a0   : > { %v1734_v11 = vpop.f32.mrf.mxu2 }
 0x1a1   : > { %v1735_v7 = vadd.f32 %v1734_v11, %v1646_v6  ;;  %1965 = vmatmul.bf16.gmra.mxu1 %v3439_v5 }
 0x1a2   : > { %v1823_v54 = vpop.f32.mrf.mxu3 }
 0x1a3   : > { %v1824_v2 = vadd.f32 %v1823_v54, %v1735_v7 }
 0x1a4   : > { %v1917_v3 = vpop.f32.mrf.mxu0 }
 0x1a5   : > { %v3759_v44 = vadd.f32 %v1912_v30, %v1824_v2 }
 0x1a6   : > { %v1652_v10 = vpop.f32.mrf.mxu1 }
 0x1a7   : > { %2232 = vmatmul.bf16.gmra.mxu0 %v3477_v34  ;;  %v1653_v36 = vadd.f32 %v1652_v10, %v3559_v32  ;;  %v3986_v10 = vld [vmem:[#allocation14_spill] sm:$0xff] }
 0x1a8   : > { %v1736_v38 = vpop.f32.mrf.mxu2 }
 0x1a9   : > { %v1737_v25 = vadd.f32 %v1736_v38, %v1648_v59  ;;  %v3987_v38 = vld [vmem:[#allocation21_spill] sm:$0xff] }
 0x1aa   : > { %v1825_v27 = vpop.f32.mrf.mxu3 }
 0x1ab   : > { %v1826_v21 = vadd.f32 %v1825_v27, %v1737_v25 }
 0x1ac   : > { %v1919_v14 = vpop.f32.mrf.mxu0 }
 0x1ad   : > { %2054 = vmatmul.bf16.gmra.mxu2 %v3227_v42  ;;  %v3764_v40 = vadd.f32 %v1914_v41, %v1826_v21  ;;  %v3982_v42 = vld [vmem:[#allocation17_spill] sm:$0xff] }
 0x1ae   : > { %v1655_v5 = vpop.f32.mrf.mxu1 }
 0x1af   : > { %2143 = vmatmul.bf16.gmra.mxu3 %v3981_v26  ;;  %v1656_v41 = vadd.f32 %v1655_v5, %v3984_v9 }
 0x1b0   : > { %v1739_v37 = vpop.f32.mrf.mxu2 }
 0x1b1   : > { %v1740_v18 = vadd.f32 %v1739_v37, %v1651_v15  ;;  %1970 = vmatmul.bf16.gmra.mxu1 %v3477_v34  ;;  %v3988_v15 = vld [vmem:[#allocation9_spill] sm:$0xff] }
 0x1b2   : > { %v1828_v24 = vpop.f32.mrf.mxu3 }
 0x1b3   : > { %v1829_v43 = vadd.f32 %v1828_v24, %v1740_v18  ;;  %v3989_v18 = vld [vmem:[#allocation15_spill] sm:$0xff] }
 0x1b4   : > { %v1922_v23 = vpop.f32.mrf.mxu0 }
 0x1b5   : > { %v3769_v51 = vadd.f32 %v1917_v3, %v1829_v43  ;;  %v3990_v43 = vld [vmem:[#allocation16_spill] sm:$0xff] }
 0x1b6   : > { %v1657_v45 = vpop.f32.mrf.mxu1 }
 0x1b7   : > { %2237 = vmatmul.bf16.gmra.mxu0 %v3982_v42  ;;  %v1658_v59 = vadd.f32 %v1657_v45, %v3986_v10 }
 0x1b8   : > { %v1741_v30 = vpop.f32.mrf.mxu2 }
 0x1b9   : > { %v1742_v4 = vadd.f32 %v1741_v30, %v1653_v36 }
 0x1ba   : > { %v1830_v57 = vpop.f32.mrf.mxu3 }
 0x1bb   : > { %v1831_v58 = vadd.f32 %v1830_v57, %v1742_v4 }
 0x1bc   : > { %v1924_v19 = vpop.f32.mrf.mxu0 }
 0x1bd   : > { %2059 = vmatmul.bf16.gmra.mxu2 %v3983_v22  ;;  %v3774_v53 = vadd.f32 %v1919_v14, %v1831_v58  ;;  %v3991_v58 = vld [vmem:[#allocation18_spill] sm:$0xff] }
 0x1be   : > { %v1660_v34 = vpop.f32.mrf.mxu1 }
 0x1bf   : > { %2148 = vmatmul.bf16.gmra.mxu3 %v3985_v49  ;;  %v1661_v24 = vadd.f32 %v1660_v34, %v3989_v18 }
 0x1c0   : > { %v1744_v6 = vpop.f32.mrf.mxu2 }
 0x1c1   : > { %v1745_v11 = vadd.f32 %v1744_v6, %v1656_v41  ;;  %1975 = vmatmul.bf16.gmra.mxu1 %v3982_v42  ;;  %v3992_v6 = vld [vmem:[#allocation3_spill] sm:$0xff] }
 0x1c2   : > { %v1833_v32 = vpop.f32.mrf.mxu3 }
 0x1c3   : > { %v1834_v7 = vadd.f32 %v1833_v32, %v1745_v11 }
 0x1c4   : > { %v1927_v54 = vpop.f32.mrf.mxu0 }
 0x1c5   : > { %v3779_v2 = vadd.f32 %v1922_v23, %v1834_v7  ;;  %v3993_v7 = vld [vmem:[#allocation19_spill] sm:$0xff] }
 0x1c6   : > { %v1662_v3 = vpop.f32.mrf.mxu1 }
 0x1c7   : > { %2242 = vmatmul.bf16.gmra.mxu0 %v3987_v38  ;;  %v1663_v22 = vadd.f32 %v1662_v3, %v3991_v58 }
 0x1c8   : > { %v1746_v25 = vpop.f32.mrf.mxu2 }
 0x1c9   : > { %v1747_v27 = vadd.f32 %v1746_v25, %v1658_v59  ;;  %v3994_v59 = vld [vmem:[#allocation20_spill] sm:$0xff] }
 0x1ca   : > { %v1835_v21 = vpop.f32.mrf.mxu3 }
 0x1cb   : > { %v1836_v14 = vadd.f32 %v1835_v21, %v1747_v27 }
 0x1cc   : > { %v1929_v5 = vpop.f32.mrf.mxu0 }
 0x1cd   : > { %2064 = vmatmul.bf16.gmra.mxu2 %v3988_v15  ;;  %v3784_v26 = vadd.f32 %v1924_v19, %v1836_v14  ;;  %v3995_v15 = vld [vmem:[#allocation22_spill] sm:$0xff] }
 0x1ce   : > { %v1665_v37 = vpop.f32.mrf.mxu1 }
 0x1cf   : > { %2153 = vmatmul.bf16.gmra.mxu3 %v3990_v43  ;;  %v1666_v10 = vadd.f32 %v1665_v37, %v3993_v7  ;;  %v3999_v7 = vld [vmem:[#allocation25_spill] sm:$0xff] }
 0x1d0   : > { %v1749_v23 = vpop.f32.mrf.mxu2 }
 0x1d1   : > { %v1750_v36 = vadd.f32 %v1749_v23, %v1661_v24  ;;  %1980 = vmatmul.bf16.gmra.mxu1 %v3987_v38 }
 0x1d2   : > { %v1838_v45 = vpop.f32.mrf.mxu3 }
 0x1d3   : > { %v1839_v42 = vadd.f32 %v1838_v45, %v1750_v36  ;;  %v3996_v36 = vld [vmem:[#allocation5_spill] sm:$0xff] }
 0x1d4   : > { %v1932_v30 = vpop.f32.mrf.mxu0 }
 0x1d5   : > { %v3789_v4 = vadd.f32 %v1927_v54, %v1839_v42  ;;  %v3997_v42 = vld [vmem:[#allocation23_spill] sm:$0xff] }
 0x1d6   : > { %v1667_v57 = vpop.f32.mrf.mxu1 }
 0x1d7   : > { %2247 = vmatmul.bf16.gmra.mxu0 %v3561_v55  ;;  %v1668_v18 = vadd.f32 %v1667_v57, %v3995_v15  ;;  %v4001_v15 = vld [vmem:[#allocation26_spill] sm:$0xff] }
 0x1d8   : > { %v1751_v19 = vpop.f32.mrf.mxu2 }
 0x1d9   : > { %v1752_v9 = vadd.f32 %v1751_v19, %v1663_v22  ;;  %v3998_v22 = vld [vmem:[#allocation24_spill] sm:$0xff] }
 0x1da   : > { %v1840_v41 = vpop.f32.mrf.mxu3 }
 0x1db   : > { %v1841_v34 = vadd.f32 %v1840_v41, %v1752_v9 }
 0x1dc   : > { %v1934_v49 = vpop.f32.mrf.mxu0 }
 0x1dd   : > { %2069 = vmatmul.bf16.gmra.mxu2 %v3992_v6  ;;  %v3794_v11 = vadd.f32 %v1929_v5, %v1841_v34 }
 0x1de   : > { %v1670_v32 = vpop.f32.mrf.mxu1 }
 0x1df   : > { %2158 = vmatmul.bf16.gmra.mxu3 %v3994_v59  ;;  %v1671_v58 = vadd.f32 %v1670_v32, %v3997_v42 }
 0x1e0   : > { %v1754_v54 = vpop.f32.mrf.mxu2 }
 0x1e1   : > { %v1755_v38 = vadd.f32 %v1754_v54, %v1666_v10  ;;  %1985 = vmatmul.bf16.gmra.mxu1 %v3561_v55 }
 0x1e2   : > { %v1843_v3 = vpop.f32.mrf.mxu3 }
 0x1e3   : > { %v1844_v25 = vadd.f32 %v1843_v3, %v1755_v38  ;;  %v4000_v3 = vld [vmem:[#allocation8_spill] sm:$0xff] }
 0x1e4   : > { %v1937_v27 = vpop.f32.mrf.mxu0 }
 0x1e5   : > { %v3799_v21 = vadd.f32 %v1932_v30, %v1844_v25 }
 0x1e6   : > { %v1672_v14 = vpop.f32.mrf.mxu1 }
 0x1e7   : > { %2252 = vmatmul.bf16.gmra.mxu0 %v3591_v35  ;;  %v1673_v10 = vadd.f32 %v1672_v14, %v3999_v7 }
 0x1e8   : > { %v1756_v5 = vpop.f32.mrf.mxu2 }
 0x1e9   : > { %v1757_v24 = vadd.f32 %v1756_v5, %v1668_v18 }
 0x1ea   : > { %v1845_v43 = vpop.f32.mrf.mxu3 }
 0x1eb   : > { %v1846_v37 = vadd.f32 %v1845_v43, %v1757_v24 }
 0x1ec   : > { %v1939_v23 = vpop.f32.mrf.mxu0 }
 0x1ed   : > { %2074 = vmatmul.bf16.gmra.mxu2 %v3996_v36  ;;  %v3804_v45 = vadd.f32 %v1934_v49, %v1846_v37  ;;  %v4002_v36 = vld [vmem:[#allocation27_spill] sm:$0xff] }
 0x1ee   : > { %v1951_v55 = vpop.f32.mrf.mxu1 }
 0x1ef   : > { %2163 = vmatmul.bf16.gmra.mxu3 %v3998_v22  ;;  %v1952_v18 = vadd.f32 %v1951_v55, %v4001_v15 }
 0x1f0   : > { %v1759_v30 = vpop.f32.mrf.mxu2 }
 0x1f1   : > { %v1760_v19 = vadd.f32 %v1759_v30, %v1671_v58  ;;  %1990 = vmatmul.bf16.gmra.mxu1 %v3591_v35 }
 0x1f2   : > { %v1848_v57 = vpop.f32.mrf.mxu3 }
 0x1f3   : > { %v1849_v9 = vadd.f32 %v1848_v57, %v1760_v19 }
 0x1f4   : > { %v2218_v41 = vpop.f32.mrf.mxu0 }
 0x1f5   : > { %v3809_v34 = vadd.f32 %v1937_v27, %v1849_v9 }
 0x1f6   : > { %v1953_v6 = vpop.f32.mrf.mxu1 }
 0x1f7   : > { %2257 = vmatmul.bf16.gmra.mxu0 %v3609_v33 }
 0x1f8   : > { %v1761_v49 = vpop.f32.mrf.mxu2 }
 0x1f9   : > { %v1762_v59 = vadd.f32 %v1761_v49, %v1673_v10 }
 0x1fa   : > { %v1850_v32 = vpop.f32.mrf.mxu3 }
 0x1fb   : > { %v1851_v54 = vadd.f32 %v1850_v32, %v1762_v59 }
 0x1fc   : > { %v2220_v38 = vpop.f32.mrf.mxu0 }
 0x1fd   : > { %2079 = vmatmul.bf16.gmra.mxu2 %v4000_v3  ;;  %v3814_v25 = vadd.f32 %v1939_v23, %v1851_v54 }
 0x1fe   : > { %v1956_v35 = vpop.f32.mrf.mxu1 }
 0x1ff   : > { %2168 = vmatmul.bf16.gmra.mxu3 %v3579_v60  ;;  %v1954_v60 = vadd.f32 %v1953_v6, %v4002_v36  ;;  %v1957_v19 = vadd.f32 %v1956_v35, %v3605_v16  ;;  %v4003_v35 = vld [vmem:[#allocation28_spill] sm:$0xff] }
 0x200   : > { %v2040_v27 = vpop.f32.mrf.mxu2 }
 0x201   : > { %v2041_v5 = vadd.f32 %v2040_v27, %v1952_v18  ;;  %1995 = vmatmul.bf16.gmra.mxu1 %v3609_v33 }
 0x202   : > { %v2129_v14 = vpop.f32.mrf.mxu3 }
 0x203   : > { %v2130_v24 = vadd.f32 %v2129_v14, %v2041_v5 }
 0x204   : > { %v2223_v43 = vpop.f32.mrf.mxu0 }
 0x205   : > { %v2219_v37 = vadd.f32 %v2218_v41, %v2130_v24 }
 0x206   : > { %v1958_v23 = vpop.f32.mrf.mxu1 }
 0x207   : > { %2298 = vst [vmem:[%s3824_s30] sm:$0xff] %v2219_v37  ;;  %2262 = vmatmul.bf16.gmra.mxu0 %v3635_v0  ;;  %v2367_v9 = vmul.f32 %v2219_v37, %v2219_v37  ;;  %v1959_v15 = vadd.f32 %v1958_v23, %v4003_v35 }
 0x208   : > { %v2042_v55 = vpop.f32.mrf.mxu2 }
 0x209   : > { %v2043_v33 = vadd.f32 %v2042_v55, %v1954_v60  ;;  %v4005_v55 = vld [vmem:[#allocation30_spill] sm:$0xff] }
 0x20a   : > { %v2131_v42 = vpop.f32.mrf.mxu3 }
 0x20b   : > { %v2132_v58 = vadd.f32 %v2131_v42, %v2043_v33  ;;  %v4006_v42 = vld [vmem:[#allocation29_spill] sm:$0xff] }
 0x20c   : > { %v2225_v22 = vpop.f32.mrf.mxu0 }
 0x20d   : > { %v2221_v30 = vadd.f32 %v2220_v38, %v2132_v58  ;;  %2084 = vmatmul.bf16.gmra.mxu2 %v3353_v29 }
 0x20e   : > { %v1961_v57 = vpop.f32.mrf.mxu1 }
 0x20f   : > { %2299 = vst [vmem:[%s3824_s30 + $0x8] sm:$0xff] %v2221_v30  ;;  %v2330_v41 = vadd.f32 %v2221_v30, %v2219_v37  ;;  %v2368_v7 = vmul.f32 %v2221_v30, %v2221_v30  ;;  %2173 = vmatmul.bf16.gmra.mxu3 %v3603_v48  ;;  %v4004_v37 = vld [vmem:[#allocation4_spill] sm:$0xff]  ;;  %v1962_v33 = vadd.f32 %v1961_v57, %v4005_v55 }
 0x210   : > { %v2045_v6 = vpop.f32.mrf.mxu2 }
 0x211   : > { %v2399_v10 = vadd.f32 %v2368_v7, %v2367_v9  ;;  %v2046_v49 = vadd.f32 %v2045_v6, %v1957_v19  ;;  %2000 = vmatmul.bf16.gmra.mxu1 %v3635_v0 }
 0x212   : > { %v2134_v59 = vpop.f32.mrf.mxu3 }
 0x213   : > { %v2135_v32 = vadd.f32 %v2134_v59, %v2046_v49  ;;  %v4007_v49 = vld [vmem:[#allocation31_spill] sm:$0xff] }
 0x214   : > { %v2228_v54 = vpop.f32.mrf.mxu0 }
 0x215   : > { %v2224_v38 = vadd.f32 %v2223_v43, %v2135_v32 }
 0x216   : > { %v1963_v29 = vpop.f32.mrf.mxu1 }
 0x217   : > { %2300 = vst [vmem:[%s3824_s30 + $0x10] sm:$0xff] %v2224_v38  ;;  %v2331_v16 = vadd.f32 %v2330_v41, %v2224_v38  ;;  %v2369_v3 = vmul.f32 %v2224_v38, %v2224_v38  ;;  %2267 = vmatmul.bf16.gmra.mxu0 %v3647_v62  ;;  %v1964_v59 = vadd.f32 %v1963_v29, %v4007_v49 }
 0x218   : > { %v2047_v18 = vpop.f32.mrf.mxu2 }
 0x219   : > { %v2400_v48 = vadd.f32 %v2399_v10, %v2369_v3  ;;  %v2048_v27 = vadd.f32 %v2047_v18, %v1959_v15  ;;  %v4008_v15 = vld [vmem:[#allocation6_spill] sm:$0xff] }
 0x21a   : > { %v2136_v5 = vpop.f32.mrf.mxu3 }
 0x21b   : > { %v2137_v14 = vadd.f32 %v2136_v5, %v2048_v27  ;;  %v4009_v27 = vld [vmem:[#allocation33_spill] sm:$0xff] }
 0x21c   : > { %v2230_v24 = vpop.f32.mrf.mxu0 }
 0x21d   : > { %v2226_v0 = vadd.f32 %v2225_v22, %v2137_v14  ;;  %2089 = vmatmul.bf16.gmra.mxu2 %v4004_v37  ;;  %v4010_v14 = vld [vmem:[#allocation32_spill] sm:$0xff] }
 0x21e   : > { %v1966_v43 = vpop.f32.mrf.mxu1 }
 0x21f   : > { %2301 = vst [vmem:[%s3824_s30 + $0x18] sm:$0xff] %v2226_v0  ;;  %v2332_v36 = vadd.f32 %v2331_v16, %v2226_v0  ;;  %v2370_v60 = vmul.f32 %v2226_v0, %v2226_v0  ;;  %2178 = vmatmul.bf16.gmra.mxu3 %v4006_v42  ;;  %v1967_v5 = vadd.f32 %v1966_v43, %v4009_v27  ;;  %v4013_v27 = vld [vmem:[#allocation36_spill] sm:$0xff] }
 0x220   : > { %v2050_v23 = vpop.f32.mrf.mxu2 }
 0x221   : > { %v2401_v58 = vadd.f32 %v2400_v48, %v2370_v60  ;;  %v2051_v30 = vadd.f32 %v2050_v23, %v1962_v33  ;;  %2005 = vmatmul.bf16.gmra.mxu1 %v3647_v62 }
 0x222   : > { %v2139_v19 = vpop.f32.mrf.mxu3 }
 0x223   : > { %v2140_v9 = vadd.f32 %v2139_v19, %v2051_v30 }
 0x224   : > { %v2233_v41 = vpop.f32.mrf.mxu0 }
 0x225   : > { %v2229_v22 = vadd.f32 %v2228_v54, %v2140_v9 }
 0x226   : > { %v1968_v7 = vpop.f32.mrf.mxu1 }
 0x227   : > { %2302 = vst [vmem:[%s3824_s30 + $0x20] sm:$0xff] %v2229_v22  ;;  %v2333_v6 = vadd.f32 %v2332_v36, %v2229_v22  ;;  %v2371_v10 = vmul.f32 %v2229_v22, %v2229_v22  ;;  %2272 = vmatmul.bf16.gmra.mxu0 %v3687_v47 }
 0x228   : > { %v2052_v57 = vpop.f32.mrf.mxu2 }
 0x229   : > { %v2402_v32 = vadd.f32 %v2401_v58, %v2371_v10  ;;  %v2053_v38 = vadd.f32 %v2052_v57, %v1964_v59  ;;  %v4011_v58 = vld [vmem:[#allocation34_spill] sm:$0xff]  ;;  %v4012_v57 = vld [vmem:[#allocation35_spill] sm:$0xff] }
 0x22a   : > { %v2141_v16 = vpop.f32.mrf.mxu3  ;;  %v1969_v30 = vadd.f32 %v1968_v7, %v4011_v58 }
 0x22b   : > { %v2142_v3 = vadd.f32 %v2141_v16, %v2053_v38 }
 0x22c   : > { %v2235_v35 = vpop.f32.mrf.mxu0 }
 0x22d   : > { %v2231_v62 = vadd.f32 %v2230_v24, %v2142_v3  ;;  %2094 = vmatmul.bf16.gmra.mxu2 %v4008_v15 }
 0x22e   : > { %v1971_v54 = vpop.f32.mrf.mxu1 }
 0x22f   : > { %2303 = vst [vmem:[%s3824_s30 + $0x28] sm:$0xff] %v2231_v62  ;;  %v2334_v18 = vadd.f32 %v2333_v6, %v2231_v62  ;;  %v2372_v48 = vmul.f32 %v2231_v62, %v2231_v62  ;;  %2183 = vmatmul.bf16.gmra.mxu3 %v4010_v14  ;;  %v740_v14 = vld [vmem:[#allocation2 + $0x172] sm:$0xff] }
 0x230   : > { %v2055_v29 = vpop.f32.mrf.mxu2 }
 0x231   : > { %v2403_v0 = vadd.f32 %v2402_v32, %v2372_v48  ;;  %v2056_v37 = vadd.f32 %v2055_v29, %v1967_v5  ;;  %2010 = vmatmul.bf16.gmra.mxu1 %v3687_v47  ;;  %v1972_v32 = vadd.f32 %v1971_v54, %v4012_v57  ;;  %v739_v54 = vld [vmem:[#allocation2 + $0x16a] sm:$0xff] }
 0x232   : > { %v2144_v36 = vpop.f32.mrf.mxu3 }
 0x233   : > { %v2145_v60 = vadd.f32 %v2144_v36, %v2056_v37 }
 0x234   : > { %v2238_v55 = vpop.f32.mrf.mxu0 }
 0x235   : > { %v2234_v24 = vadd.f32 %v2233_v41, %v2145_v60  ;;  %v772_v60 = vpack.c.bf16 %v740_v14, %v740_v14 }
 0x236   : > { %v1973_v33 = vpop.f32.mrf.mxu1 }
 0x237   : > { %2304 = vst [vmem:[%s3824_s30 + $0x30] sm:$0xff] %v2234_v24  ;;  %v2335_v42 = vadd.f32 %v2334_v18, %v2234_v24  ;;  %v2373_v23 = vmul.f32 %v2234_v24, %v2234_v24  ;;  %2277 = vmatmul.bf16.gmra.mxu0 %v3701_v13  ;;  %v1974_v5 = vadd.f32 %v1973_v33, %v4013_v27 }
 0x238   : > { %v2057_v43 = vpop.f32.mrf.mxu2 }
 0x239   : > { %v2404_v19 = vadd.f32 %v2403_v0, %v2373_v23  ;;  %v2058_v9 = vadd.f32 %v2057_v43, %v1969_v30  ;;  %v4015_v43 = vld [vmem:[#allocation37_spill] sm:$0xff] }
 0x23a   : > { %v2146_v22 = vpop.f32.mrf.mxu3 }
 0x23b   : > { %v2147_v6 = vadd.f32 %v2146_v22, %v2058_v9  ;;  %v1058_v9 = vunpack.c.l.b16 %v772_v60 }
 0x23c   : > { %v2240_v10 = vpop.f32.mrf.mxu0 }
 0x23d   : > { %v2236_v47 = vadd.f32 %v2235_v35, %v2147_v6  ;;  %2099 = vmatmul.bf16.gmra.mxu2 %v3331_v50 }
 0x23e   : > { %v1976_v41 = vpop.f32.mrf.mxu1 }
 0x23f   : > { %2305 = vst [vmem:[%s3824_s30 + $0x38] sm:$0xff] %v2236_v47  ;;  %v2336_v49 = vadd.f32 %v2335_v42, %v2236_v47  ;;  %v2374_v59 = vmul.f32 %v2236_v47, %v2236_v47  ;;  %2188 = vmatmul.bf16.gmra.mxu3 %v3674_v39  ;;  %v4014_v42 = vld [vmem:[#allocation10_spill] sm:$0xff] }
 0x240   : > { %v2060_v7 = vpop.f32.mrf.mxu2 }
 0x241   : > { %v2405_v38 = vadd.f32 %v2404_v19, %v2374_v59  ;;  %v2061_v16 = vadd.f32 %v2060_v7, %v1972_v32  ;;  %2015 = vmatmul.bf16.gmra.mxu1 %v3701_v13  ;;  %v771_v13 = vpack.c.bf16 %v739_v54, %v739_v54  ;;  %v1977_v19 = vadd.f32 %v1976_v41, %v4015_v43 }
 0x242   : > { %v2149_v3 = vpop.f32.mrf.mxu3 }
 0x243   : > { %v2150_v62 = vadd.f32 %v2149_v3, %v2061_v16  ;;  %v1057_v58 = vunpack.c.l.b16 %v771_v13  ;;  %v4016_v3 = vld [vmem:[#allocation38_spill] sm:$0xff] }
 0x244   : > { %v2243_v15 = vpop.f32.mrf.mxu0 }
 0x245   : > { %v2239_v35 = vadd.f32 %v2238_v55, %v2150_v62  ;;  %v1059_v59 = vpack.c.b16 %v1058_v9, %v1057_v58 }
 0x246   : > { %v1978_v18 = vpop.f32.mrf.mxu1 }
 0x247   : > { %2306 = vst [vmem:[%s3824_s30 + $0x40] sm:$0xff] %v2239_v35  ;;  %v2337_v50 = vadd.f32 %v2336_v49, %v2239_v35  ;;  %v2375_v48 = vmul.f32 %v2239_v35, %v2239_v35  ;;  %2282 = vmatmul.bf16.gmra.mxu0 %v3719_v17  ;;  %v1979_v41 = vadd.f32 %v1978_v18, %v4016_v3 }
 0x248   : > { %v2062_v39 = vpop.f32.mrf.mxu2 }
 0x249   : > { %v2406_v29 = vadd.f32 %v2405_v38, %v2375_v48  ;;  %v2063_v0 = vadd.f32 %v2062_v39, %v1974_v5 }
 0x24a   : > { %v2151_v37 = vpop.f32.mrf.mxu3 }
 0x24b   : > { %v2152_v36 = vadd.f32 %v2151_v37, %v2063_v0  ;;  %v4017_v0 = vmov 0  }
 0x24c   : > { %v2245_v24 = vpop.f32.mrf.mxu0  ;;  %v1062_v37 = vunpack.c.l.b16 %v4017_v0 }
 0x24d   : > { %v2241_v55 = vadd.f32 %v2240_v10, %v2152_v36  ;;  %2104 = vmatmul.bf16.gmra.mxu2 %v4014_v42 }
 0x24e   : > { %v1981_v23 = vpop.f32.mrf.mxu1 }
 0x24f   : > { %2307 = vst [vmem:[%s3824_s30 + $0x48] sm:$0xff] %v2241_v55  ;;  %v2338_v33 = vadd.f32 %v2337_v50, %v2241_v55  ;;  %v2376_v30 = vmul.f32 %v2241_v55, %v2241_v55  ;;  %2193 = vmatmul.bf16.gmra.mxu3 %v3695_v61  ;;  %v1982_v39 = vadd.f32 %v1981_v23, %v3715_v1 }
 0x250   : > { %v2065_v22 = vpop.f32.mrf.mxu2 }
 0x251   : > { %v2407_v6 = vadd.f32 %v2406_v29, %v2376_v30  ;;  %v2066_v47 = vadd.f32 %v2065_v22, %v1977_v19  ;;  %2020 = vmatmul.bf16.gmra.mxu1 %v3719_v17 }
 0x252   : > { %v2154_v49 = vpop.f32.mrf.mxu3 }
 0x253   : > { %v2155_v10 = vadd.f32 %v2154_v49, %v2066_v47 }
 0x254   : > { %v2248_v57 = vpop.f32.mrf.mxu0 }
 0x255   : > { %v2244_v32 = vadd.f32 %v2243_v15, %v2155_v10 }
 0x256   : > { %v1983_v7 = vpop.f32.mrf.mxu1 }
 0x257   : > { %2308 = vst [vmem:[%s3824_s30 + $0x50] sm:$0xff] %v2244_v32  ;;  %v2339_v38 = vadd.f32 %v2338_v33, %v2244_v32  ;;  %v2377_v16 = vmul.f32 %v2244_v32, %v2244_v32  ;;  %2287 = vmatmul.bf16.gmra.mxu0 %v1059_v59  ;;  %v1984_v1 = vadd.f32 %v1983_v7, %v3724_v31 }
 0x258   : > { %v2067_v61 = vpop.f32.mrf.mxu2 }
 0x259   : > { %v2408_v62 = vadd.f32 %v2407_v6, %v2377_v16  ;;  %v2068_v35 = vadd.f32 %v2067_v61, %v1979_v41 }
 0x25a   : > { %v2156_v50 = vpop.f32.mrf.mxu3 }
 0x25b   : > { %v2157_v48 = vadd.f32 %v2156_v50, %v2068_v35 }
 0x25c   : > { %v2250_v27 = vpop.f32.mrf.mxu0 }
 0x25d   : > { %v2246_v17 = vadd.f32 %v2245_v24, %v2157_v48  ;;  %2109 = vmatmul.bf16.gmra.mxu2 %v3721_v56  ;;  %v1063_v56 = vpack.c.b16 %v1062_v37, %v1062_v37 }
 0x25e   : > { %v1986_v5 = vpop.f32.mrf.mxu1 }
 0x25f   : > { %2309 = vst [vmem:[%s3824_s30 + $0x58] sm:$0xff] %v2246_v17  ;;  %v2340_v15 = vadd.f32 %v2339_v38, %v2246_v17  ;;  %v2378_v54 = vmul.f32 %v2246_v17, %v2246_v17  ;;  %2198 = vmatmul.bf16.gmra.mxu3 %v3713_v12  ;;  %v1987_v49 = vadd.f32 %v1986_v5, %v3729_v28 }
 0x260   : > { %v2070_v18 = vpop.f32.mrf.mxu2 }
 0x261   : > { %v2409_v14 = vadd.f32 %v2408_v62, %v2378_v54  ;;  %v2071_v29 = vadd.f32 %v2070_v18, %v1982_v39  ;;  %2025 = vmatmul.bf16.gmra.mxu1 %v1059_v59 }
 0x262   : > { %v2159_v13 = vpop.f32.mrf.mxu3 }
 0x263   : > { %v2160_v36 = vadd.f32 %v2159_v13, %v2071_v29 }
 0x264   : > { %v2253_v60 = vpop.f32.mrf.mxu0 }
 0x265   : > { %v2249_v24 = vadd.f32 %v2248_v57, %v2160_v36 }
 0x266   : > { %v1988_v55 = vpop.f32.mrf.mxu1 }
 0x267   : > { %2310 = vst [vmem:[%s3824_s30 + $0x60] sm:$0xff] %v2249_v24  ;;  %v2341_v42 = vadd.f32 %v2340_v15, %v2249_v24  ;;  %v2379_v58 = vmul.f32 %v2249_v24, %v2249_v24  ;;  %2292 = vmatmul.bf16.gmra.mxu0 %v1063_v56  ;;  %v1989_v61 = vadd.f32 %v1988_v55, %v3734_v8 }
 0x268   : > { %v2072_v12 = vpop.f32.mrf.mxu2 }
 0x269   : > { %v2410_v23 = vadd.f32 %v2409_v14, %v2379_v58  ;;  %v2073_v33 = vadd.f32 %v2072_v12, %v1984_v1 }
 0x26a   : > { %v2161_v30 = vpop.f32.mrf.mxu3 }
 0x26b   : > { %v2162_v43 = vadd.f32 %v2161_v30, %v2073_v33 }
 0x26c   : > { %v2255_v19 = vpop.f32.mrf.mxu0 }
 0x26d   : > { %v2251_v9 = vadd.f32 %v2250_v27, %v2162_v43  ;;  %2114 = vmatmul.bf16.gmra.mxu2 %v1063_v56 }
 0x26e   : > { %v1991_v22 = vpop.f32.mrf.mxu1 }
 0x26f   : > { %2311 = vst [vmem:[%s3824_s30 + $0x68] sm:$0xff] %v2251_v9  ;;  %v2342_v6 = vadd.f32 %v2341_v42, %v2251_v9  ;;  %v2380_v47 = vmul.f32 %v2251_v9, %v2251_v9  ;;  %2203 = vmatmul.bf16.gmra.mxu3 %v1063_v56  ;;  %v1992_v39 = vadd.f32 %v1991_v22, %v3739_v52 }
 0x270   : > { %v2075_v10 = vpop.f32.mrf.mxu2 }
 0x271   : > { %v2411_v59 = vadd.f32 %v2410_v23, %v2380_v47  ;;  %v2076_v31 = vadd.f32 %v2075_v10, %v1987_v49 }
 0x272   : > { %v2164_v57 = vpop.f32.mrf.mxu3 }
 0x273   : > { %v2165_v32 = vadd.f32 %v2164_v57, %v2076_v31 }
 0x274   : > { %v2258_v7 = vpop.f32.mrf.mxu0 }
 0x275   : > { %v2254_v38 = vadd.f32 %v2253_v60, %v2165_v32 }
 0x276   : > { %v1993_v16 = vpop.f32.mrf.mxu1 }
 0x277   : > { %2312 = vst [vmem:[%s3824_s30 + $0x70] sm:$0xff] %v2254_v38  ;;  %v2343_v3 = vadd.f32 %v2342_v6, %v2254_v38  ;;  %v2381_v41 = vmul.f32 %v2254_v38, %v2254_v38  ;;  %v1994_v56 = vadd.f32 %v1993_v16, %v3744_v46 }
 0x278   : > { %v2077_v62 = vpop.f32.mrf.mxu2 }
 0x279   : > { %v2412_v35 = vadd.f32 %v2411_v59, %v2381_v41  ;;  %v2078_v50 = vadd.f32 %v2077_v62, %v1989_v61 }
 0x27a   : > { %v2166_v48 = vpop.f32.mrf.mxu3 }
 0x27b   : > { %v2167_v28 = vadd.f32 %v2166_v48, %v2078_v50 }
 0x27c   : > { %v2260_v27 = vpop.f32.mrf.mxu0 }
 0x27d   : > { %v2256_v17 = vadd.f32 %v2255_v19, %v2167_v28 }
 0x27e   : > { %v1996_v5 = vpop.f32.mrf.mxu1 }
 0x27f   : > { %2313 = vst [vmem:[%s3824_s30 + $0x78] sm:$0xff] %v2256_v17  ;;  %v2344_v15 = vadd.f32 %v2343_v3, %v2256_v17  ;;  %v2382_v54 = vmul.f32 %v2256_v17, %v2256_v17  ;;  %v1997_v19 = vadd.f32 %v1996_v5, %v3749_v20 }
 0x280   : > { %v2080_v18 = vpop.f32.mrf.mxu2 }
 0x281   : > { %v2413_v14 = vadd.f32 %v2412_v35, %v2382_v54  ;;  %v2081_v29 = vadd.f32 %v2080_v18, %v1992_v39 }
 0x282   : > { %v2169_v0 = vpop.f32.mrf.mxu3 }
 0x283   : > { %v2170_v37 = vadd.f32 %v2169_v0, %v2081_v29 }
 0x284   : > { %v2263_v8 = vpop.f32.mrf.mxu0 }
 0x285   : > { %v2259_v13 = vadd.f32 %v2258_v7, %v2170_v37 }
 0x286   : > { %v1998_v36 = vpop.f32.mrf.mxu1 }
 0x287   : > { %2314 = vst [vmem:[%s3824_s30 + $0x80] sm:$0xff] %v2259_v13  ;;  %v2345_v60 = vadd.f32 %v2344_v15, %v2259_v13  ;;  %v2383_v24 = vmul.f32 %v2259_v13, %v2259_v13  ;;  %v1999_v32 = vadd.f32 %v1998_v36, %v3754_v63 }
 0x288   : > { %v2082_v55 = vpop.f32.mrf.mxu2 }
 0x289   : > { %v2414_v42 = vadd.f32 %v2413_v14, %v2383_v24  ;;  %v2083_v58 = vadd.f32 %v2082_v55, %v1994_v56 }
 0x28a   : > { %v2171_v1 = vpop.f32.mrf.mxu3 }
 0x28b   : > { %v2172_v12 = vadd.f32 %v2171_v1, %v2083_v58 }
 0x28c   : > { %v2265_v52 = vpop.f32.mrf.mxu0 }
 0x28d   : > { %v2261_v23 = vadd.f32 %v2260_v27, %v2172_v12 }
 0x28e   : > { %v2001_v33 = vpop.f32.mrf.mxu1 }
 0x28f   : > { %2315 = vst [vmem:[%s3824_s30 + $0x88] sm:$0xff] %v2261_v23  ;;  %v2346_v30 = vadd.f32 %v2345_v60, %v2261_v23  ;;  %v2384_v43 = vmul.f32 %v2261_v23, %v2261_v23  ;;  %v2002_v48 = vadd.f32 %v2001_v33, %v3759_v44 }
 0x290   : > { %v2085_v9 = vpop.f32.mrf.mxu2 }
 0x291   : > { %v2415_v22 = vadd.f32 %v2414_v42, %v2384_v43  ;;  %v2086_v6 = vadd.f32 %v2085_v9, %v1997_v19 }
 0x292   : > { %v2174_v47 = vpop.f32.mrf.mxu3 }
 0x293   : > { %v2175_v49 = vadd.f32 %v2174_v47, %v2086_v6 }
 0x294   : > { %v2268_v46 = vpop.f32.mrf.mxu0 }
 0x295   : > { %v2264_v10 = vadd.f32 %v2263_v8, %v2175_v49 }
 0x296   : > { %v2003_v59 = vpop.f32.mrf.mxu1 }
 0x297   : > { %2316 = vst [vmem:[%s3824_s30 + $0x90] sm:$0xff] %v2264_v10  ;;  %v2347_v31 = vadd.f32 %v2346_v30, %v2264_v10  ;;  %v2385_v57 = vmul.f32 %v2264_v10, %v2264_v10  ;;  %v2004_v29 = vadd.f32 %v2003_v59, %v3764_v40 }
 0x298   : > { %v2087_v7 = vpop.f32.mrf.mxu2 }
 0x299   : > { %v2416_v38 = vadd.f32 %v2415_v22, %v2385_v57  ;;  %v2088_v16 = vadd.f32 %v2087_v7, %v1999_v32 }
 0x29a   : > { %v2176_v3 = vpop.f32.mrf.mxu3 }
 0x29b   : > { %v2177_v41 = vadd.f32 %v2176_v3, %v2088_v16 }
 0x29c   : > { %v2270_v20 = vpop.f32.mrf.mxu0 }
 0x29d   : > { %v2266_v61 = vadd.f32 %v2265_v52, %v2177_v41 }
 0x29e   : > { %v2006_v62 = vpop.f32.mrf.mxu1 }
 0x29f   : > { %2317 = vst [vmem:[%s3824_s30 + $0x98] sm:$0xff] %v2266_v61  ;;  %v2348_v35 = vadd.f32 %v2347_v31, %v2266_v61  ;;  %v2386_v50 = vmul.f32 %v2266_v61, %v2266_v61  ;;  %v2007_v42 = vadd.f32 %v2006_v62, %v3769_v51 }
 0x2a0   : > { %v2090_v28 = vpop.f32.mrf.mxu2 }
 0x2a1   : > { %v2417_v27 = vadd.f32 %v2416_v38, %v2386_v50  ;;  %v2091_v17 = vadd.f32 %v2090_v28, %v2002_v48 }
 0x2a2   : > { %v2179_v5 = vpop.f32.mrf.mxu3 }
 0x2a3   : > { %v2180_v15 = vadd.f32 %v2179_v5, %v2091_v17 }
 0x2a4   : > { %v2273_v63 = vpop.f32.mrf.mxu0 }
 0x2a5   : > { %v2269_v54 = vadd.f32 %v2268_v46, %v2180_v15 }
 0x2a6   : > { %v2008_v39 = vpop.f32.mrf.mxu1 }
 0x2a7   : > { %2318 = vst [vmem:[%s3824_s30 + $0xa0] sm:$0xff] %v2269_v54  ;;  %v2349_v18 = vadd.f32 %v2348_v35, %v2269_v54  ;;  %v2387_v14 = vmul.f32 %v2269_v54, %v2269_v54  ;;  %v2009_v19 = vadd.f32 %v2008_v39, %v3774_v53 }
 0x2a8   : > { %v2092_v0 = vpop.f32.mrf.mxu2 }
 0x2a9   : > { %v2418_v37 = vadd.f32 %v2417_v27, %v2387_v14  ;;  %v2093_v8 = vadd.f32 %v2092_v0, %v2004_v29 }
 0x2aa   : > { %v2181_v13 = vpop.f32.mrf.mxu3 }
 0x2ab   : > { %v2182_v44 = vadd.f32 %v2181_v13, %v2093_v8 }
 0x2ac   : > { %v2275_v36 = vpop.f32.mrf.mxu0 }
 0x2ad   : > { %v2271_v60 = vadd.f32 %v2270_v20, %v2182_v44 }
 0x2ae   : > { %v2011_v24 = vpop.f32.mrf.mxu1 }
 0x2af   : > { %2319 = vst [vmem:[%s3824_s30 + $0xa8] sm:$0xff] %v2271_v60  ;;  %v2350_v56 = vadd.f32 %v2349_v18, %v2271_v60  ;;  %v2388_v55 = vmul.f32 %v2271_v60, %v2271_v60  ;;  %v2012_v31 = vadd.f32 %v2011_v24, %v3779_v2 }
 0x2b0   : > { %v2095_v58 = vpop.f32.mrf.mxu2 }
 0x2b1   : > { %v2419_v1 = vadd.f32 %v2418_v37, %v2388_v55  ;;  %v2096_v12 = vadd.f32 %v2095_v58, %v2007_v42 }
 0x2b2   : > { %v2184_v52 = vpop.f32.mrf.mxu3 }
 0x2b3   : > { %v2185_v40 = vadd.f32 %v2184_v52, %v2096_v12 }
 0x2b4   : > { %v2278_v33 = vpop.f32.mrf.mxu0 }
 0x2b5   : > { %v2274_v23 = vadd.f32 %v2273_v63, %v2185_v40 }
 0x2b6   : > { %v2013_v22 = vpop.f32.mrf.mxu1 }
 0x2b7   : > { %2320 = vst [vmem:[%s3824_s30 + $0xb0] sm:$0xff] %v2274_v23  ;;  %v2351_v30 = vadd.f32 %v2350_v56, %v2274_v23  ;;  %v2389_v43 = vmul.f32 %v2274_v23, %v2274_v23  ;;  %v2014_v62 = vadd.f32 %v2013_v22, %v3784_v26 }
 0x2b8   : > { %v2097_v9 = vpop.f32.mrf.mxu2 }
 0x2b9   : > { %v2420_v6 = vadd.f32 %v2419_v1, %v2389_v43  ;;  %v2098_v47 = vadd.f32 %v2097_v9, %v2009_v19 }
 0x2ba   : > { %v2186_v49 = vpop.f32.mrf.mxu3 }
 0x2bb   : > { %v2187_v51 = vadd.f32 %v2186_v49, %v2098_v47 }
 0x2bc   : > { %v2280_v32 = vpop.f32.mrf.mxu0 }
 0x2bd   : > { %v2276_v46 = vadd.f32 %v2275_v36, %v2187_v51 }
 0x2be   : > { %v2016_v53 = vpop.f32.mrf.mxu1 }
 0x2bf   : > { %2321 = vst [vmem:[%s3824_s30 + $0xb8] sm:$0xff] %v2276_v46  ;;  %v2352_v10 = vadd.f32 %v2351_v30, %v2276_v46  ;;  %v2390_v59 = vmul.f32 %v2276_v46, %v2276_v46  ;;  %v2017_v54 = vadd.f32 %v2016_v53, %v3789_v4 }
 0x2c0   : > { %v2100_v57 = vpop.f32.mrf.mxu2 }
 0x2c1   : > { %v2421_v7 = vadd.f32 %v2420_v6, %v2390_v59  ;;  %v2101_v38 = vadd.f32 %v2100_v57, %v2012_v31 }
 0x2c2   : > { %v2189_v16 = vpop.f32.mrf.mxu3 }
 0x2c3   : > { %v2190_v3 = vadd.f32 %v2189_v16, %v2101_v38 }
 0x2c4   : > { %v2283_v27 = vpop.f32.mrf.mxu0 }
 0x2c5   : > { %v2279_v41 = vadd.f32 %v2278_v33, %v2190_v3 }
 0x2c6   : > { %v2018_v17 = vpop.f32.mrf.mxu1 }
 0x2c7   : > { %2322 = vst [vmem:[%s3824_s30 + $0xc0] sm:$0xff] %v2279_v41  ;;  %v2353_v20 = vadd.f32 %v2352_v10, %v2279_v41  ;;  %v2391_v61 = vmul.f32 %v2279_v41, %v2279_v41  ;;  %v2019_v36 = vadd.f32 %v2018_v17, %v3794_v11 }
 0x2c8   : > { %v2102_v35 = vpop.f32.mrf.mxu2 }
 0x2c9   : > { %v2422_v50 = vadd.f32 %v2421_v7, %v2391_v61  ;;  %v2103_v48 = vadd.f32 %v2102_v35, %v2014_v62 }
 0x2ca   : > { %v2191_v28 = vpop.f32.mrf.mxu3 }
 0x2cb   : > { %v2192_v2 = vadd.f32 %v2191_v28, %v2103_v48 }
 0x2cc   : > { %v2285_v0 = vpop.f32.mrf.mxu0 }
 0x2cd   : > { %v2281_v5 = vadd.f32 %v2280_v32, %v2192_v2 }
 0x2ce   : > { %v2021_v8 = vpop.f32.mrf.mxu1 }
 0x2cf   : > { %2323 = vst [vmem:[%s3824_s30 + $0xc8] sm:$0xff] %v2281_v5  ;;  %v2354_v15 = vadd.f32 %v2353_v20, %v2281_v5  ;;  %v2392_v63 = vmul.f32 %v2281_v5, %v2281_v5  ;;  %v2022_v52 = vadd.f32 %v2021_v8, %v3799_v21 }
 0x2d0   : > { %v2105_v39 = vpop.f32.mrf.mxu2 }
 0x2d1   : > { %v2423_v18 = vadd.f32 %v2422_v50, %v2392_v63  ;;  %v2106_v14 = vadd.f32 %v2105_v39, %v2017_v54 }
 0x2d2   : > { %v2194_v29 = vpop.f32.mrf.mxu3 }
 0x2d3   : > { %v2195_v26 = vadd.f32 %v2194_v29, %v2106_v14 }
 0x2d4   : > { %v2288_v58 = vpop.f32.mrf.mxu0 }
 0x2d5   : > { %v2284_v37 = vadd.f32 %v2283_v27, %v2195_v26 }
 0x2d6   : > { %v2023_v23 = vpop.f32.mrf.mxu1 }
 0x2d7   : > { %2324 = vst [vmem:[%s3824_s30 + $0xd0] sm:$0xff] %v2284_v37  ;;  %v2355_v13 = vadd.f32 %v2354_v15, %v2284_v37  ;;  %v2393_v44 = vmul.f32 %v2284_v37, %v2284_v37  ;;  %v2024_v6 = vadd.f32 %v2023_v23, %v3804_v45 }
 0x2d8   : > { %v2107_v60 = vpop.f32.mrf.mxu2 }
 0x2d9   : > { %v2424_v24 = vadd.f32 %v2423_v18, %v2393_v44  ;;  %v2108_v56 = vadd.f32 %v2107_v60, %v2019_v36 }
 0x2da   : > { %v2196_v55 = vpop.f32.mrf.mxu3 }
 0x2db   : > { %v2197_v4 = vadd.f32 %v2196_v55, %v2108_v56 }
 0x2dc   : > { %v2290_v47 = vpop.f32.mrf.mxu0 }
 0x2dd   : > { %v2286_v42 = vadd.f32 %v2285_v0, %v2197_v4 }
 0x2de   : > { %v2026_v21 = vpop.f32.mrf.mxu1 }
 0x2df   : > { %2325 = vst [vmem:[%s3824_s30 + $0xd8] sm:$0xff] %v2286_v42  ;;  %v2356_v1 = vadd.f32 %v2355_v13, %v2286_v42  ;;  %v2394_v12 = vmul.f32 %v2286_v42, %v2286_v42  ;;  %v2027_v7 = vadd.f32 %v2026_v21, %v3809_v34 }
 0x2e0   : > { %v2110_v40 = vpop.f32.mrf.mxu2 }
 0x2e1   : > { %v2425_v33 = vadd.f32 %v2424_v24, %v2394_v12  ;;  %v2111_v30 = vadd.f32 %v2110_v40, %v2022_v52 }
 0x2e2   : > { %v2199_v43 = vpop.f32.mrf.mxu3 }
 0x2e3   : > { %v2200_v11 = vadd.f32 %v2199_v43, %v2111_v30 }
 0x2e4   : > { %v2293_v3 = vpop.f32.mrf.mxu0 }
 0x2e5   : > { %v2289_v19 = vadd.f32 %v2288_v58, %v2200_v11 }
 0x2e6   : > { %v2028_v20 = vpop.f32.mrf.mxu1 }
 0x2e7   : > { %2326 = vst [vmem:[%s3824_s30 + $0xe0] sm:$0xff] %v2289_v19  ;;  %v2357_v9 = vadd.f32 %v2356_v1, %v2289_v19  ;;  %v2395_v22 = vmul.f32 %v2289_v19, %v2289_v19  ;;  %v2029_v50 = vadd.f32 %v2028_v20, %v3814_v25 }
 0x2e8   : > { %v2112_v49 = vpop.f32.mrf.mxu2 }
 0x2e9   : > { %v2426_v51 = vadd.f32 %v2425_v33, %v2395_v22  ;;  %v2113_v46 = vadd.f32 %v2112_v49, %v2024_v6 }
 0x2ea   : > { %v2201_v10 = vpop.f32.mrf.mxu3 }
 0x2eb   : > { %v2202_v59 = vadd.f32 %v2201_v10, %v2113_v46 }
 0x2ec   : > { %v2295_v34 = vpop.f32.mrf.mxu0 }
 0x2ed   : > { %v2291_v31 = vadd.f32 %v2290_v47, %v2202_v59 }
 0x2ef   : > { %2327 = vst [vmem:[%s3824_s30 + $0xe8] sm:$0xff] %v2291_v31  ;;  %v2358_v57 = vadd.f32 %v2357_v9, %v2291_v31  ;;  %v2396_v32 = vmul.f32 %v2291_v31, %v2291_v31 }
 0x2f0   : > { %v2115_v38 = vpop.f32.mrf.mxu2 }
 0x2f1   : > { %v2427_v16 = vadd.f32 %v2426_v51, %v2396_v32  ;;  %v2116_v53 = vadd.f32 %v2115_v38, %v2027_v7 }
 0x2f2   : > { %v2204_v45 = vpop.f32.mrf.mxu3 }
 0x2f3   : > { %v2205_v41 = vadd.f32 %v2204_v45, %v2116_v53 }
 0x2f5   : > { %v2294_v61 = vadd.f32 %v2293_v3, %v2205_v41 }
 0x2f7   : > { %2328 = vst [vmem:[%s3824_s30 + $0xf0] sm:$0xff] %v2294_v61  ;;  %v2359_v62 = vadd.f32 %v2358_v57, %v2294_v61  ;;  %v2397_v35 = vmul.f32 %v2294_v61, %v2294_v61 }
 0x2f8   : > { %v2117_v48 = vpop.f32.mrf.mxu2 }
 0x2f9   : > { %v2428_v28 = vadd.f32 %v2427_v16, %v2397_v35  ;;  %v2118_v27 = vadd.f32 %v2117_v48, %v2029_v50 }
 0x2fa   : > { %v2206_v2 = vpop.f32.mrf.mxu3 }
 0x2fb   : > { %v2207_v17 = vadd.f32 %v2206_v2, %v2118_v27 }
 0x2fd   : > { %v2296_v5 = vadd.f32 %v2295_v34, %v2207_v17 }
 0x2ff   : > { %2329 = vst [vmem:[%s3824_s30 + $0xf8] sm:$0xff] %v2296_v5  ;;  %v2360_v15 = vadd.f32 %v2359_v62, %v2296_v5  ;;  %v2398_v63 = vmul.f32 %v2296_v5, %v2296_v5 }
 0x301   : > { %v2361_v54 = vrot.slane %v2360_v15, 4  ;;  %v2429_v39 = vadd.f32 %v2428_v28, %v2398_v63 }
 0x303   : > { %v2362_v18 = vadd.f32 %v2361_v54, %v2360_v15  ;;  %v2430_v14 = vrot.slane %v2429_v39, 4 }
 0x305   : > { %v2363_v29 = vrot.slane %v2362_v18, 2  ;;  %v2431_v26 = vadd.f32 %v2430_v14, %v2429_v39 }
 0x307   : > { %v2364_v0 = vadd.f32 %v2363_v29, %v2362_v18  ;;  %v2432_v37 = vrot.slane %v2431_v26, 2 }
 0x309   : > { %v2365_v25 = vrot.slane %v2364_v0, 1  ;;  %v2433_v8 = vadd.f32 %v2432_v37, %v2431_v26 }
 0x30b   : > { %v2434_v13 = vrot.slane %v2433_v8, 1  ;;  %v2366_v44 = vadd.f32 %v2365_v25, %v2364_v0 }
 0x30d   : > { %v2435_v36 = vadd.f32 %v2434_v13, %v2433_v8 }
 0x30f   : > { %v2437_v60 = vsel %vm2436_vm0, %v2366_v44, %v2435_v36 }
 0x310   : > { %2438 = vst [vmem:[%s235_s8] sm:$0x3] %v2437_v60 }
 0x311 PF: > { %s16_s18 = sadd.s32 1, %s2943_s18  }
 0x312   : > { %p13_p4 = scmp.ge.s32.totalorder %s16_s18, 4  }
 0x314   :  { %15 = sbr.rel (!%p13_p4) target bundleno = 1 (0x1), region = 78 }

</bundles_post_ra>
